<compile_context>
chip_gen: v6e
topology: v6e:2x2x1
jax: 0.10.0
libtpu: 0.0.40
codegen_flags: <defaults>
</compile_context>

<pallas_src>
import math
import numpy as np

import jax
import jax.numpy as jnp
from jax import lax
from jax.experimental import pallas as pl
from jax.experimental.pallas import tpu as pltpu


# -----------------------------------------------------------------------------
# Fused Pallas kernel: LN-affine + Linear + tanh + Linear + merged-GLU.
# -----------------------------------------------------------------------------
def _fused_kernel(stats_ref, x_ref, lnw_ref, lnb_ref,
                  w1_ref, b1_ref, w2_ref, b2_ref, w3_ref, b3_ref, o_ref):
    k = pl.program_id(0)
    b = pl.program_id(1)
    t = pl.program_id(2)
    tt = o_ref.shape[2]
    Fp = o_ref.shape[3]

    # Hoisted LayerNorm moments: (mean, rstd) per (subband, sample) in SMEM.
    base = 2 * (k * pl.num_programs(1) + b)
    mu = stats_ref[base]
    rs = stats_ref[base + 1]

    # Current time tile of x; LN affine params are resident per subband and
    # row-sliced here instead of being re-streamed every grid step.
    row0 = pl.multiple_of(t * tt, tt)
    x = x_ref[0, 0]                                       # (tt, N) f32
    lnw = lnw_ref[0, pl.ds(row0, tt), :]                  # (tt, N)
    lnb = lnb_ref[0, pl.ds(row0, tt), :]
    xn = (x - mu) * rs * lnw + lnb

    # MLP: Linear(N->Dh) + tanh, Linear(Dh->Fp), merged GLU Linear(Fp->2*Fp).
    # bf16 MXU operands, f32 accumulation; weights arrive (in, out) so there
    # are no in-kernel transposes.
    h1 = jnp.dot(xn.astype(jnp.bfloat16), w1_ref[0],
                 preferred_element_type=jnp.float32) + b1_ref[0]
    h1 = jnp.tanh(h1).astype(jnp.bfloat16)                # (tt, Dh)
    h2 = jnp.dot(h1, w2_ref[0],
                 preferred_element_type=jnp.float32) + b2_ref[0]
    h2 = h2.astype(jnp.bfloat16)                          # (tt, Fp)
    ag = jnp.dot(h2, w3_ref[0],
                 preferred_element_type=jnp.float32) + b3_ref[0]   # (tt, 2*Fp)
    a = ag[:, :Fp]                                        # lane-aligned slices
    g = ag[:, Fp:]
    o_ref[0, 0] = a * jax.nn.sigmoid(g)                   # GLU: value * sigmoid(gate)


def _round_up(v, m):
    return ((v + m - 1) // m) * m


def _pick_time_tile(T):
    """Time tile: full T when T <= 128, else the largest divisor in [128, 512]
    (preferring multiples of 16 for bf16 sublane packing), else full T."""
    if T <= 128:
        return T
    for c in range(min(T, 512), 127, -1):
        if T % c == 0 and c % 16 == 0:
            return c
    for c in range(min(T, 512), 127, -1):
        if T % c == 0 and c % 8 == 0:
            return c
    return T


def run_fused_kernel(x, sp):
    """x: (B, K, T, N) f32, sp: stacked/padded params -> (K, B, T, Fo_pad) f32."""
    B, K, T, N = x.shape
    Dh = sp['w1'].shape[2]
    Fp = sp['w2'].shape[2]
    tt = _pick_time_tile(T)
    nt = T // tt

    # LayerNorm([T, N]) moments per (sample, subband), hoisted to a cheap XLA
    # reduce; packed as a flat f32 table [mu, rstd] indexed by 2*(k*B + b).
    mu = jnp.mean(x, axis=(2, 3))                                        # (B, K)
    var = jnp.mean(jnp.square(x - mu[:, :, None, None]), axis=(2, 3))
    rs = lax.rsqrt(var + 1e-5)
    stats = jnp.stack([mu.T, rs.T], axis=-1).reshape(-1)                 # (2*K*B,)

    in_specs = [
        pl.BlockSpec(memory_space=pltpu.MemorySpace.SMEM),               # LN stats
        pl.BlockSpec((1, 1, tt, N), lambda k, b, t: (b, k, t, 0)),       # x time tile
        pl.BlockSpec((1, T, N),     lambda k, b, t: (k, 0, 0)),          # ln_w (resident per k)
        pl.BlockSpec((1, T, N),     lambda k, b, t: (k, 0, 0)),          # ln_b
        pl.BlockSpec((1, N, Dh),    lambda k, b, t: (k, 0, 0)),          # w1  (in, out) bf16
        pl.BlockSpec((1, 1, Dh),    lambda k, b, t: (k, 0, 0)),          # b1
        pl.BlockSpec((1, Dh, Fp),   lambda k, b, t: (k, 0, 0)),          # w2  bf16
        pl.BlockSpec((1, 1, Fp),    lambda k, b, t: (k, 0, 0)),          # b2
        pl.BlockSpec((1, Fp, 2 * Fp), lambda k, b, t: (k, 0, 0)),        # w3 merged GLU bf16
        pl.BlockSpec((1, 1, 2 * Fp),  lambda k, b, t: (k, 0, 0)),        # b3 merged
    ]
    out_spec = pl.BlockSpec((1, 1, tt, Fp), lambda k, b, t: (k, b, t, 0))

    # VMEM budget: double-buffered sum of all blocks + headroom, capped under
    # v7x's 64 MiB physical VMEM.
    need = 2 * (
        tt * N * 4                       # x tile
        + 2 * T * N * 4                  # ln_w, ln_b resident
        + N * Dh * 2 + Dh * Fp * 2 + Fp * 2 * Fp * 2   # bf16 weights
        + (Dh + Fp + 2 * Fp) * 4         # biases
        + tt * Fp * 4)                   # output tile
    vmem_limit = int(min(max(need + (8 << 20), 32 << 20), 48 << 20))

    return pl.pallas_call(
        _fused_kernel,
        out_shape=jax.ShapeDtypeStruct((K, B, T, Fp), jnp.float32),
        grid=(K, B, nt),
        in_specs=in_specs,
        out_specs=out_spec,
        compiler_params=pltpu.CompilerParams(
            dimension_semantics=("parallel", "parallel", "parallel"),
            vmem_limit_bytes=vmem_limit),
    )(stats, x, sp['ln_w'], sp['ln_b'], sp['w1'], sp['b1'],
      sp['w2'], sp['b2'], sp['w3'], sp['b3'])


# -----------------------------------------------------------------------------
# Glue: complex re-packaging + per-subband un-pad (pure data movement in JAX).
# -----------------------------------------------------------------------------
def _band_to_output(y, fm, cac):
    """Replicates torch .view / .permute / view_as_complex of one subband output."""
    B, T, F = y.shape
    if cac:
        y = y.reshape(B, fm // 2, 2, F // fm, T)          # torch .view == row-major reshape
        y = jnp.transpose(y, (0, 1, 3, 4, 2))
        return lax.complex(y[..., 0], y[..., 1])          # (B, fm//2, F//fm, T)
    return y.reshape(B, fm, F // fm, T)


def mask_estimation_forward(x, stacked, bandwidths, fm, cac):
    """x: (B, K, T, fc_dim) -> (B, fm//2, sum(bw), T) complex64 (cac) per the module."""
    y = run_fused_kernel(x, stacked)                      # (K, B, T, Fo_pad)
    outs = []
    for i, bw in enumerate(bandwidths):
        Fi = bw * fm
        outs.append(_band_to_output(y[i, :, :, :Fi], fm, cac))
    return jnp.concatenate(outs, axis=-2)


# -----------------------------------------------------------------------------
# Pure-JAX reference (for correctness check of the Pallas kernel).
# -----------------------------------------------------------------------------
def run_subband_ref(xi, p):
    mu = jnp.mean(xi, axis=(1, 2), keepdims=True)
    var = jnp.mean(jnp.square(xi - mu), axis=(1, 2), keepdims=True)
    xn = (xi - mu) * lax.rsqrt(var + 1e-5) * p['ln_w'] + p['ln_b']
    h1 = jnp.tanh(jnp.einsum('btn,nd->btd', xn, p['w1'], precision='highest') + p['b1'])
    h2 = jnp.einsum('btd,df->btf', h1, p['w2'], precision='highest') + p['b2']
    a = jnp.einsum('btf,fg->btg', h2, p['w3a'], precision='highest') + p['b3a']
    g = jnp.einsum('btf,fg->btg', h2, p['w3b'], precision='highest') + p['b3b']
    return a * jax.nn.sigmoid(g)


def mask_estimation_ref(x, params, fm, cac):
    outs = []
    for i, p in enumerate(params):
        y = run_subband_ref(x[:, i], p)
        outs.append(_band_to_output(y, fm, cac))
    return jnp.concatenate(outs, axis=-2)


# -----------------------------------------------------------------------------
# Parameter init (mimics PyTorch defaults) and host-side stacking/padding.
# -----------------------------------------------------------------------------
def init_subband_params(key, T, N, Dh, Fo):
    ks = jax.random.split(key, 8)
    u = lambda k, shp, bound: jax.random.uniform(k, shp, jnp.float32, -bound, bound)
    k1, k2, k3 = 1.0 / math.sqrt(N), 1.0 / math.sqrt(Dh), 1.0 / math.sqrt(Fo)
    w1 = u(ks[0], (Dh, N), k1); b1 = u(ks[1], (Dh,), k1)          # torch (out, in)
    w2 = u(ks[2], (Fo, Dh), k2); b2 = u(ks[3], (Fo,), k2)
    w3 = u(ks[4], (2 * Fo, Fo), k3); b3 = u(ks[5], (2 * Fo,), k3)
    # LayerNorm default affine is ones/zeros; perturb so the affine path is exercised.
    ln_w = 1.0 + 0.1 * jax.random.normal(ks[6], (T, N), jnp.float32)
    ln_b = 0.1 * jax.random.normal(ks[7], (T, N), jnp.float32)
    return dict(
        ln_w=ln_w, ln_b=ln_b,
        w1=jnp.transpose(w1), b1=b1[None, :],                     # (N, Dh), (1, Dh)
        w2=jnp.transpose(w2), b2=b2[None, :],                     # (Dh, Fo), (1, Fo)
        w3a=jnp.transpose(w3[:Fo]), b3a=b3[None, :Fo],            # (Fo, Fo), (1, Fo)
        w3b=jnp.transpose(w3[Fo:]), b3b=b3[None, Fo:],
    )


def stack_params(params, Fp):
    """Stack per-subband params along K; zero-pad Fo to the common Fp (mult of
    128); merge the GLU halves into one (Fp, 2*Fp) weight; store weights bf16."""
    bf = jnp.bfloat16
    pad_c = lambda a, w: jnp.pad(a, ((0, 0), (0, w - a.shape[1])))
    ln_w = jnp.stack([p['ln_w'] for p in params])
    ln_b = jnp.stack([p['ln_b'] for p in params])
    w1 = jnp.stack([p['w1'] for p in params]).astype(bf)                  # (K, N, Dh)
    b1 = jnp.stack([p['b1'] for p in params])                             # (K, 1, Dh)
    w2 = jnp.stack([pad_c(p['w2'], Fp) for p in params]).astype(bf)       # (K, Dh, Fp)
    b2 = jnp.stack([pad_c(p['b2'], Fp) for p in params])                  # (K, 1, Fp)
    w3s, b3s = [], []
    for p in params:
        Fo = p['w3a'].shape[0]
        wa = jnp.pad(p['w3a'], ((0, Fp - Fo), (0, Fp - Fo)))              # (Fp, Fp)
        wb = jnp.pad(p['w3b'], ((0, Fp - Fo), (0, Fp - Fo)))
        w3s.append(jnp.concatenate([wa, wb], axis=1))                     # (Fp, 2*Fp)
        b3s.append(jnp.concatenate([pad_c(p['b3a'], Fp), pad_c(p['b3b'], Fp)], axis=1))
    w3 = jnp.stack(w3s).astype(bf)                                        # (K, Fp, 2*Fp)
    b3 = jnp.stack(b3s)                                                   # (K, 1, 2*Fp)
    return dict(ln_w=ln_w, ln_b=ln_b, w1=w1, b1=b1, w2=w2, b2=b2, w3=w3, b3=b3)


# -----------------------------------------------------------------------------
if __name__ == "__main__":
    # Small but TPU-aligned instance of MaskEstimationModule.
    B, K, T = 2, 3, 128                     # batch, subbands, time steps
    fc_dim, mlp_dim = 128, 128
    # TODO(synk): freq2bands(bandsplits, sr, n_fft) is not provided; bandwidths are given directly.
    bandwidths = [32, 48, 24]               # Fo = 128, 192, 96 -> padded to 256
    cac, is_mono = True, False
    fm = (2 if cac else 1) * (1 if is_mono else 2)     # frequency_mul = 4

    key = jax.random.PRNGKey(0)
    kx, kp = jax.random.split(key)
    x = jax.random.normal(kx, (B, K, T, fc_dim), jnp.float32)

    pkeys = jax.random.split(kp, K)
    params = [init_subband_params(pkeys[i], T, fc_dim, mlp_dim, bandwidths[i] * fm)
              for i in range(K)]
    Fp = max(_round_up(bw * fm, 128) for bw in bandwidths)
    stacked = stack_params(params, Fp)      # bf16 weights built once, outside the forward

    fwd = jax.jit(lambda xx, sp: mask_estimation_forward(xx, sp, bandwidths, fm, cac))
    out = jax.block_until_ready(fwd(x, stacked))

    total_bw = sum(bandwidths)
    expected = (B, fm // 2, total_bw, T) if cac else (B, fm, total_bw, T)
    assert out.shape == expected, out.shape
    assert out.dtype == (jnp.complex64 if cac else jnp.float32)

    ref = jax.block_until_ready(mask_estimation_ref(x, params, fm, cac))
    # bf16 MXU operands vs f32 'highest' reference -> loose-but-meaningful tolerance.
    np.testing.assert_allclose(np.asarray(out), np.asarray(ref), rtol=5e-2, atol=5e-2)

    print("KERNEL_OK")
</pallas_src>

<mosaic_0001>
module attributes {stable_mosaic.version = 11 : i64} {
  func.func @_fused_kernel(%arg0: i32, %arg1: i32, %arg2: i32, %arg3: memref<12xf32, #tpu.memory_space<smem>>, %arg4: memref<1x1x128x128xf32, #tpu.memory_space<vmem>>, %arg5: memref<1x128x128xf32, #tpu.memory_space<vmem>>, %arg6: memref<1x128x128xf32, #tpu.memory_space<vmem>>, %arg7: memref<1x128x128xbf16, #tpu.memory_space<vmem>>, %arg8: memref<1x1x128xf32, #tpu.memory_space<vmem>>, %arg9: memref<1x128x256xbf16, #tpu.memory_space<vmem>>, %arg10: memref<1x1x256xf32, #tpu.memory_space<vmem>>, %arg11: memref<1x256x512xbf16, #tpu.memory_space<vmem>>, %arg12: memref<1x1x512xf32, #tpu.memory_space<vmem>>, %arg13: memref<1x1x128x256xf32, #tpu.memory_space<vmem>>) attributes {dimension_semantics = [#tpu.dimension_semantics<parallel>, #tpu.dimension_semantics<parallel>, #tpu.dimension_semantics<parallel>], iteration_bounds = array<i64: 3, 2, 1>, scalar_prefetch = 0 : i64, scratch_operands = 0 : i64, tpu.core_type = #tpu.core_type<tc>, window_params = [{transform_indices = @transform_0, window_bounds = array<i64: 12>}, {transform_indices = @transform_1, window_bounds = array<i64: 1, 1, 128, 128>}, {transform_indices = @transform_2, window_bounds = array<i64: 1, 128, 128>}, {transform_indices = @transform_3, window_bounds = array<i64: 1, 128, 128>}, {transform_indices = @transform_4, window_bounds = array<i64: 1, 128, 128>}, {transform_indices = @transform_5, window_bounds = array<i64: 1, 1, 128>}, {transform_indices = @transform_6, window_bounds = array<i64: 1, 128, 256>}, {transform_indices = @transform_7, window_bounds = array<i64: 1, 1, 256>}, {transform_indices = @transform_8, window_bounds = array<i64: 1, 256, 512>}, {transform_indices = @transform_9, window_bounds = array<i64: 1, 1, 512>}, {transform_indices = @transform_10, window_bounds = array<i64: 1, 1, 128, 256>}]} {
    %c2_i32 = arith.constant 2 : i32
    %0 = arith.muli %arg0, %c2_i32 : i32
    %1 = arith.addi %0, %arg1 : i32
    %c2_i32_0 = arith.constant 2 : i32
    %2 = arith.muli %c2_i32_0, %1 : i32
    %3 = arith.index_cast %2 : i32 to index
    %4 = memref.load %arg3[%3] : memref<12xf32, #tpu.memory_space<smem>>
    %c1_i32 = arith.constant 1 : i32
    %5 = arith.addi %2, %c1_i32 : i32
    %6 = arith.index_cast %5 : i32 to index
    %7 = memref.load %arg3[%6] : memref<12xf32, #tpu.memory_space<smem>>
    %c128_i32 = arith.constant 128 : i32
    %8 = arith.muli %arg2, %c128_i32 : i32
    %9 = tpu.assume_multiple %8, 128 : i32
    %c0 = arith.constant 0 : index
    %c0_1 = arith.constant 0 : index
    %c0_2 = arith.constant 0 : index
    %c0_3 = arith.constant 0 : index
    %10 = vector.load %arg4[%c0, %c0_1, %c0_2, %c0_3] : memref<1x1x128x128xf32, #tpu.memory_space<vmem>>, vector<1x1x128x128xf32>
    %11 = vector.shape_cast %10 : vector<1x1x128x128xf32> to vector<128x128xf32>
    %c0_4 = arith.constant 0 : index
    %12 = arith.index_cast %9 : i32 to index
    %c0_5 = arith.constant 0 : index
    %13 = vector.load %arg5[%c0_4, %12, %c0_5] : memref<1x128x128xf32, #tpu.memory_space<vmem>>, vector<1x128x128xf32>
    %14 = vector.shape_cast %13 : vector<1x128x128xf32> to vector<128x128xf32>
    %c0_6 = arith.constant 0 : index
    %15 = arith.index_cast %9 : i32 to index
    %c0_7 = arith.constant 0 : index
    %16 = vector.load %arg6[%c0_6, %15, %c0_7] : memref<1x128x128xf32, #tpu.memory_space<vmem>>, vector<1x128x128xf32>
    %17 = vector.shape_cast %16 : vector<1x128x128xf32> to vector<128x128xf32>
    %18 = vector.broadcast %4 : f32 to vector<128x128xf32>
    %19 = arith.subf %11, %18 : vector<128x128xf32>
    %20 = vector.broadcast %7 : f32 to vector<128x128xf32>
    %21 = arith.mulf %19, %20 : vector<128x128xf32>
    %22 = arith.mulf %21, %14 : vector<128x128xf32>
    %23 = arith.addf %22, %17 : vector<128x128xf32>
    %24 = arith.truncf %23 : vector<128x128xf32> to vector<128x128xbf16>
    %c0_8 = arith.constant 0 : index
    %c0_9 = arith.constant 0 : index
    %c0_10 = arith.constant 0 : index
    %25 = vector.load %arg7[%c0_8, %c0_9, %c0_10] : memref<1x128x128xbf16, #tpu.memory_space<vmem>>, vector<1x128x128xbf16>
    %26 = vector.shape_cast %25 : vector<1x128x128xbf16> to vector<128x128xbf16>
    %cst = arith.constant dense<0.000000e+00> : vector<128x128xf32>
    %27 = tpu.matmul %24, %26, %cst {dimension_numbers = #tpu.dot_dimension_numbers<[1], [0], [0], [1], [0, 0, 1, 1], [], []>} : vector<128x128xbf16>, vector<128x128xbf16>, vector<128x128xf32> -> vector<128x128xf32>
    %c0_11 = arith.constant 0 : index
    %c0_12 = arith.constant 0 : index
    %c0_13 = arith.constant 0 : index
    %28 = vector.load %arg8[%c0_11, %c0_12, %c0_13] : memref<1x1x128xf32, #tpu.memory_space<vmem>>, vector<1x1x128xf32>
    %29 = vector.shape_cast %28 : vector<1x1x128xf32> to vector<1x128xf32>
    %30 = vector.broadcast %29 : vector<1x128xf32> to vector<128x128xf32>
    %31 = arith.addf %27, %30 : vector<128x128xf32>
    %32 = math.tanh %31 : vector<128x128xf32>
    %33 = arith.truncf %32 : vector<128x128xf32> to vector<128x128xbf16>
    %c0_14 = arith.constant 0 : index
    %c0_15 = arith.constant 0 : index
    %c0_16 = arith.constant 0 : index
    %34 = vector.load %arg9[%c0_14, %c0_15, %c0_16] : memref<1x128x256xbf16, #tpu.memory_space<vmem>>, vector<1x128x256xbf16>
    %35 = vector.shape_cast %34 : vector<1x128x256xbf16> to vector<128x256xbf16>
    %cst_17 = arith.constant dense<0.000000e+00> : vector<128x256xf32>
    %36 = tpu.matmul %33, %35, %cst_17 {dimension_numbers = #tpu.dot_dimension_numbers<[1], [0], [0], [1], [0, 0, 1, 1], [], []>} : vector<128x128xbf16>, vector<128x256xbf16>, vector<128x256xf32> -> vector<128x256xf32>
    %c0_18 = arith.constant 0 : index
    %c0_19 = arith.constant 0 : index
    %c0_20 = arith.constant 0 : index
    %37 = vector.load %arg10[%c0_18, %c0_19, %c0_20] : memref<1x1x256xf32, #tpu.memory_space<vmem>>, vector<1x1x256xf32>
    %38 = vector.shape_cast %37 : vector<1x1x256xf32> to vector<1x256xf32>
    %39 = vector.broadcast %38 : vector<1x256xf32> to vector<128x256xf32>
    %40 = arith.addf %36, %39 : vector<128x256xf32>
    %41 = arith.truncf %40 : vector<128x256xf32> to vector<128x256xbf16>
    %c0_21 = arith.constant 0 : index
    %c0_22 = arith.constant 0 : index
    %c0_23 = arith.constant 0 : index
    %42 = vector.load %arg11[%c0_21, %c0_22, %c0_23] : memref<1x256x512xbf16, #tpu.memory_space<vmem>>, vector<1x256x512xbf16>
    %43 = vector.shape_cast %42 : vector<1x256x512xbf16> to vector<256x512xbf16>
    %cst_24 = arith.constant dense<0.000000e+00> : vector<128x512xf32>
    %44 = tpu.matmul %41, %43, %cst_24 {dimension_numbers = #tpu.dot_dimension_numbers<[1], [0], [0], [1], [0, 0, 1, 1], [], []>} : vector<128x256xbf16>, vector<256x512xbf16>, vector<128x512xf32> -> vector<128x512xf32>
    %c0_25 = arith.constant 0 : index
    %c0_26 = arith.constant 0 : index
    %c0_27 = arith.constant 0 : index
    %45 = vector.load %arg12[%c0_25, %c0_26, %c0_27] : memref<1x1x512xf32, #tpu.memory_space<vmem>>, vector<1x1x512xf32>
    %46 = vector.shape_cast %45 : vector<1x1x512xf32> to vector<1x512xf32>
    %47 = vector.broadcast %46 : vector<1x512xf32> to vector<128x512xf32>
    %48 = arith.addf %44, %47 : vector<128x512xf32>
    %49 = vector.extract_strided_slice %48 {offsets = [0, 0], sizes = [128, 256], strides = [1, 1]} : vector<128x512xf32> to vector<128x256xf32>
    %50 = vector.extract_strided_slice %48 {offsets = [0, 256], sizes = [128, 256], strides = [1, 1]} : vector<128x512xf32> to vector<128x256xf32>
    %51 = arith.negf %50 : vector<128x256xf32>
    %52 = math.exp %51 : vector<128x256xf32>
    %cst_28 = arith.constant 1.000000e+00 : f32
    %53 = vector.broadcast %cst_28 : f32 to vector<128x256xf32>
    %54 = arith.addf %53, %52 : vector<128x256xf32>
    %55 = arith.divf %53, %54 : vector<128x256xf32>
    %56 = arith.mulf %49, %55 : vector<128x256xf32>
    %c0_29 = arith.constant 0 : index
    %c0_30 = arith.constant 0 : index
    %c0_31 = arith.constant 0 : index
    %c0_32 = arith.constant 0 : index
    %57 = vector.load %arg13[%c0_29, %c0_30, %c0_31, %c0_32] : memref<1x1x128x256xf32, #tpu.memory_space<vmem>>, vector<1x1x128x256xf32>
    %58 = vector.shape_cast %57 : vector<1x1x128x256xf32> to vector<128x256xf32>
    %59 = vector.shape_cast %56 : vector<128x256xf32> to vector<1x1x128x256xf32>
    tpu.vector_store %arg13[%c0_29, %c0_30, %c0_31, %c0_32], %59 {strides = array<i32>} : memref<1x1x128x256xf32, #tpu.memory_space<vmem>>, vector<1x1x128x256xf32>,
    return
  }
  func.func @transform_0(%arg0: i32, %arg1: i32, %arg2: i32) -> i32 {
    %c0_i32 = arith.constant 0 : i32
    %c0_i32_0 = arith.constant 0 : i32
    return %c0_i32 : i32
  }
  func.func @transform_1(%arg0: i32, %arg1: i32, %arg2: i32) -> (i32, i32, i32, i32) {
    %c0_i32 = arith.constant 0 : i32
    %c0_i32_0 = arith.constant 0 : i32
    return %arg1, %arg0, %arg2, %c0_i32 : i32, i32, i32, i32
  }
  func.func @transform_2(%arg0: i32, %arg1: i32, %arg2: i32) -> (i32, i32, i32) {
    %c0_i32 = arith.constant 0 : i32
    %c0_i32_0 = arith.constant 0 : i32
    %c0_i32_1 = arith.constant 0 : i32
    return %arg0, %c0_i32, %c0_i32_0 : i32, i32, i32
  }
  func.func @transform_3(%arg0: i32, %arg1: i32, %arg2: i32) -> (i32, i32, i32) {
    %c0_i32 = arith.constant 0 : i32
    %c0_i32_0 = arith.constant 0 : i32
    %c0_i32_1 = arith.constant 0 : i32
    return %arg0, %c0_i32, %c0_i32_0 : i32, i32, i32
  }
  func.func @transform_4(%arg0: i32, %arg1: i32, %arg2: i32) -> (i32, i32, i32) {
    %c0_i32 = arith.constant 0 : i32
    %c0_i32_0 = arith.constant 0 : i32
    %c0_i32_1 = arith.constant 0 : i32
    return %arg0, %c0_i32, %c0_i32_0 : i32, i32, i32
  }
  func.func @transform_5(%arg0: i32, %arg1: i32, %arg2: i32) -> (i32, i32, i32) {
    %c0_i32 = arith.constant 0 : i32
    %c0_i32_0 = arith.constant 0 : i32
    %c0_i32_1 = arith.constant 0 : i32
    return %arg0, %c0_i32, %c0_i32_0 : i32, i32, i32
  }
  func.func @transform_6(%arg0: i32, %arg1: i32, %arg2: i32) -> (i32, i32, i32) {
    %c0_i32 = arith.constant 0 : i32
    %c0_i32_0 = arith.constant 0 : i32
    %c0_i32_1 = arith.constant 0 : i32
    return %arg0, %c0_i32, %c0_i32_0 : i32, i32, i32
  }
  func.func @transform_7(%arg0: i32, %arg1: i32, %arg2: i32) -> (i32, i32, i32) {
    %c0_i32 = arith.constant 0 : i32
    %c0_i32_0 = arith.constant 0 : i32
    %c0_i32_1 = arith.constant 0 : i32
    return %arg0, %c0_i32, %c0_i32_0 : i32, i32, i32
  }
  func.func @transform_8(%arg0: i32, %arg1: i32, %arg2: i32) -> (i32, i32, i32) {
    %c0_i32 = arith.constant 0 : i32
    %c0_i32_0 = arith.constant 0 : i32
    %c0_i32_1 = arith.constant 0 : i32
    return %arg0, %c0_i32, %c0_i32_0 : i32, i32, i32
  }
  func.func @transform_9(%arg0: i32, %arg1: i32, %arg2: i32) -> (i32, i32, i32) {
    %c0_i32 = arith.constant 0 : i32
    %c0_i32_0 = arith.constant 0 : i32
    %c0_i32_1 = arith.constant 0 : i32
    return %arg0, %c0_i32, %c0_i32_0 : i32, i32, i32
  }
  func.func @transform_10(%arg0: i32, %arg1: i32, %arg2: i32) -> (i32, i32, i32, i32) {
    %c0_i32 = arith.constant 0 : i32
    %c0_i32_0 = arith.constant 0 : i32
    return %arg0, %arg1, %arg2, %c0_i32 : i32, i32, i32, i32
  }
}

</mosaic_0001>

<bundles_post_ra>
// kernel: squeeze.12
= control target key start
LH: loop header
LB: loop body
LE: loop exit
PB: predicated region body
PF: predicated region fallthrough
CT: control target
= control target key end

     0   :  { %vm4_vm0 = vcmask 523264   ;;  %vm294_vm1 = vcmask 1043458   ;;  %s400_s6 = smov 3  ;;  %vm299_vm2 = vcmask 1045508   ;;  %vm304_vm3 = vcmask 1047558   ;;  %s403_s9 = smov 12  ;;  %s4021_s0 = inlined_call_operand.vmem [shape: f32[1,2,128,192], index: 0, kind: input, shape index: {}]   ;;  %s4022_s1 = inlined_call_operand.vmem [shape: f32[2,2,2,48,128], index: 1, kind: output, shape index: {}]  }
   0x1   :  { %v1774_v0 = vld [vmem:[%s4021_s0 + $0x125] ss:$46 sm:%s400_s6]   ;;  %s408_s10 = smov 48  ;;  %s413_s15 = smov 192  ;;  %vm515_vm4 = vcmask 1045507   ;;  %vm717_vm5 = vcmask 1046532  }
   0x2   :  { %v1775_v1 = vld [vmem:[%s4021_s0 + $0xb5] ss:$38 sm:%s403_s9]   ;;  %s418_s16 = smov 3  ;;  %s421_s21 = smov 12  ;;  %vm721_vm6 = vcmask 1047559   ;;  %vm335_vm7 = vcmask 1048064  }
   0x3   :  { %v1776_v2 = vld [vmem:[%s4021_s0 + $0x29d] ss:$-82 sm:%s408_s10]   ;;  %v406_v3 = vsel %vm294_vm1, %v1775_v1, %v1774_v0  ;;  %s426_s22 = smov 48  ;;  %s431_s27 = smov 192 }
   0x4   :  { %v1777_v4 = vld [vmem:[%s4021_s0 + $0x4d] ss:$38 sm:%s413_s15]   ;;  %v411_v6 = vsel %vm299_vm2, %v1776_v2, %v406_v3  ;;  %v1779_v7 = vld [vmem:[%s4021_s0 + $0x3d] ss:$38 sm:%s421_s21]   ;;  %s289_s28 = smov 3  ;;  %s292_s4 = smov 12 }
   0x5   :  { %v1778_v5 = vld [vmem:[%s4021_s0 + $0xad] ss:$-44 sm:%s418_s16]   ;;  %v1780_v8 = vld [vmem:[%s4021_s0 + $0x63] ss:$8 sm:%s426_s22]   ;;  %v416_v9 = vsel %vm304_vm3, %v1777_v4, %v411_v6  ;;  %s297_s5 = smov 48  ;;  %s302_s10 = smov 192 }
   0x6   :  { %v424_v10 = vsel %vm294_vm1, %v1779_v7, %v1778_v5  ;;  %v1781_v11 = vld [vmem:[%s4021_s0 + $0x1f1] ss:$-52 sm:%s431_s27]   ;;  %s307_s11 = smov 3  ;;  %s310_s16 = smov 12 }
   0x7   :  { %v1745_v12 = vld [vmem:[%s4021_s0 + $0x25] ss:$46 sm:%s289_s28]   ;;  %v429_v13 = vsel %vm299_vm2, %v1780_v8, %v424_v10  ;;  %s315_s17 = smov 48  ;;  %s320_s22 = smov 192 }
   0x8   :  { %v1746_v14 = vld [vmem:[%s4021_s0 - $0x4b] ss:$38 sm:%s292_s4]   ;;  %v434_v16 = vsel %vm304_vm3, %v1781_v11, %v429_v13  ;;  %s456_s23 = smov 3  ;;  %s2113_s24 = smov 64  }
   0x9   :  { %v1747_v15 = vld [vmem:[%s4021_s0 + $0x19d] ss:$-82 sm:%s297_s5]   ;;  %v295_v17 = vsel %vm294_vm1, %v1746_v14, %v1745_v12  ;;  %v436_v20 = vsel %vm4_vm0, %v434_v16, %v416_v9  ;;  %s459_s27 = smov 12  ;;  %s464_s28 = smov 48 }
   0xa   :  { %v1748_v18 = vld [vmem:[%s4021_s0 - $0xb3] ss:$38 sm:%s302_s10]   ;;  %v300_v21 = vsel %vm299_vm2, %v1747_v15, %v295_v17  ;;  %v1750_v22 = vld [vmem:[%s4021_s0 - $0x43] ss:$38 sm:%s310_s16]   ;;  %s469_s4 = smov 192  ;;  %s474_s5 = smov 3 }
   0xb   :  { %v1749_v19 = vld [vmem:[%s4021_s0 + $0x2d] ss:$-44 sm:%s307_s11]   ;;  %v1751_v23 = vld [vmem:[%s4021_s0 - $0x1d] ss:$8 sm:%s315_s17]   ;;  %v305_v24 = vsel %vm304_vm3, %v1748_v18, %v300_v21  ;;  %s477_s10 = smov 12  ;;  %s482_s11 = smov 48 }
   0xc   :  { %437 = vrot.lane.b32.xlu1 %v436_v20, %s2113_s24  ;;  %v313_v25 = vsel %vm294_vm1, %v1750_v22, %v1749_v19  ;;  %v1752_v26 = vld [vmem:[%s4021_s0 + $0x171] ss:$-52 sm:%s320_s22]   ;;  %s487_s16 = smov 192  ;;  %s344_s17 = smov 3 }
   0xd   :  { %v318_v27 = vsel %vm299_vm2, %v1751_v23, %v313_v25  ;;  %v1789_v28 = vld [vmem:[%s4021_s0 + $0x1a5] ss:$46 sm:%s456_s23]   ;;  %s347_s20 = smov 12  ;;  %s352_s21 = smov 48 }
   0xe   :  { %v1790_v29 = vld [vmem:[%s4021_s0 + $0x135] ss:$38 sm:%s459_s27]   ;;  %v323_v30 = vsel %vm304_vm3, %v1752_v26, %v318_v27  ;;  %s357_s27 = smov 192  ;;  %s580_s22 = smov 48 }
   0xf   :  { %v462_v31 = vsel %vm294_vm1, %v1790_v29, %v1789_v28  ;;  %v1791_v32 = vld [vmem:[%s4021_s0 + $0x31d] ss:$-82 sm:%s464_s28]   ;;  %v325_v34 = vsel %vm4_vm0, %v323_v30, %v305_v24  ;;  %s362_s28 = smov 3  ;;  %v1818_v53 = vld [vmem:[%s4021_s0 + $0x85] ss:$46 sm:$0x7]  }
  0x10   :  { %v1792_v33 = vld [vmem:[%s4021_s0 + $0xcd] ss:$38 sm:%s469_s4]   ;;  %v467_v35 = vsel %vm299_vm2, %v1791_v32, %v462_v31  ;;  %326 = vrot.lane.b32.xlu0 %v325_v34, %s2113_s24  ;;  %s365_s4 = smov 12  ;;  %v1819_v59 = vld [vmem:[%s4021_s0 - $0x3] ss:$46 sm:$0x38]  }
  0x11   :  { %v1793_v36 = vld [vmem:[%s4021_s0 + $0xd3] ss:$8 sm:%s474_s5]   ;;  %v472_v38 = vsel %vm304_vm3, %v1792_v33, %v467_v35  ;;  %v1795_v40 = vld [vmem:[%s4021_s0 + $0x18d] ss:$-44 sm:%s482_s11]   ;;  %s370_s5 = smov 48  ;;  %s567_s11 = smov 192  ;;  %v565_v62 = vsel %vm515_vm4, %v1819_v59, %v1818_v53 }
  0x12   :  { %v1794_v37 = vld [vmem:[%s4021_s0 + $0x4b] ss:$46 sm:%s477_s10]   ;;  %s375_s10 = smov 192  ;;  %v1804_v7 = vld [vmem:[%s4021_s0 + $0x5] ss:$46 sm:$0x7]  }
  0x13   :  { %v480_v39 = vsel %vm294_vm1, %v1794_v37, %v1793_v36  ;;  %v1796_v42 = vld [vmem:[%s4021_s0 + $0xa7] ss:$8 sm:%s487_s16]   ;;  %v1763_v50 = vld [vmem:[%s4021_s0 + $0x53] ss:$8 sm:%s362_s28]   ;;  %s572_s16 = smov 3  ;;  %s585_s28 = smov 192 }
  0x14   :  { %v485_v41 = vsel %vm299_vm2, %v1795_v40, %v480_v39  ;;  %v1759_v43 = vld [vmem:[%s4021_s0 + $0xa5] ss:$46 sm:%s344_s17]   ;;  %s683_s9 = smov 192  ;;  %s616_s14 = smov 192 }
  0x15   :  { %v490_v44 = vsel %vm304_vm3, %v1796_v42, %v485_v41  ;;  %v1760_v45 = vld [vmem:[%s4021_s0 + $0x35] ss:$38 sm:%s347_s20]   ;;  %s536_s20 = smov 192  ;;  %s621_s15 = smov 3  ;;  %v1879_v42 = vld [vmem:[%s4021_s0 + $0x90] sm:$0x80]  }
  0x16   :  { %v1761_v46 = vld [vmem:[%s4021_s0 + $0x21d] ss:$-82 sm:%s352_s21]   ;;  %v492_v47 = vsel %vm4_vm0, %v490_v44, %v472_v38  ;;  %v350_v48 = vsel %vm294_vm1, %v1760_v45, %v1759_v43  ;;  %s575_s21 = smov 12  ;;  %v1846_v19 = vld [vmem:[%s4021_s0 + $0x185] ss:$46 sm:$0x7]  }
  0x17   :  { %v1762_v49 = vld [vmem:[%s4021_s0 - $0x33] ss:$38 sm:%s357_s27]   ;;  %493 = vrot.lane.b32.xlu1 %v492_v47, %s2113_s24  ;;  %v355_v51 = vsel %vm299_vm2, %v1761_v46, %v350_v48  ;;  %v1805_v8 = vld [vmem:[%s4021_s0 - $0x83] ss:$46 sm:$0x38]   ;;  %s670_s27 = smov 3 }
  0x18   :  { %v1764_v52 = vld [vmem:[%s4021_s0 - $0x35] ss:$46 sm:%s365_s4]   ;;  %v360_v54 = vsel %vm304_vm3, %v1762_v49, %v355_v51  ;;  %s518_s4 = smov 192  ;;  %v516_v10 = vsel %vm515_vm4, %v1805_v8, %v1804_v7  ;;  %v1832_v33 = vld [vmem:[%s4021_s0 + $0x105] ss:$46 sm:$0x7]  }
  0x19   :  { %v368_v55 = vsel %vm294_vm1, %v1764_v52, %v1763_v50  ;;  %v1765_v56 = vld [vmem:[%s4021_s0 + $0x10d] ss:$-44 sm:%s370_s5]   ;;  %v1766_v57 = vld [vmem:[%s4021_s0 + $0x27] ss:$8 sm:%s375_s10]   ;;  %s523_s5 = smov 3  ;;  %s526_s10 = smov 12 }
  0x1a   :  { %v373_v58 = vsel %vm299_vm2, %v1765_v56, %v368_v55  ;;  %v1820_v60 = vld [vmem:[%s4021_s0 - $0x53] ss:$38 sm:%s567_s11]   ;;  %s531_s11 = smov 48  ;;  %v1808_v14 = vld [vmem:[%s4021_s0 + $0xbd] ss:$38 sm:%s526_s10]   ;;  %s634_s2 = smov 192 }
  0x1b   :  { %v378_v61 = vsel %vm304_vm3, %v1766_v57, %v373_v58  ;;  %v1821_v63 = vld [vmem:[%s4021_s0 + $0x153] ss:$8 sm:%s572_s16]   ;;  %v570_v2 = vsel %vm304_vm3, %v1820_v60, %v565_v62  ;;  %v1823_v4 = vld [vmem:[%s4021_s0 + $0x20d] ss:$-44 sm:%s580_s22]   ;;  %s764_s3 = smov 3  ;;  %s767_s8 = smov 12 }
  0x1c   :  { %v1822_v0 = vld [vmem:[%s4021_s0 + $0xcb] ss:$46 sm:%s575_s21]   ;;  %v380_v1 = vsel %vm4_vm0, %v378_v61, %v360_v54  ;;  %s665_s21 = smov 192  ;;  %s783_s16 = smov 12 }
  0x1d   :  { %v578_v3 = vsel %vm294_vm1, %v1822_v0, %v1821_v63  ;;  %v1824_v5 = vld [vmem:[%s4021_s0 + $0x127] ss:$8 sm:%s585_s28]   ;;  %381 = vrot.lane.b32.xlu0 %v380_v1, %s2113_s24  ;;  %s673_s28 = smov 12  ;;  %v1878_v46 = vld [vmem:[%s4021_s0 - $0x23] ss:$46 sm:$0x70]  }
  0x1e   :  { %v583_v6 = vsel %vm299_vm2, %v1823_v4, %v578_v3  ;;  %v1806_v11 = vld [vmem:[%s4021_s0 - $0xd3] ss:$38 sm:%s518_s4]   ;;  %s678_s4 = smov 48  ;;  %v1847_v21 = vld [vmem:[%s4021_s0 + $0xfd] ss:$46 sm:$0x38]  }
  0x1f   :  { %v588_v9 = vsel %vm304_vm3, %v1824_v5, %v583_v6  ;;  %v1807_v12 = vld [vmem:[%s4021_s0 + $0x12d] ss:$-44 sm:%s523_s5]   ;;  %v1809_v15 = vld [vmem:[%s4021_s0 + $0xe3] ss:$8 sm:%s531_s11]   ;;  %v521_v16 = vsel %vm304_vm3, %v1806_v11, %v516_v10  ;;  %v663_v24 = vsel %vm515_vm4, %v1847_v21, %v1846_v19  ;;  %s780_s11 = smov 3  ;;  %s793_s22 = smov 192 }
  0x20   :  { %v590_v13 = vsel %vm4_vm0, %v588_v9, %v570_v2  ;;  %v529_v17 = vsel %vm294_vm1, %v1808_v14, %v1807_v12  ;;  %v1810_v18 = vld [vmem:[%s4021_s0 + $0x271] ss:$-52 sm:%s536_s20]   ;;  %v1849_v25 = vld [vmem:[%s4021_s0 + $0x1d3] ss:$8 sm:%s670_s27]   ;;  %s624_s20 = smov 12  ;;  %s711_s29 = smov 12 }
  0x21   :  { %591 = vrot.lane.b32.xlu1 %v590_v13, %s2113_s24  ;;  %v534_v20 = vsel %vm299_vm2, %v1809_v15, %v529_v17  ;;  %v1848_v22 = vld [vmem:[%s4021_s0 + $0xad] ss:$38 sm:%s665_s21]   ;;  %s629_s21 = smov 48  ;;  %v1833_v34 = vld [vmem:[%s4021_s0 + $0x7d] ss:$46 sm:$0x38]  }
  0x22   :  { %v539_v23 = vsel %vm304_vm3, %v1810_v18, %v534_v20  ;;  %v1850_v26 = vld [vmem:[%s4021_s0 + $0x14b] ss:$46 sm:%s673_s28]   ;;  %v668_v28 = vsel %vm304_vm3, %v1848_v22, %v663_v24  ;;  %v614_v36 = vsel %vm515_vm4, %v1833_v34, %v1832_v33  ;;  %s708_s28 = smov 3  ;;  %s724_s5 = smov 3  ;;  %v1863_v1 = vld [vmem:[%s4021_s0 + $0x10] sm:$0x80]  }
  0x23   :  { %v541_v27 = vsel %vm4_vm0, %v539_v23, %v521_v16  ;;  %v676_v29 = vsel %vm294_vm1, %v1850_v26, %v1849_v25  ;;  %v1851_v30 = vld [vmem:[%s4021_s0 + $0x28d] ss:$-44 sm:%s678_s4]   ;;  %v1852_v31 = vld [vmem:[%s4021_s0 + $0x1a7] ss:$8 sm:%s683_s9]   ;;  %s727_s6 = smov 12  ;;  %s876_s17 = smov 3 }
  0x24   :  { %542 = vrot.lane.b32.xlu0 %v541_v27, %s2113_s24  ;;  %v681_v32 = vsel %vm299_vm2, %v1851_v30, %v676_v29  ;;  %v1834_v37 = vld [vmem:[%s4021_s0 + $0x2d] ss:$38 sm:%s616_s14]   ;;  %s892_s23 = smov 3  ;;  %s905_s10 = smov 192 }
  0x25   :  { %v686_v35 = vsel %vm304_vm3, %v1852_v31, %v681_v32  ;;  %v1835_v38 = vld [vmem:[%s4021_s0 + $0x1ad] ss:$-44 sm:%s621_s15]   ;;  %v1837_v41 = vld [vmem:[%s4021_s0 + $0x163] ss:$8 sm:%s629_s21]   ;;  %v619_v43 = vsel %vm304_vm3, %v1834_v37, %v614_v36  ;;  %s788_s21 = smov 48  ;;  %s849_s4 = smov 192 }
  0x26   :  { %v688_v39 = vsel %vm4_vm0, %v686_v35, %v668_v28  ;;  %v1836_v40 = vld [vmem:[%s4021_s0 + $0x13d] ss:$38 sm:%s624_s20]   ;;  %v1911_v16 = vld [vmem:[%s4021_s0 + $0x190] sm:$0x80]   ;;  %s1001_s14 = smov 192  ;;  %s1006_s15 = smov 3 }
  0x27   :  { %689 = vrot.lane.b32.xlu1 %v688_v39, %s2113_s24  ;;  %v627_v44 = vsel %vm294_vm1, %v1836_v40, %v1835_v38  ;;  %v1838_v45 = vld [vmem:[%s4021_s0 + $0x2f1] ss:$-52 sm:%s634_s2]   ;;  %v1895_v31 = vld [vmem:[%s4021_s0 + $0x110] sm:$0x80]   ;;  %s1009_s20 = smov 12  ;;  %s1014_s26 = smov 48 }
  0x28   :  { %v632_v47 = vsel %vm299_vm2, %v1837_v41, %v627_v44  ;;  %v1876_v48 = vld [vmem:[%s4021_s0 + $0xe5] ss:$-82 sm:%s764_s3]   ;;  %v1862_v62 = vld [vmem:[%s4021_s0 - $0xa3] ss:$46 sm:$0x70]   ;;  %s1019_s27 = smov 192 }
  0x29   :  { %v1877_v49 = vld [vmem:[%s4021_s0 + $0x75] ss:$38 sm:%s767_s8]   ;;  %v637_v50 = vsel %vm304_vm3, %v1838_v45, %v632_v47  ;;  %s932_s3 = smov 3  ;;  %s940_s7 = smov 48 }
  0x2a   :  { %v770_v51 = vsel %vm294_vm1, %v1877_v49, %v1876_v48  ;;  %v1880_v52 = vld [vmem:[%s4021_s0 + $0x33] ss:$46 sm:%s780_s11]   ;;  %v639_v54 = vsel %vm4_vm0, %v637_v50, %v619_v43  ;;  %v1883_v58 = vld [vmem:[%s4021_s0 - $0xdd] ss:$46 sm:%s793_s22]   ;;  %s732_s11 = smov 48  ;;  %s879_s22 = smov 12 }
  0x2b   :  { %v1881_v53 = vld [vmem:[%s4021_s0 + $0xd1] ss:$-52 sm:%s783_s16]   ;;  %v774_v55 = vsel %vm717_vm5, %v1878_v46, %v770_v51  ;;  %v1882_v57 = vld [vmem:[%s4021_s0 + $0x43] ss:$8 sm:%s788_s21]   ;;  %s737_s16 = smov 192  ;;  %s945_s8 = smov 192 }
  0x2c   :  { %v786_v56 = vsel %vm294_vm1, %v1881_v53, %v1880_v52  ;;  %640 = vrot.lane.b32.xlu0 %v639_v54, %s2113_s24  ;;  %v778_v59 = vsel %vm721_vm6, %v1879_v42, %v774_v55  ;;  %v1860_v61 = vld [vmem:[%s4021_s0 + $0x65] ss:$-82 sm:%s708_s28]   ;;  %v1910_v9 = vld [vmem:[%s4021_s0 + $0xdd] ss:$46 sm:$0x70]   ;;  %s844_s28 = smov 48 }
  0x2d   :  { %v791_v60 = vsel %vm299_vm2, %v1882_v57, %v786_v56  ;;  %v1861_v0 = vld [vmem:[%s4021_s0 - $0xb] ss:$38 sm:%s711_s29]   ;;  %s895_s29 = smov 12  ;;  %s950_s13 = smov 3 }
  0x2e   :  { %v796_v63 = vsel %vm304_vm3, %v1883_v58, %v791_v60  ;;  %v714_v3 = vsel %vm294_vm1, %v1861_v0, %v1860_v61  ;;  %v1864_v4 = vld [vmem:[%s4021_s0 + $0xd] ss:$46 sm:%s724_s5]   ;;  %s900_s5 = smov 48  ;;  %v1894_v24 = vld [vmem:[%s4021_s0 + $0x5d] ss:$46 sm:$0x70]  }
  0x2f   :  { %v798_v2 = vsel %vm4_vm0, %v796_v63, %v778_v59  ;;  %v1865_v5 = vld [vmem:[%s4021_s0 - $0x9] ss:$8 sm:%s727_s6]   ;;  %v718_v6 = vsel %vm717_vm5, %v1862_v62, %v714_v3  ;;  %v1866_v8 = vld [vmem:[%s4021_s0 + $0xed] ss:$-44 sm:%s732_s11]   ;;  %s820_s11 = smov 3  ;;  %s958_s19 = smov 48 }
  0x30   :  { %799 = vrot.lane.b32.xlu1 %v798_v2, %s2113_s24  ;;  %v730_v7 = vsel %vm294_vm1, %v1865_v5, %v1864_v4  ;;  %v722_v10 = vsel %vm721_vm6, %v1863_v1, %v718_v6  ;;  %v1867_v12 = vld [vmem:[%s4021_s0 - $0xcb] ss:$38 sm:%s737_s16]   ;;  %s823_s16 = smov 12  ;;  %s963_s25 = smov 192 }
  0x31   :  { %v735_v11 = vsel %vm299_vm2, %v1866_v8, %v730_v7  ;;  %v1908_v13 = vld [vmem:[%s4021_s0 + $0x1e5] ss:$-82 sm:%s876_s17]   ;;  %s836_s17 = smov 3  ;;  %s1103_s2 = smov 12 }
  0x32   :  { %v740_v14 = vsel %vm304_vm3, %v1867_v12, %v735_v11  ;;  %v1909_v15 = vld [vmem:[%s4021_s0 + $0x175] ss:$38 sm:%s879_s22]   ;;  %s839_s22 = smov 12  ;;  %s1113_s6 = smov 192 }
  0x33   :  { %v742_v17 = vsel %vm4_vm0, %v740_v14, %v722_v10  ;;  %v882_v18 = vsel %vm294_vm1, %v1909_v15, %v1908_v13  ;;  %v1912_v19 = vld [vmem:[%s4021_s0 + $0xb3] ss:$46 sm:%s892_s23]   ;;  %v1915_v27 = vld [vmem:[%s4021_s0 - $0x5d] ss:$46 sm:%s905_s10]   ;;  %s991_s10 = smov 12  ;;  %s1121_s12 = smov 12 }
  0x34   :  { %v1913_v20 = vld [vmem:[%s4021_s0 + $0x151] ss:$-52 sm:%s895_s29]   ;;  %743 = vrot.lane.b32.xlu0 %v742_v17, %s2113_s24  ;;  %v886_v21 = vsel %vm717_vm5, %v1910_v9, %v882_v18  ;;  %s1131_s18 = smov 192  ;;  %s1044_s23 = smov 3 }
  0x35   :  { %v898_v22 = vsel %vm294_vm1, %v1913_v20, %v1912_v19  ;;  %v1914_v23 = vld [vmem:[%s4021_s0 + $0xc3] ss:$8 sm:%s900_s5]   ;;  %v890_v25 = vsel %vm721_vm6, %v1911_v16, %v886_v21  ;;  %s988_s5 = smov 3  ;;  %v1897_v35 = vld [vmem:[%s4021_s0 + $0x77] ss:$8 sm:%s839_s22]   ;;  %s1057_s29 = smov 192 }
  0x36   :  { %v903_v26 = vsel %vm299_vm2, %v1914_v23, %v898_v22  ;;  %v1892_v28 = vld [vmem:[%s4021_s0 + $0x165] ss:$-82 sm:%s820_s11]   ;;  %s996_s11 = smov 48  ;;  %s1188_s22 = smov 12 }
  0x37   :  { %v908_v29 = vsel %vm304_vm3, %v1915_v27, %v903_v26  ;;  %v1893_v30 = vld [vmem:[%s4021_s0 + $0xf5] ss:$38 sm:%s823_s16]   ;;  %s1075_s16 = smov 192  ;;  %s1164_s9 = smov 48 }
  0x38   :  { %v910_v32 = vsel %vm4_vm0, %v908_v29, %v890_v25  ;;  %v826_v33 = vsel %vm294_vm1, %v1893_v30, %v1892_v28  ;;  %v1896_v34 = vld [vmem:[%s4021_s0 + $0x8d] ss:$46 sm:%s836_s17]   ;;  %v1941_v45 = vld [vmem:[%s4021_s0 + $0x23d] ss:$-82 sm:%s996_s11]   ;;  %s1126_s17 = smov 48  ;;  %s1070_s11 = smov 48 }
  0x39   :  { %911 = vrot.lane.b32.xlu1 %v910_v32, %s2113_s24  ;;  %v830_v36 = vsel %vm717_vm5, %v1894_v24, %v826_v33  ;;  %v842_v37 = vsel %vm294_vm1, %v1897_v35, %v1896_v34  ;;  %v1898_v38 = vld [vmem:[%s4021_s0 + $0x16d] ss:$-44 sm:%s844_s28]   ;;  %s1052_s28 = smov 48  ;;  %s1280_s30 = smov 48 }
  0x3a   :  { %v834_v39 = vsel %vm721_vm6, %v1895_v31, %v830_v36  ;;  %v847_v40 = vsel %vm299_vm2, %v1898_v38, %v842_v37  ;;  %v1899_v41 = vld [vmem:[%s4021_s0 - $0x4b] ss:$38 sm:%s849_s4]   ;;  %s935_s4 = smov 12  ;;  %s1396_s21 = smov 48 }
  0x3b   :  { %v1939_v42 = vld [vmem:[%s4021_s0 + $0xc5] ss:$46 sm:%s988_s5]   ;;  %v852_v43 = vsel %vm304_vm3, %v1899_v41, %v847_v40  ;;  %s1062_s5 = smov 3 }
  0x3c   :  { %v1940_v44 = vld [vmem:[%s4021_s0 + $0x55] ss:$38 sm:%s991_s10]   ;;  %v854_v46 = vsel %vm4_vm0, %v852_v43, %v834_v39  ;;  %s1169_s10 = smov 192 }
  0x3d   :  { %v994_v47 = vsel %vm294_vm1, %v1940_v44, %v1939_v42  ;;  %v1942_v48 = vld [vmem:[%s4021_s0 - $0x13] ss:$38 sm:%s1001_s14]   ;;  %855 = vrot.lane.b32.xlu0 %v854_v46, %s2113_s24  ;;  %s953_s14 = smov 12 }
  0x3e   :  { %v1943_v49 = vld [vmem:[%s4021_s0 + $0x133] ss:$46 sm:%s1006_s15]   ;;  %v999_v50 = vsel %vm299_vm2, %v1941_v45, %v994_v47  ;;  %v1946_v55 = vld [vmem:[%s4021_s0 + $0x23] ss:$46 sm:%s1019_s27]   ;;  %s1198_s27 = smov 192  ;;  %s1243_s15 = smov 3 }
  0x3f   :  { %v1944_v51 = vld [vmem:[%s4021_s0 + $0x1d1] ss:$-52 sm:%s1009_s20]   ;;  %v1004_v52 = vsel %vm304_vm3, %v1942_v48, %v999_v50  ;;  %v1945_v54 = vld [vmem:[%s4021_s0 + $0x143] ss:$8 sm:%s1014_s26]   ;;  %s1100_s26 = smov 3  ;;  %s1314_s20 = smov 192 }
  0x40   :  { %v1012_v53 = vsel %vm294_vm1, %v1944_v51, %v1943_v49  ;;  %v1924_v57 = vld [vmem:[%s4021_s0 + $0x45] ss:$46 sm:%s932_s3]   ;;  %s1108_s3 = smov 48 }
  0x41   :  { %v1017_v56 = vsel %vm299_vm2, %v1945_v54, %v1012_v53  ;;  %v1925_v58 = vld [vmem:[%s4021_s0 - $0x2b] ss:$38 sm:%s935_s4]   ;;  %s1159_s4 = smov 12 }
  0x42   :  { %v1022_v59 = vsel %vm304_vm3, %v1946_v55, %v1017_v56  ;;  %v938_v60 = vsel %vm294_vm1, %v1925_v58, %v1924_v57  ;;  %v1926_v61 = vld [vmem:[%s4021_s0 + $0x1bd] ss:$-82 sm:%s940_s7]   ;;  %v1928_v1 = vld [vmem:[%s4021_s0 + $0x10d] ss:$46 sm:%s950_s13]   ;;  %s1118_s7 = smov 3  ;;  %s1562_s13 = smov 3 }
  0x43   :  { %v1927_v62 = vld [vmem:[%s4021_s0 - $0x93] ss:$38 sm:%s945_s8]   ;;  %v1024_v63 = vsel %vm4_vm0, %v1022_v59, %v1004_v52  ;;  %v943_v0 = vsel %vm299_vm2, %v1926_v61, %v938_v60  ;;  %s1488_s8 = smov 192 }
  0x44   :  { %v1929_v2 = vld [vmem:[%s4021_s0 + $0xf7] ss:$8 sm:%s953_s14]   ;;  %1025 = vrot.lane.b32.xlu1 %v1024_v63, %s2113_s24  ;;  %v948_v3 = vsel %vm304_vm3, %v1927_v62, %v943_v0  ;;  %s1304_s14 = smov 12 }
  0x45   :  { %v956_v4 = vsel %vm294_vm1, %v1929_v2, %v1928_v1  ;;  %v1930_v5 = vld [vmem:[%s4021_s0 + $0x1ed] ss:$-44 sm:%s958_s19]   ;;  %v1975_v20 = vld [vmem:[%s4021_s0 + $0x1c3] ss:$8 sm:%s1126_s17]   ;;  %s1185_s17 = smov 3  ;;  %s1251_s19 = smov 48 }
  0x46   :  { %v961_v6 = vsel %vm299_vm2, %v1930_v5, %v956_v4  ;;  %v1931_v7 = vld [vmem:[%s4021_s0 + $0x35] ss:$38 sm:%s963_s25]   ;;  %s1047_s25 = smov 12 }
  0x47   :  { %v1969_v8 = vld [vmem:[%s4021_s0 + $0x1c5] ss:$46 sm:%s1100_s26]   ;;  %v966_v9 = vsel %vm304_vm3, %v1931_v7, %v961_v6  ;;  %s1338_s26 = smov 48 }
  0x48   :  { %v1970_v10 = vld [vmem:[%s4021_s0 + $0x155] ss:$38 sm:%s1103_s2]   ;;  %v968_v12 = vsel %vm4_vm0, %v966_v9, %v948_v3  ;;  %s1285_s2 = smov 192 }
  0x49   :  { %v1971_v11 = vld [vmem:[%s4021_s0 + $0x33d] ss:$-82 sm:%s1108_s3]   ;;  %v1106_v13 = vsel %vm294_vm1, %v1970_v10, %v1969_v8  ;;  %969 = vrot.lane.b32.xlu0 %v968_v12, %s2113_s24  ;;  %s1483_s3 = smov 48 }
  0x4a   :  { %v1972_v14 = vld [vmem:[%s4021_s0 + $0xed] ss:$38 sm:%s1113_s6]   ;;  %v1111_v16 = vsel %vm299_vm2, %v1971_v11, %v1106_v13  ;;  %s1065_s6 = smov 12 }
  0x4b   :  { %v1973_v15 = vld [vmem:[%s4021_s0 + $0x1b3] ss:$46 sm:%s1118_s7]   ;;  %v1116_v18 = vsel %vm304_vm3, %v1972_v14, %v1111_v16  ;;  %v1976_v21 = vld [vmem:[%s4021_s0 + $0xa3] ss:$46 sm:%s1131_s18]   ;;  %s1246_s18 = smov 12  ;;  %s1425_s7 = smov 48 }
  0x4c   :  { %v1974_v17 = vld [vmem:[%s4021_s0 + $0x251] ss:$-52 sm:%s1121_s12]   ;;  %v1959_v32 = vld [vmem:[%s4021_s0 + $0x177] ss:$8 sm:%s1065_s6]   ;;  %s1227_s6 = smov 192  ;;  %s1430_s12 = smov 192 }
  0x4d   :  { %v1124_v19 = vsel %vm294_vm1, %v1974_v17, %v1973_v15  ;;  %v1954_v23 = vld [vmem:[%s4021_s0 + $0x145] ss:$46 sm:%s1044_s23]   ;;  %s1193_s23 = smov 48 }
  0x4e   :  { %v1129_v22 = vsel %vm299_vm2, %v1975_v20, %v1124_v19  ;;  %v1955_v24 = vld [vmem:[%s4021_s0 + $0xd5] ss:$38 sm:%s1047_s25]   ;;  %s1256_s25 = smov 192 }
  0x4f   :  { %v1134_v25 = vsel %vm304_vm3, %v1976_v21, %v1129_v22  ;;  %v1050_v26 = vsel %vm294_vm1, %v1955_v24, %v1954_v23  ;;  %v1956_v27 = vld [vmem:[%s4021_s0 + $0x2bd] ss:$-82 sm:%s1052_s28]   ;;  %v1958_v31 = vld [vmem:[%s4021_s0 + $0x18d] ss:$46 sm:%s1062_s5]   ;;  %s1156_s28 = smov 3  ;;  %s1222_s5 = smov 48 }
  0x50   :  { %v1957_v28 = vld [vmem:[%s4021_s0 + $0x6d] ss:$38 sm:%s1057_s29]   ;;  %v1136_v29 = vsel %vm4_vm0, %v1134_v25, %v1116_v18  ;;  %v1055_v30 = vsel %vm299_vm2, %v1956_v27, %v1050_v26  ;;  %v1068_v34 = vsel %vm294_vm1, %v1959_v32, %v1958_v31  ;;  %s1217_s29 = smov 12 }
  0x51   :  { %1137 = vrot.lane.b32.xlu1 %v1136_v29, %s2113_s24  ;;  %v1060_v33 = vsel %vm304_vm3, %v1957_v28, %v1055_v30  ;;  %v1960_v35 = vld [vmem:[%s4021_s0 + $0x26d] ss:$-44 sm:%s1070_s11]   ;;  %s1367_s11 = smov 48 }
  0x52   :  { %v1073_v36 = vsel %vm299_vm2, %v1960_v35, %v1068_v34  ;;  %v1961_v37 = vld [vmem:[%s4021_s0 + $0xb5] ss:$38 sm:%s1075_s16]   ;;  %s1372_s16 = smov 192 }
  0x53   :  { %v1992_v38 = vld [vmem:[%s4021_s0 + $0x6d] ss:$-44 sm:%s1185_s17]   ;;  %v1078_v39 = vsel %vm304_vm3, %v1961_v37, %v1073_v36  ;;  %v1993_v40 = vld [vmem:[%s4021_s0 + $0x57] ss:$8 sm:%s1188_s22]   ;;  %s1401_s22 = smov 192  ;;  %s1454_s17 = smov 48 }
  0x54   :  { %v1994_v41 = vld [vmem:[%s4021_s0 - $0x75] ss:$46 sm:%s1193_s23]   ;;  %v1080_v42 = vsel %vm4_vm0, %v1078_v39, %v1060_v33  ;;  %v1191_v43 = vsel %vm294_vm1, %v1993_v40, %v1992_v38  ;;  %s1272_s23 = smov 3 }
  0x55   :  { %v1995_v44 = vld [vmem:[%s4021_s0 + $0x1b1] ss:$-52 sm:%s1198_s27]   ;;  %v1984_v45 = vld [vmem:[%s4021_s0 + $0x13] ss:$8 sm:%s1156_s28]   ;;  %v1196_v46 = vsel %vm299_vm2, %v1994_v41, %v1191_v43  ;;  %s1214_s28 = smov 3  ;;  %s1343_s27 = smov 192 }
  0x56   :  { %1081 = vrot.lane.b32.xlu0 %v1080_v42, %s2113_s24  ;;  %v1985_v47 = vld [vmem:[%s4021_s0 + $0xb1] ss:$-52 sm:%s1159_s4]   ;;  %v1201_v48 = vsel %vm304_vm3, %v1995_v44, %v1196_v46  ;;  %s1594_s4 = smov 12 }
  0x57   :  { %v1162_v49 = vsel %vm294_vm1, %v1985_v47, %v1984_v45  ;;  %v1986_v50 = vld [vmem:[%s4021_s0 - $0x9b] ss:$46 sm:%s1164_s9]   ;;  %1202 = vrot.lane.b32.xlu1 %v1201_v48, %s2113_s24  ;;  %s1301_s9 = smov 3 }
  0x58   :  { %v1987_v51 = vld [vmem:[%s4021_s0 - $0x19] ss:$8 sm:%s1169_s10]   ;;  %v1167_v52 = vsel %vm299_vm2, %v1986_v50, %v1162_v49  ;;  %v2008_v53 = vld [vmem:[%s4021_s0 + $0xed] ss:$-44 sm:%s1243_s15]   ;;  %s1309_s15 = smov 48  ;;  %s1362_s10 = smov 12 }
  0x59   :  { %v1172_v54 = vsel %vm304_vm3, %v1987_v51, %v1167_v52  ;;  %v2009_v55 = vld [vmem:[%s4021_s0 + $0xd7] ss:$8 sm:%s1246_s18]   ;;  %v2011_v58 = vld [vmem:[%s4021_s0 + $0x231] ss:$-52 sm:%s1256_s25]   ;;  %s1275_s25 = smov 12  ;;  %s1459_s18 = smov 192 }
  0x5a   :  { %v2010_v56 = vld [vmem:[%s4021_s0 + $0xb] ss:$46 sm:%s1251_s19]   ;;  %1173 = vrot.lane.b32.xlu0 %v1172_v54, %s2113_s24  ;;  %v1249_v57 = vsel %vm294_vm1, %v2009_v55, %v2008_v53  ;;  %s1330_s19 = smov 3  ;;  %v1635_v51 = vld [vmem:[%s4021_s0 + $0x88] ss:$2 sm:$0xf]  }
  0x5b   :  { %v1254_v59 = vsel %vm299_vm2, %v2010_v56, %v1249_v57  ;;  %v2000_v60 = vld [vmem:[%s4021_s0 + $0x93] ss:$8 sm:%s1214_s28]   ;;  %v2001_v61 = vld [vmem:[%s4021_s0 + $0x131] ss:$-52 sm:%s1217_s29]   ;;  %s1536_s29 = smov 12 }
  0x5c   :  { %v1259_v62 = vsel %vm304_vm3, %v2011_v58, %v1254_v59  ;;  %v1220_v63 = vsel %vm294_vm1, %v2001_v61, %v2000_v60  ;;  %v2002_v0 = vld [vmem:[%s4021_s0 - $0x1b] ss:$46 sm:%s1222_s5]   ;;  %s1359_s5 = smov 3  ;;  %1636 = vst.msk [vmem:[%s4022_s1 + $0x61] ss:$3 sm:$0xf] %vm4_vm0, %v1635_v51  }
  0x5d   :  { %v2003_v1 = vld [vmem:[%s4021_s0 + $0x67] ss:$8 sm:%s1227_s6]   ;;  %1260 = vrot.lane.b32.xlu1 %v1259_v62, %s2113_s24  ;;  %v1225_v2 = vsel %vm299_vm2, %v2002_v0, %v1220_v63  ;;  %s1420_s6 = smov 12  ;;  %v1619_v61 = vld [vmem:[%s4021_s0 + $0x8] ss:$2 sm:$0xf]  }
  0x5e   :  { %v2024_v3 = vld [vmem:[%s4021_s0 + $0x16d] ss:$-44 sm:%s1301_s9]   ;;  %v1230_v4 = vsel %vm304_vm3, %v2003_v1, %v1225_v2  ;;  %v2025_v5 = vld [vmem:[%s4021_s0 + $0x157] ss:$8 sm:%s1304_s14]   ;;  %s1504_s9 = smov 3 }
  0x5f   :  { %v2026_v6 = vld [vmem:[%s4021_s0 + $0x8b] ss:$46 sm:%s1309_s15]   ;;  %1231 = vrot.lane.b32.xlu0 %v1230_v4, %s2113_s24  ;;  %v1307_v7 = vsel %vm294_vm1, %v2025_v5, %v2024_v3  ;;  %s1388_s15 = smov 3  ;;  %1620 = vst.msk [vmem:[%s4022_s1 + $0x1] ss:$3 sm:$0xf] %vm4_vm0, %v1619_v61  }
  0x60   :  { %v2027_v8 = vld [vmem:[%s4021_s0 + $0x2b1] ss:$-52 sm:%s1314_s20]   ;;  %v1312_v9 = vsel %vm299_vm2, %v2026_v6, %v1307_v7  ;;  %v2016_v10 = vld [vmem:[%s4021_s0 + $0x113] ss:$8 sm:%s1272_s23]   ;;  %s1333_s20 = smov 12  ;;  %s1570_s23 = smov 48 }
  0x61   :  { %v2017_v11 = vld [vmem:[%s4021_s0 + $0x1b1] ss:$-52 sm:%s1275_s25]   ;;  %v1317_v12 = vsel %vm304_vm3, %v2027_v8, %v1312_v9  ;;  %v2019_v15 = vld [vmem:[%s4021_s0 + $0xe7] ss:$8 sm:%s1285_s2]   ;;  %s1478_s2 = smov 12  ;;  %s1575_s25 = smov 192 }
  0x62   :  { %v1278_v13 = vsel %vm294_vm1, %v2017_v11, %v2016_v10  ;;  %v2018_v14 = vld [vmem:[%s4021_s0 + $0x65] ss:$46 sm:%s1280_s30]   ;;  %1318 = vrot.lane.b32.xlu1 %v1317_v12, %s2113_s24  ;;  %s1417_s30 = smov 3  ;;  %v1639_v3 = vld [vmem:[%s4021_s0 + $0xa8] ss:$2 sm:$0xf]  }
  0x63   :  { %v1283_v16 = vsel %vm299_vm2, %v2018_v14, %v1278_v13  ;;  %v2040_v17 = vld [vmem:[%s4021_s0 + $0x1ed] ss:$-44 sm:%s1359_s5]   ;;  %v2041_v19 = vld [vmem:[%s4021_s0 + $0x1d7] ss:$8 sm:%s1362_s10]   ;;  %s1599_s5 = smov 48 }
  0x64   :  { %v1288_v18 = vsel %vm304_vm3, %v2019_v15, %v1283_v16  ;;  %v2042_v20 = vld [vmem:[%s4021_s0 + $0x10b] ss:$46 sm:%s1367_s11]   ;;  %v1365_v21 = vsel %vm294_vm1, %v2041_v19, %v2040_v17  ;;  %s1446_s11 = smov 3  ;;  %1640 = vst.msk [vmem:[%s4022_s1 + $0x79] ss:$3 sm:$0xf] %vm4_vm0, %v1639_v3  }
  0x65   :  { %1289 = vrot.lane.b32.xlu0 %v1288_v18, %s2113_s24  ;;  %v2043_v22 = vld [vmem:[%s4021_s0 + $0x331] ss:$-52 sm:%s1372_s16]   ;;  %v1370_v23 = vsel %vm299_vm2, %v2042_v20, %v1365_v21  ;;  %s1391_s16 = smov 12  ;;  %v1641_v13 = vld [vmem:[%s4021_s0 + $0xb8] ss:$2 sm:$0xf]  }
  0x66   :  { %v2032_v24 = vld [vmem:[%s4021_s0 + $0x193] ss:$8 sm:%s1330_s19]   ;;  %v2033_v25 = vld [vmem:[%s4021_s0 + $0x231] ss:$-52 sm:%s1333_s20]   ;;  %v1375_v26 = vsel %vm304_vm3, %v2043_v22, %v1370_v23  ;;  %s1512_s19 = smov 48  ;;  %s1517_s20 = smov 192 }
  0x67   :  { %v1336_v27 = vsel %vm294_vm1, %v2033_v25, %v2032_v24  ;;  %v2034_v28 = vld [vmem:[%s4021_s0 + $0xe5] ss:$46 sm:%s1338_s26]   ;;  %1376 = vrot.lane.b32.xlu1 %v1375_v26, %s2113_s24  ;;  %s1475_s26 = smov 3  ;;  %1642 = vst.msk [vmem:[%s4022_s1 + $0x85] ss:$3 sm:$0xf] %vm4_vm0, %v1641_v13  }
  0x68   :  { %v2035_v29 = vld [vmem:[%s4021_s0 + $0x167] ss:$8 sm:%s1343_s27]   ;;  %v1341_v30 = vsel %vm299_vm2, %v2034_v28, %v1336_v27  ;;  %v2056_v31 = vld [vmem:[%s4021_s0 + $0x73] ss:$8 sm:%s1417_s30]   ;;  %s1541_s30 = smov 48 }
  0x69   :  { %v1346_v32 = vsel %vm304_vm3, %v2035_v29, %v1341_v30  ;;  %v2057_v33 = vld [vmem:[%s4021_s0 - $0x15] ss:$46 sm:%s1420_s6]   ;;  %v1645_v19 = vld [vmem:[%s4021_s0 + $0xd8] ss:$2 sm:$0xf]  }
  0x6a   :  { %v2058_v34 = vld [vmem:[%s4021_s0 + $0x12d] ss:$-44 sm:%s1425_s7]   ;;  %1347 = vrot.lane.b32.xlu0 %v1346_v32, %s2113_s24  ;;  %v1423_v35 = vsel %vm294_vm1, %v2057_v33, %v2056_v31  ;;  %1646 = vst.msk [vmem:[%s4022_s1 + $0x9d] ss:$3 sm:$0xf] %vm4_vm0, %v1645_v19  }
  0x6b   :  { %v2059_v36 = vld [vmem:[%s4021_s0 + $0x47] ss:$8 sm:%s1430_s12]   ;;  %v1428_v37 = vsel %vm299_vm2, %v2058_v34, %v1423_v35  ;;  %v2048_v38 = vld [vmem:[%s4021_s0 + $0x4d] ss:$-44 sm:%s1388_s15]   ;;  %s1449_s12 = smov 12 }
  0x6c   :  { %v2049_v39 = vld [vmem:[%s4021_s0 - $0x23] ss:$38 sm:%s1391_s16]   ;;  %v1433_v40 = vsel %vm304_vm3, %v2059_v36, %v1428_v37  ;;  %s1565_s16 = smov 12  ;;  %v1623_v28 = vld [vmem:[%s4021_s0 + $0x28] ss:$2 sm:$0xf]  }
  0x6d   :  { %v1394_v41 = vsel %vm294_vm1, %v2049_v39, %v2048_v38  ;;  %v2050_v42 = vld [vmem:[%s4021_s0 + $0x3] ss:$8 sm:%s1396_s21]   ;;  %v2051_v43 = vld [vmem:[%s4021_s0 + $0x191] ss:$-52 sm:%s1401_s22]   ;;  %s1533_s21 = smov 3 }
  0x6e   :  { %1434 = vrot.lane.b32.xlu1 %v1433_v40, %s2113_s24  ;;  %v1399_v44 = vsel %vm299_vm2, %v2050_v42, %v1394_v41  ;;  %v2072_v45 = vld [vmem:[%s4021_s0 + $0xf3] ss:$8 sm:%s1475_s26]   ;;  %s1591_s26 = smov 3  ;;  %v1625_v29 = vld [vmem:[%s4021_s0 + $0x38] ss:$2 sm:$0xf]  }
  0x6f   :  { %v1404_v46 = vsel %vm304_vm3, %v2051_v43, %v1399_v44  ;;  %v2073_v47 = vld [vmem:[%s4021_s0 + $0x6b] ss:$46 sm:%s1478_s2]   ;;  %1624 = vst.msk [vmem:[%s4022_s1 + $0x19] ss:$3 sm:$0xf] %vm4_vm0, %v1623_v28  }
  0x70   :  { %v2074_v48 = vld [vmem:[%s4021_s0 + $0x1ad] ss:$-44 sm:%s1483_s3]   ;;  %1405 = vrot.lane.b32.xlu0 %v1404_v46, %s2113_s24  ;;  %v1481_v49 = vsel %vm294_vm1, %v2073_v47, %v2072_v45  ;;  %1626 = vst.msk [vmem:[%s4022_s1 + $0x25] ss:$3 sm:$0xf] %vm4_vm0, %v1625_v29  }
  0x71   :  { %v2075_v50 = vld [vmem:[%s4021_s0 + $0xc7] ss:$8 sm:%s1488_s8]   ;;  %v1486_v52 = vsel %vm299_vm2, %v2074_v48, %v1481_v49  ;;  %v2064_v53 = vld [vmem:[%s4021_s0 + $0xcd] ss:$-44 sm:%s1446_s11]   ;;  %s1546_s8 = smov 192 }
  0x72   :  { %v2065_v54 = vld [vmem:[%s4021_s0 + $0x5d] ss:$38 sm:%s1449_s12]   ;;  %v1491_v55 = vsel %vm304_vm3, %v2075_v50, %v1486_v52  ;;  %s1507_s12 = smov 12  ;;  %v1629_v31 = vld [vmem:[%s4021_s0 + $0x58] ss:$2 sm:$0xf]  }
  0x73   :  { %v1452_v56 = vsel %vm294_vm1, %v2065_v54, %v2064_v53  ;;  %v2066_v57 = vld [vmem:[%s4021_s0 + $0x83] ss:$8 sm:%s1454_s17]   ;;  %v2067_v58 = vld [vmem:[%s4021_s0 + $0x211] ss:$-52 sm:%s1459_s18]  }
  0x74   :  { %1492 = vrot.lane.b32.xlu1 %v1491_v55, %s2113_s24  ;;  %v1457_v59 = vsel %vm299_vm2, %v2066_v57, %v1452_v56  ;;  %v2088_v60 = vld [vmem:[%s4021_s0 + $0x173] ss:$8 sm:%s1533_s21]   ;;  %v1655_v32 = vld [vmem:[%s4021_s0 + $0x128] ss:$2 sm:$0xf]  }
  0x75   :  { %v1462_v62 = vsel %vm304_vm3, %v2067_v58, %v1457_v59  ;;  %v2089_v63 = vld [vmem:[%s4021_s0 + $0xeb] ss:$46 sm:%s1536_s29]   ;;  %1630 = vst.msk [vmem:[%s4022_s1 + $0x3d] ss:$3 sm:$0xf] %vm4_vm0, %v1629_v31  }
  0x76   :  { %v2090_v0 = vld [vmem:[%s4021_s0 + $0x22d] ss:$-44 sm:%s1541_s30]   ;;  %1463 = vrot.lane.b32.xlu0 %v1462_v62, %s2113_s24  ;;  %v1539_v1 = vsel %vm294_vm1, %v2089_v63, %v2088_v60  ;;  %1656 = vst.msk [vmem:[%s4022_s1 + $0xd9] ss:$3 sm:$0xf] %vm4_vm0, %v1655_v32  }
  0x77   :  { %v2091_v2 = vld [vmem:[%s4021_s0 + $0x147] ss:$8 sm:%s1546_s8]   ;;  %v1544_v4 = vsel %vm299_vm2, %v2090_v0, %v1539_v1  ;;  %v2080_v5 = vld [vmem:[%s4021_s0 + $0x14d] ss:$-44 sm:%s1504_s9]  }
  0x78   :  { %v2081_v6 = vld [vmem:[%s4021_s0 + $0xdd] ss:$38 sm:%s1507_s12]   ;;  %v1549_v7 = vsel %vm304_vm3, %v2091_v2, %v1544_v4  ;;  %s1604_s12 = smov 192  ;;  %v1657_v33 = vld [vmem:[%s4021_s0 + $0x138] ss:$2 sm:$0xf]  }
  0x79   :  { %v1510_v8 = vsel %vm294_vm1, %v2081_v6, %v2080_v5  ;;  %v2082_v9 = vld [vmem:[%s4021_s0 + $0x103] ss:$8 sm:%s1512_s19]   ;;  %v2083_v10 = vld [vmem:[%s4021_s0 + $0x291] ss:$-52 sm:%s1517_s20]  }
  0x7a   :  { %1550 = vrot.lane.b32.xlu1 %v1549_v7, %s2113_s24  ;;  %v1515_v11 = vsel %vm299_vm2, %v2082_v9, %v1510_v8  ;;  %v2104_v12 = vld [vmem:[%s4021_s0 + $0x1f3] ss:$8 sm:%s1591_s26]   ;;  %v1661_v34 = vld [vmem:[%s4021_s0 + $0x158] ss:$2 sm:$0xf]  }
  0x7b   :  { %v1520_v14 = vsel %vm304_vm3, %v2083_v10, %v1515_v11  ;;  %v2105_v15 = vld [vmem:[%s4021_s0 + $0x16b] ss:$46 sm:%s1594_s4]   ;;  %1658 = vst.msk [vmem:[%s4022_s1 + $0xe5] ss:$3 sm:$0xf] %vm4_vm0, %v1657_v33  }
  0x7c   :  { %v2106_v16 = vld [vmem:[%s4021_s0 + $0x2ad] ss:$-44 sm:%s1599_s5]   ;;  %1521 = vrot.lane.b32.xlu0 %v1520_v14, %s2113_s24  ;;  %v1597_v17 = vsel %vm294_vm1, %v2105_v15, %v2104_v12  ;;  %1662 = vst.msk [vmem:[%s4022_s1 + $0xfd] ss:$3 sm:$0xf] %vm4_vm0, %v1661_v34  }
  0x7d   :  { %v2107_v18 = vld [vmem:[%s4021_s0 + $0x1c7] ss:$8 sm:%s1604_s12]   ;;  %v1602_v20 = vsel %vm299_vm2, %v2106_v16, %v1597_v17  ;;  %v2096_v21 = vld [vmem:[%s4021_s0 + $0x1cd] ss:$-44 sm:%s1562_s13]  }
  0x7e   :  { %v2097_v22 = vld [vmem:[%s4021_s0 + $0x15d] ss:$38 sm:%s1565_s16]   ;;  %v1607_v23 = vsel %vm304_vm3, %v2107_v18, %v1602_v20  ;;  %v1651_v35 = vld [vmem:[%s4021_s0 + $0x108] ss:$2 sm:$0xf]   ;;  %v3136_v63 = vpop.permute.xlu1 %437  }
  0x7f   :  { %v1568_v24 = vsel %vm294_vm1, %v2097_v22, %v2096_v21  ;;  %v2098_v25 = vld [vmem:[%s4021_s0 + $0x183] ss:$8 sm:%s1570_s23]   ;;  %v2099_v26 = vld [vmem:[%s4021_s0 + $0x311] ss:$-52 sm:%s1575_s25]  }
  0x80   :  { %1608 = vrot.lane.b32.xlu1 %v1607_v23, %s2113_s24  ;;  %v1573_v27 = vsel %vm299_vm2, %v2098_v25, %v1568_v24  ;;  %v1671_v36 = vld [vmem:[%s4021_s0 + $0x1a8] ss:$2 sm:$0xf]   ;;  %1652 = vst.msk [vmem:[%s4022_s1 + $0xc1] ss:$3 sm:$0xf] %vm4_vm0, %v1651_v35  }
  0x81   :  { %v1578_v30 = vsel %vm304_vm3, %v2099_v26, %v1573_v27  ;;  %1672 = vst.msk [vmem:[%s4022_s1 + $0x139] ss:$3 sm:$0xf] %vm4_vm0, %v1671_v36   ;;  %v1673_v37 = vld [vmem:[%s4021_s0 + $0x1b8] ss:$2 sm:$0xf]  }
  0x82   :  { %1579 = vrot.lane.b32.xlu0 %v1578_v30, %s2113_s24  ;;  %v1677_v38 = vld [vmem:[%s4021_s0 + $0x1d8] ss:$2 sm:$0xf]   ;;  %1674 = vst.msk [vmem:[%s4022_s1 + $0x145] ss:$3 sm:$0xf] %vm4_vm0, %v1673_v37   ;;  %v327_v8 = vpop.permute.xlu0 %326  }
  0x83   :  { %1678 = vst.msk [vmem:[%s4022_s1 + $0x15d] ss:$3 sm:$0xf] %vm4_vm0, %v1677_v38   ;;  %v1667_v39 = vld [vmem:[%s4021_s0 + $0x188] ss:$2 sm:$0xf]  }
  0x84   :  { %v1663_v40 = vld [vmem:[%s4021_s0 + $0x168] ss:$2 sm:$0xf]   ;;  %1668 = vst.msk [vmem:[%s4022_s1 + $0x121] ss:$3 sm:$0xf] %vm4_vm0, %v1667_v39  }
  0x85   :  { %1664 = vst.msk [vmem:[%s4022_s1 + $0x109] ss:$3 sm:$0xf] %vm4_vm0, %v1663_v40   ;;  %v1653_v41 = vld [vmem:[%s4021_s0 + $0x118] ss:$2 sm:$0xf]  }
  0x86   :  { %v1679_v42 = vld [vmem:[%s4021_s0 + $0x1e8] ss:$2 sm:$0xf]   ;;  %1654 = vst.msk [vmem:[%s4022_s1 + $0xcd] ss:$3 sm:$0xf] %vm4_vm0, %v1653_v41  }
  0x87   :  { %1680 = vst.msk [vmem:[%s4022_s1 + $0x169] ss:$3 sm:$0xf] %vm4_vm0, %v1679_v42   ;;  %v1669_v43 = vld [vmem:[%s4021_s0 + $0x198] ss:$2 sm:$0xf]  }
  0x88   :  { %v1627_v44 = vld [vmem:[%s4021_s0 + $0x48] ss:$2 sm:$0xf]   ;;  %1670 = vst.msk [vmem:[%s4022_s1 + $0x12d] ss:$3 sm:$0xf] %vm4_vm0, %v1669_v43  }
  0x89   :  { %1628 = vst.msk [vmem:[%s4022_s1 + $0x31] ss:$3 sm:$0xf] %vm4_vm0, %v1627_v44   ;;  %v1631_v45 = vld [vmem:[%s4021_s0 + $0x68] ss:$2 sm:$0xf]   ;;  %v494_v17 = vpop.permute.xlu1 %493  }
  0x8a   :  { %v1633_v46 = vld [vmem:[%s4021_s0 + $0x78] ss:$2 sm:$0xf]   ;;  %1632 = vst.msk [vmem:[%s4022_s1 + $0x49] ss:$3 sm:$0xf] %vm4_vm0, %v1631_v45  }
  0x8b   :  { %1634 = vst.msk [vmem:[%s4022_s1 + $0x55] ss:$3 sm:$0xf] %vm4_vm0, %v1633_v46   ;;  %v1621_v47 = vld [vmem:[%s4021_s0 + $0x18] ss:$2 sm:$0xf]  }
  0x8c   :  { %v1643_v48 = vld [vmem:[%s4021_s0 + $0xc8] ss:$2 sm:$0xf]   ;;  %1622 = vst.msk [vmem:[%s4022_s1 + $0xd] ss:$3 sm:$0xf] %vm4_vm0, %v1621_v47  }
  0x8d   :  { %1644 = vst.msk [vmem:[%s4022_s1 + $0x91] ss:$3 sm:$0xf] %vm4_vm0, %v1643_v48   ;;  %v1647_v49 = vld [vmem:[%s4021_s0 + $0xe8] ss:$2 sm:$0xf]  }
  0x8e   :  { %v1649_v50 = vld [vmem:[%s4021_s0 + $0xf8] ss:$2 sm:$0xf]   ;;  %1648 = vst.msk [vmem:[%s4022_s1 + $0xa9] ss:$3 sm:$0xf] %vm4_vm0, %v1647_v49  }
  0x8f   :  { %1650 = vst.msk [vmem:[%s4022_s1 + $0xb5] ss:$3 sm:$0xf] %vm4_vm0, %v1649_v50   ;;  %v1637_v51 = vld [vmem:[%s4021_s0 + $0x98] ss:$2 sm:$0xf]   ;;  %v382_v27 = vpop.permute.xlu0 %381  }
  0x90   :  { %v1659_v52 = vld [vmem:[%s4021_s0 + $0x148] ss:$2 sm:$0xf]   ;;  %1638 = vst.msk [vmem:[%s4022_s1 + $0x6d] ss:$3 sm:$0xf] %vm4_vm0, %v1637_v51  }
  0x91   :  { %1660 = vst.msk [vmem:[%s4022_s1 + $0xf1] ss:$3 sm:$0xf] %vm4_vm0, %v1659_v52   ;;  %v1665_v53 = vld [vmem:[%s4021_s0 + $0x178] ss:$2 sm:$0xf]  }
  0x92   :  { %v1675_v54 = vld [vmem:[%s4021_s0 + $0x1c8] ss:$2 sm:$0xf]   ;;  %1666 = vst.msk [vmem:[%s4022_s1 + $0x115] ss:$3 sm:$0xf] %vm4_vm0, %v1665_v53  }
  0x93   :  { %1676 = vst.msk [vmem:[%s4022_s1 + $0x151] ss:$3 sm:$0xf] %vm4_vm0, %v1675_v54   ;;  %v1681_v55 = vld [vmem:[%s4021_s0 + $0x1f8] ss:$2 sm:$0xf]   ;;  %v592_v28 = vpop.permute.xlu1 %591  }
  0x94   :  { %v162_v56 = vld [vmem:[%s4021_s0] ss:$2 sm:$0xf]   ;;  %1682 = vst.msk [vmem:[%s4022_s1 + $0x175] ss:$3 sm:$0xf] %vm4_vm0, %v1681_v55  }
  0x95   :  { %163 = vst [vmem:[%s4022_s1] ss:$3 sm:$0xf] %v162_v56   ;;  %v1683_v57 = vld [vmem:[%s4021_s0 + $0x10] ss:$2 sm:$0xf]  }
  0x96   :  { %v1685_v58 = vld [vmem:[%s4021_s0 + $0x20] ss:$2 sm:$0xf]   ;;  %1684 = vst [vmem:[%s4022_s1 + $0xc] ss:$3 sm:$0xf] %v1683_v57   ;;  %v543_v29 = vpop.permute.xlu0 %542  }
  0x97   :  { %1686 = vst [vmem:[%s4022_s1 + $0x18] ss:$3 sm:$0xf] %v1685_v58   ;;  %v1687_v59 = vld [vmem:[%s4021_s0 + $0x30] ss:$2 sm:$0xf]  }
  0x98   :  { %v1689_v60 = vld [vmem:[%s4021_s0 + $0x40] ss:$2 sm:$0xf]   ;;  %1688 = vst [vmem:[%s4022_s1 + $0x24] ss:$3 sm:$0xf] %v1687_v59  }
  0x99   :  { %1690 = vst [vmem:[%s4022_s1 + $0x30] ss:$3 sm:$0xf] %v1689_v60   ;;  %v1691_v61 = vld [vmem:[%s4021_s0 + $0x50] ss:$2 sm:$0xf]   ;;  %v690_v30 = vpop.permute.xlu1 %689  }
  0x9a   :  { %v1693_v62 = vld [vmem:[%s4021_s0 + $0x60] ss:$2 sm:$0xf]   ;;  %1692 = vst [vmem:[%s4022_s1 + $0x3c] ss:$3 sm:$0xf] %v1691_v61  }
  0x9b   :  { %1694 = vst [vmem:[%s4022_s1 + $0x48] ss:$3 sm:$0xf] %v1693_v62   ;;  %v1695_v0 = vld [vmem:[%s4021_s0 + $0x70] ss:$2 sm:$0xf]  }
  0x9c   :  { %v1697_v1 = vld [vmem:[%s4021_s0 + $0x80] ss:$2 sm:$0xf]   ;;  %1782 = vst.msk [vmem:[%s4022_s1 + $0xe0] ss:$33 sm:$0x3] %vm4_vm0, %v3136_v63  }
  0x9d   :  { %1783 = vst.msk [vmem:[%s4022_s1 + $0x80] ss:$33 sm:$0x1c] %vm4_vm0, %v3136_v63   ;;  %1784 = vst.msk [vmem:[%s4022_s1 + $0x20] ss:$33 sm:$0xe0] %vm4_vm0, %v3136_v63  }
  0x9e   :  { %1696 = vst [vmem:[%s4022_s1 + $0x54] ss:$3 sm:$0xf] %v1695_v0   ;;  %1698 = vst [vmem:[%s4022_s1 + $0x60] ss:$3 sm:$0xf] %v1697_v1   ;;  %v641_v31 = vpop.permute.xlu0 %640  }
  0x9f   :  { %v1699_v2 = vld [vmem:[%s4021_s0 + $0x90] ss:$2 sm:$0xf]   ;;  %v1701_v3 = vld [vmem:[%s4021_s0 + $0xa0] ss:$2 sm:$0xf]  }
  0xa0   :  { %1700 = vst [vmem:[%s4022_s1 + $0x6c] ss:$3 sm:$0xf] %v1699_v2   ;;  %1702 = vst [vmem:[%s4022_s1 + $0x78] ss:$3 sm:$0xf] %v1701_v3  }
  0xa1   :  { %v1703_v4 = vld [vmem:[%s4021_s0 + $0xb0] ss:$2 sm:$0xf]   ;;  %v1705_v5 = vld [vmem:[%s4021_s0 + $0xc0] ss:$2 sm:$0xf]  }
  0xa2   :  { %1704 = vst [vmem:[%s4022_s1 + $0x84] ss:$3 sm:$0xf] %v1703_v4   ;;  %1706 = vst [vmem:[%s4022_s1 + $0x90] ss:$3 sm:$0xf] %v1705_v5   ;;  %v800_v32 = vpop.permute.xlu1 %799  }
  0xa3   :  { %v1707_v6 = vld [vmem:[%s4021_s0 + $0xd0] ss:$2 sm:$0xf]   ;;  %v1709_v7 = vld [vmem:[%s4021_s0 + $0xe0] ss:$2 sm:$0xf]  }
  0xa4   :  { %1708 = vst [vmem:[%s4022_s1 + $0x9c] ss:$3 sm:$0xf] %v1707_v6   ;;  %1710 = vst [vmem:[%s4022_s1 + $0xa8] ss:$3 sm:$0xf] %v1709_v7  }
  0xa5   :  { %v1711_v9 = vld [vmem:[%s4021_s0 + $0xf0] ss:$2 sm:$0xf]   ;;  %v1713_v10 = vld [vmem:[%s4021_s0 + $0x100] ss:$2 sm:$0xf]  }
  0xa6   :  { %1753 = vst.msk [vmem:[%s4022_s1 + $0x20] ss:$33 sm:$0x3] %vm4_vm0, %v327_v8   ;;  %1754 = vst.msk [vmem:[%s4022_s1 - $0x40] ss:$33 sm:$0x1c] %vm4_vm0, %v327_v8   ;;  %v744_v33 = vpop.permute.xlu0 %743  }
  0xa7   :  { %1755 = vst.msk [vmem:[%s4022_s1 - $0xa0] ss:$33 sm:$0xe0] %vm4_vm0, %v327_v8   ;;  %1712 = vst [vmem:[%s4022_s1 + $0xb4] ss:$3 sm:$0xf] %v1711_v9  }
  0xa8   :  { %1714 = vst [vmem:[%s4022_s1 + $0xc0] ss:$3 sm:$0xf] %v1713_v10   ;;  %v1715_v11 = vld [vmem:[%s4021_s0 + $0x110] ss:$2 sm:$0xf]  }
  0xa9   :  { %v1717_v12 = vld [vmem:[%s4021_s0 + $0x120] ss:$2 sm:$0xf]   ;;  %1756 = vst.msk [vmem:[%s4022_s1 + $0x20] ss:$-31 sm:$0x3] %vm335_vm7, %v327_v8  }
  0xaa   :  { %1757 = vst.msk [vmem:[%s4022_s1 - $0x40] ss:$33 sm:$0xc] %vm335_vm7, %v327_v8   ;;  %340 = vst.msk [vmem:[%s4022_s1] sm:$0x30] %vm335_vm7, %v327_v8  }
  0xab   :  { %1758 = vst.msk [vmem:[%s4022_s1 + $0xe0] ss:$-31 sm:$0xc0] %vm335_vm7, %v327_v8   ;;  %1716 = vst [vmem:[%s4022_s1 + $0xcc] ss:$3 sm:$0xf] %v1715_v11   ;;  %v912_v34 = vpop.permute.xlu1 %911  }
  0xac   :  { %1718 = vst [vmem:[%s4022_s1 + $0xd8] ss:$3 sm:$0xf] %v1717_v12   ;;  %v1719_v13 = vld [vmem:[%s4021_s0 + $0x130] ss:$2 sm:$0xf]  }
  0xad   :  { %v1721_v14 = vld [vmem:[%s4021_s0 + $0x140] ss:$2 sm:$0xf]   ;;  %1720 = vst [vmem:[%s4022_s1 + $0xe4] ss:$3 sm:$0xf] %v1719_v13  }
  0xae   :  { %1722 = vst [vmem:[%s4022_s1 + $0xf0] ss:$3 sm:$0xf] %v1721_v14   ;;  %v1723_v15 = vld [vmem:[%s4021_s0 + $0x150] ss:$2 sm:$0xf]  }
  0xaf   :  { %v1725_v16 = vld [vmem:[%s4021_s0 + $0x160] ss:$2 sm:$0xf]   ;;  %1724 = vst [vmem:[%s4022_s1 + $0xfc] ss:$3 sm:$0xf] %v1723_v15   ;;  %v856_v35 = vpop.permute.xlu0 %855  }
  0xb0   :  { %1726 = vst [vmem:[%s4022_s1 + $0x108] ss:$3 sm:$0xf] %v1725_v16   ;;  %v1727_v18 = vld [vmem:[%s4021_s0 + $0x170] ss:$2 sm:$0xf]  }
  0xb1   :  { %v1729_v19 = vld [vmem:[%s4021_s0 + $0x180] ss:$2 sm:$0xf]   ;;  %1797 = vst.msk [vmem:[%s4022_s1 + $0x140] ss:$33 sm:$0x3] %vm4_vm0, %v494_v17  }
  0xb2   :  { %1798 = vst.msk [vmem:[%s4022_s1 + $0xe0] ss:$33 sm:$0x1c] %vm4_vm0, %v494_v17   ;;  %1799 = vst.msk [vmem:[%s4022_s1 + $0x80] ss:$33 sm:$0xe0] %vm4_vm0, %v494_v17  }
  0xb3   :  { %1801 = vst.msk [vmem:[%s4022_s1 + $0x40] ss:$33 sm:$0xc] %vm335_vm7, %v494_v17   ;;  %1728 = vst [vmem:[%s4022_s1 + $0x114] ss:$3 sm:$0xf] %v1727_v18  }
  0xb4   :  { %1730 = vst [vmem:[%s4022_s1 + $0x120] ss:$3 sm:$0xf] %v1729_v19   ;;  %v1731_v20 = vld [vmem:[%s4021_s0 + $0x190] ss:$2 sm:$0xf]  }
  0xb5   :  { %v1733_v21 = vld [vmem:[%s4021_s0 + $0x1a0] ss:$2 sm:$0xf]   ;;  %1732 = vst [vmem:[%s4022_s1 + $0x12c] ss:$3 sm:$0xf] %v1731_v20  }
  0xb6   :  { %1734 = vst [vmem:[%s4022_s1 + $0x138] ss:$3 sm:$0xf] %v1733_v21   ;;  %v1735_v22 = vld [vmem:[%s4021_s0 + $0x1b0] ss:$2 sm:$0xf]   ;;  %v1026_v36 = vpop.permute.xlu1 %1025  }
  0xb7   :  { %v1737_v23 = vld [vmem:[%s4021_s0 + $0x1c0] ss:$2 sm:$0xf]   ;;  %1736 = vst [vmem:[%s4022_s1 + $0x144] ss:$3 sm:$0xf] %v1735_v22  }
  0xb8   :  { %1738 = vst [vmem:[%s4022_s1 + $0x150] ss:$3 sm:$0xf] %v1737_v23   ;;  %v1739_v24 = vld [vmem:[%s4021_s0 + $0x1d0] ss:$2 sm:$0xf]  }
  0xb9   :  { %v1741_v25 = vld [vmem:[%s4021_s0 + $0x1e0] ss:$2 sm:$0xf]   ;;  %1740 = vst [vmem:[%s4022_s1 + $0x15c] ss:$3 sm:$0xf] %v1739_v24  }
  0xba   :  { %1742 = vst [vmem:[%s4022_s1 + $0x168] ss:$3 sm:$0xf] %v1741_v25   ;;  %v1743_v26 = vld [vmem:[%s4021_s0 + $0x1f0] ss:$2 sm:$0xf]  }
  0xbb   :  { %1744 = vst [vmem:[%s4022_s1 + $0x174] ss:$3 sm:$0xf] %v1743_v26   ;;  %1767 = vst.msk [vmem:[%s4022_s1 + $0x80] ss:$33 sm:$0x3] %vm4_vm0, %v382_v27   ;;  %v970_v37 = vpop.permute.xlu0 %969  }
  0xbc   :  { %1768 = vst.msk [vmem:[%s4022_s1 + $0x20] ss:$33 sm:$0x1c] %vm4_vm0, %v382_v27   ;;  %1769 = vst.msk [vmem:[%s4022_s1 - $0x40] ss:$33 sm:$0xe0] %vm4_vm0, %v382_v27  }
  0xbd   :  { %1770 = vst.msk [vmem:[%s4022_s1 + $0x40] sm:$0x3] %vm335_vm7, %v382_v27   ;;  %1771 = vst.msk [vmem:[%s4022_s1 - $0x20] ss:$33 sm:$0xc] %vm335_vm7, %v382_v27  }
  0xbe   :  { %1772 = vst.msk [vmem:[%s4022_s1 + $0xc0] ss:$-31 sm:$0x30] %vm335_vm7, %v382_v27   ;;  %1773 = vst.msk [vmem:[%s4022_s1 + $0x40] sm:$0xc0] %vm335_vm7, %v382_v27  }
  0xbf   :  { %1785 = vst.msk [vmem:[%s4022_s1 + $0x80] ss:$-31 sm:$0x3] %vm335_vm7, %v3136_v63   ;;  %1786 = vst.msk [vmem:[%s4022_s1 + $0x20] ss:$33 sm:$0xc] %vm335_vm7, %v3136_v63  }
  0xc0   :  { %1787 = vst.msk [vmem:[%s4022_s1 + $0x60] sm:$0x30] %vm335_vm7, %v3136_v63   ;;  %1788 = vst.msk [vmem:[%s4022_s1 + $0x140] ss:$-31 sm:$0xc0] %vm335_vm7, %v3136_v63  }
  0xc1   :  { %1800 = vst.msk [vmem:[%s4022_s1 + $0xa0] sm:$0x3] %vm335_vm7, %v494_v17   ;;  %1802 = vst.msk [vmem:[%s4022_s1 + $0x120] ss:$-31 sm:$0x30] %vm335_vm7, %v494_v17  }
  0xc2   :  { %1803 = vst.msk [vmem:[%s4022_s1 + $0xa0] sm:$0xc0] %vm335_vm7, %v494_v17   ;;  %1828 = vst.msk [vmem:[%s4022_s1 + $0x100] sm:$0x3] %vm335_vm7, %v592_v28  }
  0xc3   :  { %1825 = vst.msk [vmem:[%s4022_s1 + $0x68] ss:$33 sm:$0x7] %vm4_vm0, %v592_v28   ;;  %1826 = vst.msk [vmem:[%s4022_s1 + $0x8] ss:$33 sm:$0x38] %vm4_vm0, %v592_v28   ;;  %v1138_v38 = vpop.permute.xlu1 %1137  }
  0xc4   :  { %1827 = vst.msk [vmem:[%s4022_s1 - $0x58] ss:$33 sm:$0xc0] %vm4_vm0, %v592_v28   ;;  %1811 = vst.msk [vmem:[%s4022_s1 + $0x8] ss:$33 sm:$0x7] %vm4_vm0, %v543_v29  }
  0xc5   :  { %1829 = vst.msk [vmem:[%s4022_s1 + $0xa0] ss:$33 sm:$0xc] %vm335_vm7, %v592_v28   ;;  %1830 = vst.msk [vmem:[%s4022_s1 + $0x180] ss:$-31 sm:$0x30] %vm335_vm7, %v592_v28  }
  0xc6   :  { %1831 = vst.msk [vmem:[%s4022_s1 + $0x100] sm:$0xc0] %vm335_vm7, %v592_v28   ;;  %1814 = vst.msk [vmem:[%s4022_s1 + $0xe0] ss:$-31 sm:$0x3] %vm335_vm7, %v543_v29  }
  0xc7   :  { %1812 = vst.msk [vmem:[%s4022_s1 - $0x58] ss:$33 sm:$0x38] %vm4_vm0, %v543_v29   ;;  %1813 = vst.msk [vmem:[%s4022_s1 - $0xb8] ss:$33 sm:$0xc0] %vm4_vm0, %v543_v29  }
  0xc8   :  { %1815 = vst.msk [vmem:[%s4022_s1 + $0x80] ss:$33 sm:$0xc] %vm335_vm7, %v543_v29   ;;  %1816 = vst.msk [vmem:[%s4022_s1 + $0xc0] sm:$0x30] %vm335_vm7, %v543_v29   ;;  %v1082_v39 = vpop.permute.xlu0 %1081  }
  0xc9   :  { %1817 = vst.msk [vmem:[%s4022_s1 + $0x1a0] ss:$-31 sm:$0xc0] %vm335_vm7, %v543_v29   ;;  %1856 = vst.msk [vmem:[%s4022_s1 + $0x160] sm:$0x3] %vm335_vm7, %v690_v30   ;;  %v1203_v40 = vpop.permute.xlu1 %1202  }
  0xca   :  { %1853 = vst.msk [vmem:[%s4022_s1 + $0x128] ss:$33 sm:$0x7] %vm4_vm0, %v690_v30   ;;  %1854 = vst.msk [vmem:[%s4022_s1 + $0xc8] ss:$33 sm:$0x38] %vm4_vm0, %v690_v30  }
  0xcb   :  { %1855 = vst.msk [vmem:[%s4022_s1 + $0x68] ss:$33 sm:$0xc0] %vm4_vm0, %v690_v30   ;;  %1839 = vst.msk [vmem:[%s4022_s1 + $0xc8] ss:$33 sm:$0x7] %vm4_vm0, %v641_v31  }
  0xcc   :  { %1857 = vst.msk [vmem:[%s4022_s1 + $0x100] ss:$33 sm:$0xc] %vm335_vm7, %v690_v30   ;;  %1858 = vst.msk [vmem:[%s4022_s1 + $0x1e0] ss:$-31 sm:$0x30] %vm335_vm7, %v690_v30   ;;  %v1174_v41 = vpop.permute.xlu0 %1173  }
  0xcd   :  { %1859 = vst.msk [vmem:[%s4022_s1 + $0x160] sm:$0xc0] %vm335_vm7, %v690_v30   ;;  %1842 = vst.msk [vmem:[%s4022_s1 + $0x140] ss:$-31 sm:$0x3] %vm335_vm7, %v641_v31  }
  0xce   :  { %1840 = vst.msk [vmem:[%s4022_s1 + $0x68] ss:$33 sm:$0x38] %vm4_vm0, %v641_v31   ;;  %1841 = vst.msk [vmem:[%s4022_s1 + $0x8] ss:$33 sm:$0xc0] %vm4_vm0, %v641_v31  }
  0xcf   :  { %1843 = vst.msk [vmem:[%s4022_s1 + $0xe0] ss:$33 sm:$0xc] %vm335_vm7, %v641_v31   ;;  %1844 = vst.msk [vmem:[%s4022_s1 + $0x120] sm:$0x30] %vm335_vm7, %v641_v31   ;;  %v1261_v42 = vpop.permute.xlu1 %1260  }
  0xd0   :  { %1845 = vst.msk [vmem:[%s4022_s1 + $0x200] ss:$-31 sm:$0xc0] %vm335_vm7, %v641_v31   ;;  %1889 = vst.msk [vmem:[%s4022_s1 + $0x88] ss:$-31 sm:$0xc] %vm335_vm7, %v800_v32  }
  0xd1   :  { %1884 = vst.msk [vmem:[%s4022_s1 + $0xb0] ss:$-63 sm:$0x3] %vm4_vm0, %v800_v32   ;;  %1885 = vst.msk [vmem:[%s4022_s1 + $0x50] ss:$33 sm:$0xc] %vm4_vm0, %v800_v32   ;;  %v1232_v43 = vpop.permute.xlu0 %1231  }
  0xd2   :  { %1886 = vst.msk [vmem:[%s4022_s1 - $0x10] ss:$33 sm:$0x70] %vm4_vm0, %v800_v32   ;;  %1887 = vst.msk [vmem:[%s4022_s1 + $0x70] sm:$0x80] %vm4_vm0, %v800_v32  }
  0xd3   :  { %1888 = vst.msk [vmem:[%s4022_s1 + $0x28] ss:$33 sm:$0x3] %vm335_vm7, %v800_v32   ;;  %1890 = vst.msk [vmem:[%s4022_s1 + $0x48] sm:$0x30] %vm335_vm7, %v800_v32  }
  0xd4   :  { %1891 = vst.msk [vmem:[%s4022_s1 - $0x98] ss:$33 sm:$0xc0] %vm335_vm7, %v800_v32   ;;  %1873 = vst.msk [vmem:[%s4022_s1 + $0x8] sm:$0xc] %vm335_vm7, %v744_v33   ;;  %v1319_v44 = vpop.permute.xlu1 %1318  }
  0xd5   :  { %1868 = vst.msk [vmem:[%s4022_s1 + $0x50] ss:$-63 sm:$0x3] %vm4_vm0, %v744_v33   ;;  %1869 = vst.msk [vmem:[%s4022_s1 - $0x10] ss:$33 sm:$0xc] %vm4_vm0, %v744_v33  }
  0xd6   :  { %1870 = vst.msk [vmem:[%s4022_s1 - $0x70] ss:$33 sm:$0x70] %vm4_vm0, %v744_v33   ;;  %1871 = vst.msk [vmem:[%s4022_s1 + $0x10] sm:$0x80] %vm4_vm0, %v744_v33  }
  0xd7   :  { %1872 = vst.msk [vmem:[%s4022_s1 + $0x8] ss:$33 sm:$0x3] %vm335_vm7, %v744_v33   ;;  %1875 = vst.msk [vmem:[%s4022_s1 - $0xb8] ss:$33 sm:$0xc0] %vm335_vm7, %v744_v33   ;;  %v1290_v45 = vpop.permute.xlu0 %1289  }
  0xd8   :  { %1874 = vst.msk [vmem:[%s4022_s1 + $0xa8] ss:$-31 sm:$0x30] %vm335_vm7, %v744_v33   ;;  %1921 = vst.msk [vmem:[%s4022_s1 + $0xe8] ss:$-31 sm:$0xc] %vm335_vm7, %v912_v34  }
  0xd9   :  { %1916 = vst.msk [vmem:[%s4022_s1 + $0x170] ss:$-63 sm:$0x3] %vm4_vm0, %v912_v34   ;;  %1917 = vst.msk [vmem:[%s4022_s1 + $0x110] ss:$33 sm:$0xc] %vm4_vm0, %v912_v34   ;;  %v1377_v46 = vpop.permute.xlu1 %1376  }
  0xda   :  { %1918 = vst.msk [vmem:[%s4022_s1 + $0xb0] ss:$33 sm:$0x70] %vm4_vm0, %v912_v34   ;;  %1919 = vst.msk [vmem:[%s4022_s1 + $0x130] sm:$0x80] %vm4_vm0, %v912_v34  }
  0xdb   :  { %1920 = vst.msk [vmem:[%s4022_s1 + $0x88] ss:$33 sm:$0x3] %vm335_vm7, %v912_v34   ;;  %1922 = vst.msk [vmem:[%s4022_s1 + $0xa8] sm:$0x30] %vm335_vm7, %v912_v34  }
  0xdc   :  { %1923 = vst.msk [vmem:[%s4022_s1 - $0x38] ss:$33 sm:$0xc0] %vm335_vm7, %v912_v34   ;;  %1905 = vst.msk [vmem:[%s4022_s1 + $0x68] sm:$0xc] %vm335_vm7, %v856_v35   ;;  %v1348_v47 = vpop.permute.xlu0 %1347  }
  0xdd   :  { %1900 = vst.msk [vmem:[%s4022_s1 + $0x110] ss:$-63 sm:$0x3] %vm4_vm0, %v856_v35   ;;  %1901 = vst.msk [vmem:[%s4022_s1 + $0xb0] ss:$33 sm:$0xc] %vm4_vm0, %v856_v35  }
  0xde   :  { %1902 = vst.msk [vmem:[%s4022_s1 + $0x50] ss:$33 sm:$0x70] %vm4_vm0, %v856_v35   ;;  %1903 = vst.msk [vmem:[%s4022_s1 + $0xd0] sm:$0x80] %vm4_vm0, %v856_v35  }
  0xdf   :  { %1904 = vst.msk [vmem:[%s4022_s1 + $0x68] ss:$33 sm:$0x3] %vm335_vm7, %v856_v35   ;;  %1907 = vst.msk [vmem:[%s4022_s1 - $0x58] ss:$33 sm:$0xc0] %vm335_vm7, %v856_v35  }
  0xe0   :  { %1906 = vst.msk [vmem:[%s4022_s1 + $0x108] ss:$-31 sm:$0x30] %vm335_vm7, %v856_v35   ;;  %1950 = vst.msk [vmem:[%s4022_s1 + $0xe8] ss:$33 sm:$0x3] %vm335_vm7, %v1026_v36   ;;  %v1435_v48 = vpop.permute.xlu1 %1434  }
  0xe1   :  { %1951 = vst.msk [vmem:[%s4022_s1 + $0x148] ss:$-31 sm:$0xc] %vm335_vm7, %v1026_v36   ;;  %1952 = vst.msk [vmem:[%s4022_s1 + $0x108] sm:$0x30] %vm335_vm7, %v1026_v36  }
  0xe2   :  { %1953 = vst.msk [vmem:[%s4022_s1 + $0x28] ss:$33 sm:$0xc0] %vm335_vm7, %v1026_v36   ;;  %1935 = vst.msk [vmem:[%s4022_s1 + $0xc8] ss:$33 sm:$0x3] %vm335_vm7, %v970_v37   ;;  %v1406_v49 = vpop.permute.xlu0 %1405  }
  0xe3   :  { %1947 = vst.msk [vmem:[%s4022_s1 + $0x98] ss:$33 sm:$0x3] %vm4_vm0, %v1026_v36   ;;  %1948 = vst.msk [vmem:[%s4022_s1 + $0x38] ss:$33 sm:$0x1c] %vm4_vm0, %v1026_v36  }
  0xe4   :  { %1949 = vst.msk [vmem:[%s4022_s1 - $0x28] ss:$33 sm:$0xe0] %vm4_vm0, %v1026_v36   ;;  %1932 = vst.msk [vmem:[%s4022_s1 + $0x38] ss:$33 sm:$0x3] %vm4_vm0, %v970_v37  }
  0xe5   :  { %1936 = vst.msk [vmem:[%s4022_s1 + $0xc8] sm:$0xc] %vm335_vm7, %v970_v37   ;;  %1937 = vst.msk [vmem:[%s4022_s1 + $0x168] ss:$-31 sm:$0x30] %vm335_vm7, %v970_v37  }
  0xe6   :  { %1938 = vst.msk [vmem:[%s4022_s1 + $0x8] ss:$33 sm:$0xc0] %vm335_vm7, %v970_v37   ;;  %1980 = vst.msk [vmem:[%s4022_s1 + $0x148] ss:$33 sm:$0x3] %vm335_vm7, %v1138_v38   ;;  %v1493_v50 = vpop.permute.xlu1 %1492  }
  0xe7   :  { %1933 = vst.msk [vmem:[%s4022_s1 - $0x28] ss:$33 sm:$0x1c] %vm4_vm0, %v970_v37   ;;  %1934 = vst.msk [vmem:[%s4022_s1 - $0x88] ss:$33 sm:$0xe0] %vm4_vm0, %v970_v37  }
  0xe8   :  { %1981 = vst.msk [vmem:[%s4022_s1 + $0x1a8] ss:$-31 sm:$0xc] %vm335_vm7, %v1138_v38   ;;  %1982 = vst.msk [vmem:[%s4022_s1 + $0x168] sm:$0x30] %vm335_vm7, %v1138_v38   ;;  %v1464_v51 = vpop.permute.xlu0 %1463  }
  0xe9   :  { %1983 = vst.msk [vmem:[%s4022_s1 + $0x88] ss:$33 sm:$0xc0] %vm335_vm7, %v1138_v38   ;;  %1965 = vst.msk [vmem:[%s4022_s1 + $0x128] ss:$33 sm:$0x3] %vm335_vm7, %v1082_v39  }
  0xea   :  { %1977 = vst.msk [vmem:[%s4022_s1 + $0x158] ss:$33 sm:$0x3] %vm4_vm0, %v1138_v38   ;;  %1978 = vst.msk [vmem:[%s4022_s1 + $0xf8] ss:$33 sm:$0x1c] %vm4_vm0, %v1138_v38  }
  0xeb   :  { %1979 = vst.msk [vmem:[%s4022_s1 + $0x98] ss:$33 sm:$0xe0] %vm4_vm0, %v1138_v38   ;;  %1962 = vst.msk [vmem:[%s4022_s1 + $0xf8] ss:$33 sm:$0x3] %vm4_vm0, %v1082_v39  }
  0xec   :  { %1966 = vst.msk [vmem:[%s4022_s1 + $0x128] sm:$0xc] %vm335_vm7, %v1082_v39   ;;  %1967 = vst.msk [vmem:[%s4022_s1 + $0x1c8] ss:$-31 sm:$0x30] %vm335_vm7, %v1082_v39   ;;  %v1551_v52 = vpop.permute.xlu1 %1550  }
  0xed   :  { %1968 = vst.msk [vmem:[%s4022_s1 + $0x68] ss:$33 sm:$0xc0] %vm335_vm7, %v1082_v39   ;;  %1996 = vst.msk [vmem:[%s4022_s1 + $0x50] ss:$-31 sm:$0x3] %vm335_vm7, %v1203_v40  }
  0xee   :  { %1963 = vst.msk [vmem:[%s4022_s1 + $0x98] ss:$33 sm:$0x1c] %vm4_vm0, %v1082_v39   ;;  %1964 = vst.msk [vmem:[%s4022_s1 + $0x38] ss:$33 sm:$0xe0] %vm4_vm0, %v1082_v39   ;;  %v1522_v53 = vpop.permute.xlu0 %1521  }
  0xef   :  { %1997 = vst.msk [vmem:[%s4022_s1 + $0x50] sm:$0xc] %vm335_vm7, %v1203_v40   ;;  %1998 = vst.msk [vmem:[%s4022_s1 - $0x50] ss:$33 sm:$0x30] %vm335_vm7, %v1203_v40  }
  0xf0   :  { %1999 = vst.msk [vmem:[%s4022_s1 + $0x110] ss:$-31 sm:$0xc0] %vm335_vm7, %v1203_v40   ;;  %1988 = vst.msk [vmem:[%s4022_s1 + $0x10] sm:$0x3] %vm335_vm7, %v1174_v41  }
  0xf1   :  { %1989 = vst.msk [vmem:[%s4022_s1 + $0x70] ss:$-31 sm:$0xc] %vm335_vm7, %v1174_v41   ;;  %1990 = vst.msk [vmem:[%s4022_s1 - $0x70] ss:$33 sm:$0x30] %vm335_vm7, %v1174_v41  }
  0xf2   :  { %1991 = vst.msk [vmem:[%s4022_s1 + $0x10] sm:$0xc0] %vm335_vm7, %v1174_v41   ;;  %2012 = vst.msk [vmem:[%s4022_s1 + $0xb0] ss:$-31 sm:$0x3] %vm335_vm7, %v1261_v42   ;;  %v1609_v54 = vpop.permute.xlu1 %1608  }
  0xf3   :  { %2013 = vst.msk [vmem:[%s4022_s1 + $0xb0] sm:$0xc] %vm335_vm7, %v1261_v42   ;;  %2014 = vst.msk [vmem:[%s4022_s1 + $0x10] ss:$33 sm:$0x30] %vm335_vm7, %v1261_v42  }
  0xf4   :  { %2015 = vst.msk [vmem:[%s4022_s1 + $0x170] ss:$-31 sm:$0xc0] %vm335_vm7, %v1261_v42   ;;  %2004 = vst.msk [vmem:[%s4022_s1 + $0x70] sm:$0x3] %vm335_vm7, %v1232_v43   ;;  %v1580_v55 = vpop.permute.xlu0 %1579  }
  0xf5   :  { %2005 = vst.msk [vmem:[%s4022_s1 + $0xd0] ss:$-31 sm:$0xc] %vm335_vm7, %v1232_v43   ;;  %2006 = vst.msk [vmem:[%s4022_s1 - $0x10] ss:$33 sm:$0x30] %vm335_vm7, %v1232_v43  }
  0xf6   :  { %2007 = vst.msk [vmem:[%s4022_s1 + $0x70] sm:$0xc0] %vm335_vm7, %v1232_v43   ;;  %2028 = vst.msk [vmem:[%s4022_s1 + $0x110] ss:$-31 sm:$0x3] %vm335_vm7, %v1319_v44  }
  0xf7   :  { %2029 = vst.msk [vmem:[%s4022_s1 + $0x110] sm:$0xc] %vm335_vm7, %v1319_v44   ;;  %2030 = vst.msk [vmem:[%s4022_s1 + $0x70] ss:$33 sm:$0x30] %vm335_vm7, %v1319_v44  }
  0xf8   :  { %2031 = vst.msk [vmem:[%s4022_s1 + $0x1d0] ss:$-31 sm:$0xc0] %vm335_vm7, %v1319_v44   ;;  %2020 = vst.msk [vmem:[%s4022_s1 + $0xd0] sm:$0x3] %vm335_vm7, %v1290_v45  }
  0xf9   :  { %2021 = vst.msk [vmem:[%s4022_s1 + $0x130] ss:$-31 sm:$0xc] %vm335_vm7, %v1290_v45   ;;  %2022 = vst.msk [vmem:[%s4022_s1 + $0x50] ss:$33 sm:$0x30] %vm335_vm7, %v1290_v45  }
  0xfa   :  { %2023 = vst.msk [vmem:[%s4022_s1 + $0xd0] sm:$0xc0] %vm335_vm7, %v1290_v45   ;;  %2044 = vst.msk [vmem:[%s4022_s1 + $0x170] ss:$-31 sm:$0x3] %vm335_vm7, %v1377_v46  }
  0xfb   :  { %2045 = vst.msk [vmem:[%s4022_s1 + $0x170] sm:$0xc] %vm335_vm7, %v1377_v46   ;;  %2046 = vst.msk [vmem:[%s4022_s1 + $0xd0] ss:$33 sm:$0x30] %vm335_vm7, %v1377_v46  }
  0xfc   :  { %2047 = vst.msk [vmem:[%s4022_s1 + $0x230] ss:$-31 sm:$0xc0] %vm335_vm7, %v1377_v46   ;;  %2036 = vst.msk [vmem:[%s4022_s1 + $0x130] sm:$0x3] %vm335_vm7, %v1348_v47  }
  0xfd   :  { %2037 = vst.msk [vmem:[%s4022_s1 + $0x190] ss:$-31 sm:$0xc] %vm335_vm7, %v1348_v47   ;;  %2038 = vst.msk [vmem:[%s4022_s1 + $0xb0] ss:$33 sm:$0x30] %vm335_vm7, %v1348_v47  }
  0xfe   :  { %2039 = vst.msk [vmem:[%s4022_s1 + $0x130] sm:$0xc0] %vm335_vm7, %v1348_v47   ;;  %2060 = vst.msk [vmem:[%s4022_s1 + $0x58] sm:$0x3] %vm335_vm7, %v1435_v48  }
  0xff   :  { %2061 = vst.msk [vmem:[%s4022_s1 - $0x8] ss:$33 sm:$0xc] %vm335_vm7, %v1435_v48   ;;  %2062 = vst.msk [vmem:[%s4022_s1 + $0xd8] ss:$-31 sm:$0x30] %vm335_vm7, %v1435_v48  }
 0x100   :  { %2063 = vst.msk [vmem:[%s4022_s1 + $0x58] sm:$0xc0] %vm335_vm7, %v1435_v48   ;;  %2052 = vst.msk [vmem:[%s4022_s1 + $0x38] ss:$-31 sm:$0x3] %vm335_vm7, %v1406_v49  }
 0x101   :  { %2053 = vst.msk [vmem:[%s4022_s1 - $0x28] ss:$33 sm:$0xc] %vm335_vm7, %v1406_v49   ;;  %2054 = vst.msk [vmem:[%s4022_s1 + $0x18] sm:$0x30] %vm335_vm7, %v1406_v49  }
 0x102   :  { %2055 = vst.msk [vmem:[%s4022_s1 + $0xf8] ss:$-31 sm:$0xc0] %vm335_vm7, %v1406_v49   ;;  %2076 = vst.msk [vmem:[%s4022_s1 + $0xb8] sm:$0x3] %vm335_vm7, %v1493_v50  }
 0x103   :  { %2077 = vst.msk [vmem:[%s4022_s1 + $0x58] ss:$33 sm:$0xc] %vm335_vm7, %v1493_v50   ;;  %2078 = vst.msk [vmem:[%s4022_s1 + $0x138] ss:$-31 sm:$0x30] %vm335_vm7, %v1493_v50  }
 0x104   :  { %2079 = vst.msk [vmem:[%s4022_s1 + $0xb8] sm:$0xc0] %vm335_vm7, %v1493_v50   ;;  %2068 = vst.msk [vmem:[%s4022_s1 + $0x98] ss:$-31 sm:$0x3] %vm335_vm7, %v1464_v51  }
 0x105   :  { %2069 = vst.msk [vmem:[%s4022_s1 + $0x38] ss:$33 sm:$0xc] %vm335_vm7, %v1464_v51   ;;  %2070 = vst.msk [vmem:[%s4022_s1 + $0x78] sm:$0x30] %vm335_vm7, %v1464_v51  }
 0x106   :  { %2071 = vst.msk [vmem:[%s4022_s1 + $0x158] ss:$-31 sm:$0xc0] %vm335_vm7, %v1464_v51   ;;  %2092 = vst.msk [vmem:[%s4022_s1 + $0x118] sm:$0x3] %vm335_vm7, %v1551_v52  }
 0x107   :  { %2093 = vst.msk [vmem:[%s4022_s1 + $0xb8] ss:$33 sm:$0xc] %vm335_vm7, %v1551_v52   ;;  %2094 = vst.msk [vmem:[%s4022_s1 + $0x198] ss:$-31 sm:$0x30] %vm335_vm7, %v1551_v52  }
 0x108   :  { %2095 = vst.msk [vmem:[%s4022_s1 + $0x118] sm:$0xc0] %vm335_vm7, %v1551_v52   ;;  %2084 = vst.msk [vmem:[%s4022_s1 + $0xf8] ss:$-31 sm:$0x3] %vm335_vm7, %v1522_v53  }
 0x109   :  { %2085 = vst.msk [vmem:[%s4022_s1 + $0x98] ss:$33 sm:$0xc] %vm335_vm7, %v1522_v53   ;;  %2086 = vst.msk [vmem:[%s4022_s1 + $0xd8] sm:$0x30] %vm335_vm7, %v1522_v53  }
 0x10a   :  { %2087 = vst.msk [vmem:[%s4022_s1 + $0x1b8] ss:$-31 sm:$0xc0] %vm335_vm7, %v1522_v53   ;;  %2108 = vst.msk [vmem:[%s4022_s1 + $0x178] sm:$0x3] %vm335_vm7, %v1609_v54  }
 0x10b   :  { %2109 = vst.msk [vmem:[%s4022_s1 + $0x118] ss:$33 sm:$0xc] %vm335_vm7, %v1609_v54   ;;  %2110 = vst.msk [vmem:[%s4022_s1 + $0x1f8] ss:$-31 sm:$0x30] %vm335_vm7, %v1609_v54  }
 0x10c   :  { %2111 = vst.msk [vmem:[%s4022_s1 + $0x178] sm:$0xc0] %vm335_vm7, %v1609_v54   ;;  %2100 = vst.msk [vmem:[%s4022_s1 + $0x158] ss:$-31 sm:$0x3] %vm335_vm7, %v1580_v55  }
 0x10d   :  { %2101 = vst.msk [vmem:[%s4022_s1 + $0xf8] ss:$33 sm:$0xc] %vm335_vm7, %v1580_v55   ;;  %2102 = vst.msk [vmem:[%s4022_s1 + $0x138] sm:$0x30] %vm335_vm7, %v1580_v55  }
 0x10e   :  { %2103 = vst.msk [vmem:[%s4022_s1 + $0x218] ss:$-31 sm:$0xc0] %vm335_vm7, %v1580_v55  }

// kernel: squeeze.15
= control target key start
LH: loop header
LB: loop body
LE: loop exit
PB: predicated region body
PF: predicated region fallthrough
CT: control target
= control target key end

     0   :  { %vm46_vm0 = vcmask 1043458   ;;  %vm50_vm1 = vcmask 1046532   ;;  %vm54_vm2 = vcmask 1047559   ;;  %vm67_vm3 = vcmask 261120   ;;  %s132_s6 = smov 3  ;;  %s143_s13 = smov 3  ;;  %s2356_s0 = inlined_call_operand.vmem [shape: f32[1,2,128,96], index: 0, kind: input, shape index: {}]   ;;  %s2357_s1 = inlined_call_operand.vmem [shape: f32[2,2,2,24,128], index: 1, kind: output, shape index: {}]  }
   0x1   :  { %v973_v0 = vld [vmem:[%s2356_s0 + $0x35] ss:$44 sm:%s132_s6]   ;;  %vm136_vm4 = vcmask 1044482   ;;  %vm140_vm5 = vcmask 1047557   ;;  %s146_s14 = smov 12  ;;  %s41_s19 = smov 3 }
   0x2   :  { %v974_v1 = vld [vmem:[%s2356_s0 - $0x4b] ss:$44 sm:$0x1c]   ;;  %v975_v3 = vld [vmem:[%s2356_s0 - $0xcb] ss:$44 sm:$0xe0]  }
   0x3   :  { %v137_v2 = vsel %vm136_vm4, %v974_v1, %v973_v0  ;;  %v976_v4 = vld [vmem:[%s2356_s0 + $0x61] ss:$-84 sm:%s143_s13]   ;;  %s44_s20 = smov 12  ;;  %vm60_vm6 = vcmask 1045507   ;;  %s63_s29 = smov 192  ;;  %vm65_vm7 = vcmask 1047558  }
   0x4   :  { %v977_v5 = vld [vmem:[%s2356_s0 - $0x1f] ss:$44 sm:%s146_s14]   ;;  %v141_v6 = vsel %vm140_vm5, %v975_v3, %v137_v2  ;;  %s179_s5 = smov 3  ;;  %s1215_s10 = smov 96   ;;  %vm71_vm8 = vcmask 523264   ;;  %vm3_vm9 = vcmask 785408  }
   0x5   :  { %v149_v7 = vsel %vm46_vm0, %v977_v5, %v976_v4  ;;  %v978_v8 = vld [vmem:[%s2356_s0 - $0x9f] ss:$44 sm:$0x70]   ;;  %v979_v9 = vld [vmem:[%s2356_s0 + $0xe] sm:$0x80]   ;;  %s190_s15 = smov 3 }
   0x6   :  { %v153_v10 = vsel %vm50_vm1, %v978_v8, %v149_v7  ;;  %v948_v11 = vld [vmem:[%s2356_s0 + $0x55] ss:$-84 sm:%s41_s19]   ;;  %s86_s25 = smov 3  ;;  %s89_s26 = smov 12  ;;  %vm79_vm10 = vcmask 1048320   ;;  %vm437_vm11 = vcmask 1048064  }
   0x7   :  { %v949_v12 = vld [vmem:[%s2356_s0 - $0x2b] ss:$44 sm:%s44_s20]   ;;  %v157_v13 = vsel %vm54_vm2, %v979_v9, %v153_v10  ;;  %s193_s20 = smov 12  ;;  %s108_s6 = smov 192  ;;  %vm773_vm12 = vcmask 1047808  }
   0x8   :  { %v47_v14 = vsel %vm46_vm0, %v949_v12, %v948_v11  ;;  %v950_v15 = vld [vmem:[%s2356_s0 - $0xab] ss:$44 sm:$0x70]   ;;  %v951_v16 = vld [vmem:[%s2356_s0 + $0x2] sm:$0x80]   ;;  %v159_v17 = vsel %vm67_vm3, %v157_v13, %v141_v6  ;;  %s272_s7 = smov 192 }
   0x9   :  { %v51_v18 = vsel %vm50_vm1, %v950_v15, %v47_v14  ;;  %v952_v19 = vld [vmem:[%s2356_s0 + $0x1] ss:$44 sm:$0x7]   ;;  %v953_v20 = vld [vmem:[%s2356_s0 - $0x7f] ss:$44 sm:$0x38]   ;;  %160 = vrot.lane.b32.xlu1 %v159_v17, %s1215_s10 }
   0xa   :  { %v55_v21 = vsel %vm54_vm2, %v951_v16, %v51_v18  ;;  %v61_v22 = vsel %vm60_vm6, %v953_v20, %v952_v19  ;;  %v954_v23 = vld [vmem:[%s2356_s0 - $0xff] ss:$44 sm:%s63_s29]   ;;  %s277_s13 = smov 3  ;;  %s232_s22 = smov 192 }
   0xb   :  { %v988_v24 = vld [vmem:[%s2356_s0 + $0x35] ss:$44 sm:$0x1c]   ;;  %v66_v25 = vsel %vm65_vm7, %v954_v23, %v61_v22  ;;  %v989_v27 = vld [vmem:[%s2356_s0 - $0x4b] ss:$44 sm:$0xe0]  }
   0xc   :  { %v987_v26 = vld [vmem:[%s2356_s0 + $0xb5] ss:$44 sm:%s179_s5]   ;;  %v68_v28 = vsel %vm67_vm3, %v66_v25, %v55_v21  ;;  %s237_s27 = smov 3  ;;  %s353_s3 = smov 3 }
   0xd   :  { %v184_v29 = vsel %vm136_vm4, %v988_v24, %v987_v26  ;;  %v990_v30 = vld [vmem:[%s2356_s0 + $0xe1] ss:$-84 sm:%s190_s15]   ;;  %69 = vrot.lane.b32.xlu0 %v68_v28, %s1215_s10  ;;  %s375_s18 = smov 192  ;;  %s306_s23 = smov 3 }
   0xe   :  { %v991_v31 = vld [vmem:[%s2356_s0 + $0x61] ss:$44 sm:%s193_s20]   ;;  %v188_v32 = vsel %vm140_vm5, %v989_v27, %v184_v29  ;;  %s309_s28 = smov 12  ;;  %s328_s8 = smov 192 }
   0xf   :  { %v196_v33 = vsel %vm46_vm0, %v991_v31, %v990_v30  ;;  %v992_v34 = vld [vmem:[%s2356_s0 - $0x1f] ss:$44 sm:$0x70]   ;;  %v993_v35 = vld [vmem:[%s2356_s0 + $0x8e] sm:$0x80]   ;;  %s446_s14 = smov 3 }
  0x10   :  { %v200_v36 = vsel %vm50_vm1, %v992_v34, %v196_v33  ;;  %v960_v37 = vld [vmem:[%s2356_s0 + $0xd5] ss:$-84 sm:%s86_s25]   ;;  %s457_s15 = smov 3  ;;  %s460_s20 = smov 12 }
  0x11   :  { %v961_v38 = vld [vmem:[%s2356_s0 + $0x55] ss:$44 sm:%s89_s26]   ;;  %v204_v39 = vsel %vm54_vm2, %v993_v35, %v200_v36  ;;  %v1067_v34 = vld [vmem:[%s2356_s0 + $0x2a] ss:$44 sm:$0x1c]   ;;  %s400_s4 = smov 3 }
  0x12   :  { %v92_v40 = vsel %vm46_vm0, %v961_v38, %v960_v37  ;;  %v962_v41 = vld [vmem:[%s2356_s0 - $0x2b] ss:$44 sm:$0x70]   ;;  %v963_v42 = vld [vmem:[%s2356_s0 + $0x82] sm:$0x80]   ;;  %v206_v43 = vsel %vm67_vm3, %v204_v39, %v188_v32  ;;  %s411_s9 = smov 3 }
  0x13   :  { %v96_v44 = vsel %vm50_vm1, %v962_v41, %v92_v40  ;;  %v964_v45 = vld [vmem:[%s2356_s0 + $0x81] ss:$44 sm:$0x7]   ;;  %v965_v46 = vld [vmem:[%s2356_s0 + $0x1] ss:$44 sm:$0x38]   ;;  %207 = vrot.lane.b32.xlu1 %v206_v43, %s1215_s10 }
  0x14   :  { %v100_v47 = vsel %vm54_vm2, %v963_v42, %v96_v44  ;;  %v106_v48 = vsel %vm60_vm6, %v965_v46, %v964_v45  ;;  %v966_v49 = vld [vmem:[%s2356_s0 - $0x7f] ss:$44 sm:%s108_s6]   ;;  %v1066_v36 = vld [vmem:[%s2356_s0 + $0xaa] ss:$44 sm:%s446_s14]   ;;  %s414_s14 = smov 12  ;;  %s1216_s29 = smov 64  }
  0x15   :  { %v1013_v50 = vld [vmem:[%s2356_s0 + $0x95] ss:$44 sm:$0x7]   ;;  %v111_v51 = vsel %vm65_vm7, %v966_v49, %v106_v48  ;;  %v1014_v52 = vld [vmem:[%s2356_s0 + $0x15] ss:$44 sm:$0x38]   ;;  %v451_v39 = vsel %vm136_vm4, %v1067_v34, %v1066_v36 }
  0x16   :  { %v1015_v53 = vld [vmem:[%s2356_s0 - $0x6b] ss:$44 sm:%s272_s7]   ;;  %v113_v54 = vsel %vm67_vm3, %v111_v51, %v100_v47  ;;  %v270_v55 = vsel %vm60_vm6, %v1014_v52, %v1013_v50  ;;  %v1068_v37 = vld [vmem:[%s2356_s0 - $0x56] ss:$44 sm:$0xe0]   ;;  %s499_s5 = smov 192 }
  0x17   :  { %v1016_v56 = vld [vmem:[%s2356_s0 + $0xc1] ss:$44 sm:%s277_s13]   ;;  %114 = vrot.lane.b32.xlu0 %v113_v54, %s1215_s10  ;;  %v275_v58 = vsel %vm65_vm7, %v1015_v53, %v270_v55  ;;  %s356_s13 = smov 12  ;;  %v455_v42 = vsel %vm140_vm5, %v1068_v37, %v451_v39  ;;  %v1071_v44 = vld [vmem:[%s2356_s0 - $0x2a] ss:$44 sm:$0x70]  }
  0x18   :  { %v1017_v57 = vld [vmem:[%s2356_s0 + $0x41] ss:$44 sm:$0x1c]   ;;  %v1018_v60 = vld [vmem:[%s2356_s0 - $0x3f] ss:$44 sm:$0xe0]  }
  0x19   :  { %v282_v59 = vsel %vm136_vm4, %v1017_v57, %v1016_v56  ;;  %v1001_v61 = vld [vmem:[%s2356_s0 + $0x15] ss:$44 sm:$0x7]   ;;  %v1002_v63 = vld [vmem:[%s2356_s0 - $0x6b] ss:$44 sm:$0x38]  }
  0x1a   :  { %v286_v62 = vsel %vm140_vm5, %v1018_v60, %v282_v59  ;;  %v1003_v0 = vld [vmem:[%s2356_s0 - $0xeb] ss:$44 sm:%s232_s22]   ;;  %v230_v2 = vsel %vm60_vm6, %v1002_v63, %v1001_v61  ;;  %v1069_v40 = vld [vmem:[%s2356_s0 + $0xd6] ss:$-84 sm:%s457_s15]   ;;  %s620_s15 = smov 3  ;;  %s623_s24 = smov 12 }
  0x1b   :  { %v288_v1 = vsel %vm67_vm3, %v286_v62, %v275_v58  ;;  %v1004_v3 = vld [vmem:[%s2356_s0 + $0x41] ss:$44 sm:%s237_s27]   ;;  %v235_v5 = vsel %vm65_vm7, %v1003_v0, %v230_v2  ;;  %v1070_v41 = vld [vmem:[%s2356_s0 + $0x56] ss:$44 sm:%s460_s20]   ;;  %s642_s30 = smov 192  ;;  %s573_s6 = smov 3 }
  0x1c   :  { %v1005_v4 = vld [vmem:[%s2356_s0 - $0x3f] ss:$44 sm:$0x1c]   ;;  %289 = vrot.lane.b32.xlu1 %v288_v1, %s1215_s10  ;;  %v1006_v7 = vld [vmem:[%s2356_s0 - $0xbf] ss:$44 sm:$0xe0]   ;;  %v463_v43 = vsel %vm46_vm0, %v1070_v41, %v1069_v40 }
  0x1d   :  { %v242_v6 = vsel %vm136_vm4, %v1005_v4, %v1004_v3  ;;  %v1039_v8 = vld [vmem:[%s2356_s0 + $0xf5] ss:$-84 sm:%s353_s3]   ;;  %v1072_v45 = vld [vmem:[%s2356_s0 + $0x83] sm:$0x80]   ;;  %v467_v46 = vsel %vm50_vm1, %v1071_v44, %v463_v43  ;;  %s576_s11 = smov 12  ;;  %s595_s20 = smov 192 }
  0x1e   :  { %v246_v9 = vsel %vm140_vm5, %v1006_v7, %v242_v6  ;;  %v1040_v10 = vld [vmem:[%s2356_s0 + $0x75] ss:$44 sm:%s356_s13]   ;;  %v1053_v47 = vld [vmem:[%s2356_s0 + $0x2a] ss:$44 sm:%s400_s4]   ;;  %v471_v49 = vsel %vm54_vm2, %v1072_v45, %v467_v46  ;;  %s714_s25 = smov 3  ;;  %s725_s26 = smov 3 }
  0x1f   :  { %v1041_v11 = vld [vmem:[%s2356_s0 - $0xb] ss:$44 sm:$0x70]   ;;  %v248_v12 = vsel %vm67_vm3, %v246_v9, %v235_v5  ;;  %v359_v13 = vsel %vm46_vm0, %v1040_v10, %v1039_v8  ;;  %v1042_v14 = vld [vmem:[%s2356_s0 + $0xa2] sm:$0x80]   ;;  %v473_v53 = vsel %vm71_vm8, %v471_v49, %v455_v42  ;;  %s728_s3 = smov 12 }
  0x20   :  { %v1043_v15 = vld [vmem:[%s2356_s0 + $0xa1] ss:$44 sm:$0x7]   ;;  %249 = vrot.lane.b32.xlu0 %v248_v12, %s1215_s10  ;;  %v363_v16 = vsel %vm50_vm1, %v1041_v11, %v359_v13  ;;  %v1044_v17 = vld [vmem:[%s2356_s0 + $0x21] ss:$44 sm:$0x38]  }
  0x21   :  { %v1045_v18 = vld [vmem:[%s2356_s0 - $0x5f] ss:$44 sm:%s375_s18]   ;;  %v367_v19 = vsel %vm54_vm2, %v1042_v14, %v363_v16  ;;  %v373_v20 = vsel %vm60_vm6, %v1044_v17, %v1043_v15  ;;  %v1054_v48 = vld [vmem:[%s2356_s0 - $0x56] ss:$44 sm:$0x1c]   ;;  %s667_s16 = smov 3 }
  0x22   :  { %v1025_v21 = vld [vmem:[%s2356_s0 + $0x75] ss:$-84 sm:%s306_s23]   ;;  %v378_v23 = vsel %vm65_vm7, %v1045_v18, %v373_v20  ;;  %v405_v50 = vsel %vm136_vm4, %v1054_v48, %v1053_v47  ;;  %v1055_v51 = vld [vmem:[%s2356_s0 - $0xd6] ss:$44 sm:$0xe0]   ;;  %s539_s23 = smov 192 }
  0x23   :  { %v1026_v22 = vld [vmem:[%s2356_s0 - $0xb] ss:$44 sm:%s309_s28]   ;;  %v380_v27 = vsel %vm67_vm3, %v378_v23, %v367_v19  ;;  %v1056_v52 = vld [vmem:[%s2356_s0 + $0x56] ss:$-84 sm:%s411_s9]   ;;  %s544_s28 = smov 3  ;;  %v409_v56 = vsel %vm140_vm5, %v1055_v51, %v405_v50  ;;  %s678_s21 = smov 3 }
  0x24   :  { %v312_v24 = vsel %vm46_vm0, %v1026_v22, %v1025_v21  ;;  %v1027_v25 = vld [vmem:[%s2356_s0 - $0x8b] ss:$44 sm:$0x70]   ;;  %v1028_v26 = vld [vmem:[%s2356_s0 + $0x22] sm:$0x80]   ;;  %381 = vrot.lane.b32.xlu1 %v380_v27, %s1215_s10  ;;  %s681_s22 = smov 12 }
  0x25   :  { %v316_v28 = vsel %vm50_vm1, %v1027_v25, %v312_v24  ;;  %v1029_v29 = vld [vmem:[%s2356_s0 + $0x21] ss:$44 sm:$0x7]   ;;  %v1030_v30 = vld [vmem:[%s2356_s0 - $0x5f] ss:$44 sm:$0x38]  }
  0x26   :  { %v320_v31 = vsel %vm54_vm2, %v1028_v26, %v316_v28  ;;  %v326_v32 = vsel %vm60_vm6, %v1030_v30, %v1029_v29  ;;  %v1031_v33 = vld [vmem:[%s2356_s0 - $0xdf] ss:$44 sm:%s328_s8]   ;;  %v1057_v54 = vld [vmem:[%s2356_s0 - $0x2a] ss:$44 sm:%s414_s14]   ;;  %s761_s8 = smov 3  ;;  %s827_s13 = smov 192 }
  0x27   :  { %v331_v35 = vsel %vm65_vm7, %v1031_v33, %v326_v32  ;;  %v1058_v55 = vld [vmem:[%s2356_s0 - $0xaa] ss:$44 sm:$0x70]   ;;  %v417_v57 = vsel %vm46_vm0, %v1057_v54, %v1056_v52  ;;  %v1059_v58 = vld [vmem:[%s2356_s0 + $0x3] sm:$0x80]   ;;  %s807_s18 = smov 192 }
  0x28   :  { %v333_v38 = vsel %vm67_vm3, %v331_v35, %v320_v31  ;;  %474 = vrot.lane.b32.xlu1 %v473_v53, %s1216_s29  ;;  %v1092_v59 = vld [vmem:[%s2356_s0 + $0x8a] ss:$44 sm:$0x7]   ;;  %v421_v60 = vsel %vm50_vm1, %v1058_v55, %v417_v57  ;;  %v1093_v61 = vld [vmem:[%s2356_s0 + $0xa] ss:$44 sm:$0x38]  }
  0x29   :  { %334 = vrot.lane.b32.xlu0 %v333_v38, %s1215_s10  ;;  %v1094_v62 = vld [vmem:[%s2356_s0 - $0x76] ss:$44 sm:%s539_s23]   ;;  %s504_s10 = smov 3  ;;  %v425_v63 = vsel %vm54_vm2, %v1059_v58, %v421_v60  ;;  %v537_v0 = vsel %vm60_vm6, %v1093_v61, %v1092_v59  ;;  %s868_s19 = smov 3 }
  0x2a   :  { %v1095_v1 = vld [vmem:[%s2356_s0 + $0xb6] ss:$44 sm:%s544_s28]   ;;  %v427_v3 = vsel %vm71_vm8, %v425_v63, %v409_v56  ;;  %v542_v4 = vsel %vm65_vm7, %v1094_v62, %v537_v0  ;;  %s871_s28 = smov 12  ;;  %s841_s17 = smov 3 }
  0x2b   :  { %v1096_v2 = vld [vmem:[%s2356_s0 + $0x36] ss:$44 sm:$0x1c]   ;;  %v1097_v6 = vld [vmem:[%s2356_s0 - $0x4a] ss:$44 sm:$0xe0]  }
  0x2c   :  { %v549_v5 = vsel %vm136_vm4, %v1096_v2, %v1095_v1  ;;  %v1080_v7 = vld [vmem:[%s2356_s0 + $0xa] ss:$44 sm:$0x7]   ;;  %v1081_v9 = vld [vmem:[%s2356_s0 - $0x76] ss:$44 sm:$0x38]  }
  0x2d   :  { %428 = vrot.lane.b32.xlu0 %v427_v3, %s1216_s29  ;;  %v553_v8 = vsel %vm140_vm5, %v1097_v6, %v549_v5  ;;  %v1082_v10 = vld [vmem:[%s2356_s0 - $0xf6] ss:$44 sm:%s499_s5]   ;;  %v497_v12 = vsel %vm60_vm6, %v1081_v9, %v1080_v7  ;;  %v1167_v7 = vld [vmem:[%s2356_s0 + $0x2b] ss:$44 sm:$0x1c]   ;;  %s915_s23 = smov 3 }
  0x2e   :  { %v555_v11 = vsel %vm71_vm8, %v553_v8, %v542_v4  ;;  %v1083_v13 = vld [vmem:[%s2356_s0 + $0x36] ss:$44 sm:%s504_s10]   ;;  %v502_v15 = vsel %vm65_vm7, %v1082_v10, %v497_v12  ;;  %v1168_v8 = vld [vmem:[%s2356_s0 - $0x55] ss:$44 sm:$0xe0]   ;;  %s895_s4 = smov 3 }
  0x2f   :  { %v1084_v14 = vld [vmem:[%s2356_s0 - $0x4a] ss:$44 sm:$0x1c]   ;;  %556 = vrot.lane.b32.xlu1 %v555_v11, %s1216_s29  ;;  %v1085_v17 = vld [vmem:[%s2356_s0 - $0xca] ss:$44 sm:$0xe0]  }
  0x30   :  { %v509_v16 = vsel %vm136_vm4, %v1084_v14, %v1083_v13  ;;  %v1118_v18 = vld [vmem:[%s2356_s0 + $0xea] ss:$-84 sm:%s620_s15]   ;;  %v1160_v11 = vld [vmem:[%s2356_s0 + $0x2b] ss:$44 sm:%s761_s8]  }
  0x31   :  { %v513_v19 = vsel %vm140_vm5, %v1085_v17, %v509_v16  ;;  %v1119_v20 = vld [vmem:[%s2356_s0 + $0x6a] ss:$44 sm:%s623_s24]   ;;  %v1161_v12 = vld [vmem:[%s2356_s0 - $0x55] ss:$44 sm:$0x1c]  }
  0x32   :  { %v1120_v21 = vld [vmem:[%s2356_s0 - $0x16] ss:$44 sm:$0x70]   ;;  %v515_v22 = vsel %vm71_vm8, %v513_v19, %v502_v15  ;;  %v626_v23 = vsel %vm46_vm0, %v1119_v20, %v1118_v18  ;;  %v1121_v24 = vld [vmem:[%s2356_s0 + $0x97] sm:$0x80]   ;;  %v766_v15 = vsel %vm136_vm4, %v1161_v12, %v1160_v11 }
  0x33   :  { %v1122_v25 = vld [vmem:[%s2356_s0 + $0x96] ss:$44 sm:$0x7]   ;;  %516 = vrot.lane.b32.xlu0 %v515_v22, %s1216_s29  ;;  %v630_v26 = vsel %vm50_vm1, %v1120_v21, %v626_v23  ;;  %v1123_v27 = vld [vmem:[%s2356_s0 + $0x16] ss:$44 sm:$0x38]  }
  0x34   :  { %v1124_v28 = vld [vmem:[%s2356_s0 - $0x6a] ss:$44 sm:%s642_s30]   ;;  %v634_v29 = vsel %vm54_vm2, %v1121_v24, %v630_v26  ;;  %v640_v30 = vsel %vm60_vm6, %v1123_v27, %v1122_v25  ;;  %v1162_v16 = vld [vmem:[%s2356_s0 - $0xd5] ss:$44 sm:$0xe0]  }
  0x35   :  { %v1104_v31 = vld [vmem:[%s2356_s0 + $0x6a] ss:$-84 sm:%s573_s6]   ;;  %v645_v33 = vsel %vm65_vm7, %v1124_v28, %v640_v30  ;;  %v1178_v17 = vld [vmem:[%s2356_s0 + $0x8b] ss:$44 sm:$0x7]   ;;  %v770_v20 = vsel %vm140_vm5, %v1162_v16, %v766_v15 }
  0x36   :  { %v1105_v32 = vld [vmem:[%s2356_s0 - $0x16] ss:$44 sm:%s576_s11]   ;;  %v647_v37 = vsel %vm71_vm8, %v645_v33, %v634_v29  ;;  %v1179_v18 = vld [vmem:[%s2356_s0 + $0xb] ss:$44 sm:$0x38]  }
  0x37   :  { %v579_v34 = vsel %vm46_vm0, %v1105_v32, %v1104_v31  ;;  %v1106_v35 = vld [vmem:[%s2356_s0 - $0x96] ss:$44 sm:$0x70]   ;;  %v1107_v36 = vld [vmem:[%s2356_s0 + $0x17] sm:$0x80]   ;;  %648 = vrot.lane.b32.xlu1 %v647_v37, %s1216_s29  ;;  %v825_v21 = vsel %vm60_vm6, %v1179_v18, %v1178_v17 }
  0x38   :  { %v583_v38 = vsel %vm50_vm1, %v1106_v35, %v579_v34  ;;  %v1108_v39 = vld [vmem:[%s2356_s0 + $0x16] ss:$44 sm:$0x7]   ;;  %v1109_v40 = vld [vmem:[%s2356_s0 - $0x6a] ss:$44 sm:$0x38]  }
  0x39   :  { %v587_v41 = vsel %vm54_vm2, %v1107_v36, %v583_v38  ;;  %v593_v42 = vsel %vm60_vm6, %v1109_v40, %v1108_v39  ;;  %v1110_v43 = vld [vmem:[%s2356_s0 - $0xea] ss:$44 sm:%s595_s20]   ;;  %v1172_v19 = vld [vmem:[%s2356_s0 + $0xb] ss:$44 sm:$0x7]  }
  0x3a   :  { %v1147_v44 = vld [vmem:[%s2356_s0 + $0x4a] ss:$44 sm:$0x1c]   ;;  %v598_v45 = vsel %vm65_vm7, %v1110_v43, %v593_v42  ;;  %v1148_v47 = vld [vmem:[%s2356_s0 - $0x36] ss:$44 sm:$0xe0]  }
  0x3b   :  { %v1146_v46 = vld [vmem:[%s2356_s0 + $0xca] ss:$44 sm:%s714_s25]   ;;  %v600_v48 = vsel %vm71_vm8, %v598_v45, %v587_v41  ;;  %v1180_v22 = vld [vmem:[%s2356_s0 - $0x75] ss:$44 sm:%s827_s13]  }
  0x3c   :  { %v719_v49 = vsel %vm136_vm4, %v1147_v44, %v1146_v46  ;;  %v1149_v50 = vld [vmem:[%s2356_s0 + $0xf6] ss:$-84 sm:%s725_s26]   ;;  %601 = vrot.lane.b32.xlu0 %v600_v48, %s1216_s29  ;;  %v1173_v23 = vld [vmem:[%s2356_s0 - $0x75] ss:$44 sm:$0x38]   ;;  %v830_v24 = vsel %vm65_vm7, %v1180_v22, %v825_v21 }
  0x3d   :  { %v1150_v51 = vld [vmem:[%s2356_s0 + $0x76] ss:$44 sm:%s728_s3]   ;;  %v723_v52 = vsel %vm140_vm5, %v1148_v47, %v719_v49  ;;  %s781_s3 = smov 3  ;;  %v805_v25 = vsel %vm60_vm6, %v1173_v23, %v1172_v19  ;;  %v1174_v26 = vld [vmem:[%s2356_s0 - $0xf5] ss:$44 sm:%s807_s18]   ;;  %s844_s18 = smov 12 }
  0x3e   :  { %v731_v53 = vsel %vm46_vm0, %v1150_v51, %v1149_v50  ;;  %v1151_v54 = vld [vmem:[%s2356_s0 - $0xa] ss:$44 sm:$0x70]   ;;  %v1152_v55 = vld [vmem:[%s2356_s0 + $0xa3] sm:$0x80]   ;;  %v810_v33 = vsel %vm65_vm7, %v1174_v26, %v805_v25 }
  0x3f   :  { %v735_v56 = vsel %vm50_vm1, %v1151_v54, %v731_v53  ;;  %v1132_v57 = vld [vmem:[%s2356_s0 + $0x4a] ss:$44 sm:%s667_s16]   ;;  %v1166_v5 = vld [vmem:[%s2356_s0 + $0xab] ss:$44 sm:%s781_s3]  }
  0x40   :  { %v1133_v58 = vld [vmem:[%s2356_s0 - $0x36] ss:$44 sm:$0x1c]   ;;  %v739_v59 = vsel %vm54_vm2, %v1152_v55, %v735_v56  ;;  %v1134_v61 = vld [vmem:[%s2356_s0 - $0xb6] ss:$44 sm:$0xe0]   ;;  %v786_v10 = vsel %vm136_vm4, %v1167_v7, %v1166_v5 }
  0x41   :  { %v672_v60 = vsel %vm136_vm4, %v1133_v58, %v1132_v57  ;;  %v1135_v62 = vld [vmem:[%s2356_s0 + $0x76] ss:$-84 sm:%s678_s21]   ;;  %v741_v63 = vsel %vm71_vm8, %v739_v59, %v723_v52  ;;  %v790_v14 = vsel %vm140_vm5, %v1168_v8, %v786_v10  ;;  %v1192_v27 = vld [vmem:[%s2356_s0 + $0xeb] ss:$-84 sm:%s868_s19]  }
  0x42   :  { %v1136_v0 = vld [vmem:[%s2356_s0 - $0xa] ss:$44 sm:%s681_s22]   ;;  %742 = vrot.lane.b32.xlu1 %v741_v63, %s1216_s29  ;;  %v676_v2 = vsel %vm140_vm5, %v1134_v61, %v672_v60  ;;  %v1194_v29 = vld [vmem:[%s2356_s0 - $0x15] ss:$44 sm:$0x70]  }
  0x43   :  { %v1137_v1 = vld [vmem:[%s2356_s0 - $0x8a] ss:$44 sm:$0x70]   ;;  %v684_v3 = vsel %vm46_vm0, %v1136_v0, %v1135_v62  ;;  %v1138_v4 = vld [vmem:[%s2356_s0 + $0x23] sm:$0x80]  }
  0x44   :  { %v688_v6 = vsel %vm50_vm1, %v1137_v1, %v684_v3  ;;  %v1193_v28 = vld [vmem:[%s2356_s0 + $0x6b] ss:$44 sm:%s871_s28]   ;;  %v2_v41 = vld [vmem:[%s2356_s0] ss:$4 sm:$0xff]  }
  0x45   :  { %v692_v9 = vsel %vm54_vm2, %v1138_v4, %v688_v6  ;;  %v874_v30 = vsel %vm46_vm0, %v1193_v28, %v1192_v27  ;;  %v1195_v31 = vld [vmem:[%s2356_s0 + $0x98] sm:$0x80]   ;;  %v1186_v32 = vld [vmem:[%s2356_s0 - $0x95] ss:$44 sm:$0x70]  }
  0x46   :  { %v694_v13 = vsel %vm71_vm8, %v692_v9, %v676_v2  ;;  %v878_v34 = vsel %vm50_vm1, %v1194_v29, %v874_v30  ;;  %v1184_v35 = vld [vmem:[%s2356_s0 + $0x6b] ss:$-84 sm:%s841_s17]   ;;  %4 = vst.msk [vmem:[%s2357_s1] ss:$3 sm:$0xff] %vm3_vm9, %v2_v41   ;;  %v934_v52 = vld [vmem:[%s2356_s0 + $0x20] ss:$4 sm:$0xff]  }
  0x47   :  { %695 = vrot.lane.b32.xlu0 %v694_v13, %s1216_s29  ;;  %s1217_s29 = smov 32   ;;  %v1185_v36 = vld [vmem:[%s2356_s0 - $0x15] ss:$44 sm:%s844_s18]   ;;  %v882_v37 = vsel %vm54_vm2, %v1195_v31, %v878_v34  ;;  %v938_v53 = vld [vmem:[%s2356_s0 + $0x60] ss:$4 sm:$0xff]  }
  0x48   :  { %791 = vrot.lane.b32.xlu1 %v790_v14, %s1217_s29  ;;  %v847_v38 = vsel %vm46_vm0, %v1185_v36, %v1184_v35  ;;  %v1187_v39 = vld [vmem:[%s2356_s0 + $0x18] sm:$0x80]   ;;  %v1207_v43 = vld [vmem:[%s2356_s0 + $0x4b] ss:$44 sm:$0x1c]  }
  0x49   :  { %v1206_v40 = vld [vmem:[%s2356_s0 + $0xcb] ss:$44 sm:%s915_s23]   ;;  %v851_v42 = vsel %vm50_vm1, %v1186_v32, %v847_v38  ;;  %v936_v54 = vld [vmem:[%s2356_s0 + $0x40] ss:$4 sm:$0xff]   ;;  %935 = vst.msk [vmem:[%s2357_s1 + $0x18] ss:$3 sm:$0xff] %vm3_vm9, %v934_v52  }
  0x4a   :  { %v1208_v44 = vld [vmem:[%s2356_s0 - $0x35] ss:$44 sm:$0xe0]   ;;  %v855_v45 = vsel %vm54_vm2, %v1187_v39, %v851_v42  ;;  %v920_v46 = vsel %vm136_vm4, %v1207_v43, %v1206_v40  ;;  %v1201_v49 = vld [vmem:[%s2356_s0 - $0x35] ss:$44 sm:$0x1c]  }
  0x4b   :  { %771 = vrot.lane.b32.xlu0 %v770_v20, %s1217_s29  ;;  %v1200_v47 = vld [vmem:[%s2356_s0 + $0x4b] ss:$44 sm:%s895_s4]   ;;  %v924_v48 = vsel %vm140_vm5, %v1208_v44, %v920_v46  ;;  %939 = vst.msk [vmem:[%s2357_s1 + $0x48] ss:$3 sm:$0xff] %vm3_vm9, %v938_v53  }
  0x4c   :  { %831 = vrot.lane.b32.xlu1 %v830_v24, %s1217_s29  ;;  %v1202_v50 = vld [vmem:[%s2356_s0 - $0xb5] ss:$44 sm:$0xe0]   ;;  %v900_v51 = vsel %vm136_vm4, %v1201_v49, %v1200_v47  ;;  %937 = vst.msk [vmem:[%s2357_s1 + $0x30] ss:$3 sm:$0xff] %vm3_vm9, %v936_v54  }
  0x4d   :  { %v940_v55 = vld [vmem:[%s2356_s0 + $0x80] ss:$4 sm:$0xff]   ;;  %v904_v59 = vsel %vm140_vm5, %v1202_v50, %v900_v51 }
  0x4e   :  { %v942_v56 = vld [vmem:[%s2356_s0 + $0xa0] ss:$4 sm:$0xff]   ;;  %941 = vst.msk [vmem:[%s2357_s1 + $0x60] ss:$3 sm:$0xff] %vm3_vm9, %v940_v55  }
  0x4f   :  { %811 = vrot.lane.b32.xlu0 %v810_v33, %s1217_s29  ;;  %v946_v57 = vld [vmem:[%s2356_s0 + $0xe0] ss:$4 sm:$0xff]   ;;  %943 = vst.msk [vmem:[%s2357_s1 + $0x78] ss:$3 sm:$0xff] %vm3_vm9, %v942_v56  }
  0x50   :  { %883 = vrot.lane.b32.xlu1 %v882_v37, %s1217_s29  ;;  %947 = vst.msk [vmem:[%s2357_s1 + $0xa8] ss:$3 sm:$0xff] %vm3_vm9, %v946_v57   ;;  %v944_v58 = vld [vmem:[%s2356_s0 + $0xc0] ss:$4 sm:$0xff]  }
  0x51   :  { %945 = vst.msk [vmem:[%s2357_s1 + $0x90] ss:$3 sm:$0xff] %vm3_vm9, %v944_v58  }
  0x53   :  { %856 = vrot.lane.b32.xlu0 %v855_v45, %s1217_s29 }
  0x54   :  { %925 = vrot.lane.b32.xlu1 %v924_v48, %s1217_s29 }
  0x57   :  { %905 = vrot.lane.b32.xlu0 %v904_v59, %s1217_s29 }
  0x7b   :  { %v161_v60 = vpop.permute.xlu1 %160  }
  0x7c   :  { %980 = vst.msk [vmem:[%s2357_s1 + $0x28] ss:$33 sm:$0x3] %vm71_vm8, %v161_v60   ;;  %981 = vst.msk [vmem:[%s2357_s1 - $0x38] ss:$33 sm:$0x1c] %vm71_vm8, %v161_v60  }
  0x7d   :  { %982 = vst.msk [vmem:[%s2357_s1 - $0x98] ss:$33 sm:$0xe0] %vm71_vm8, %v161_v60  }
  0x7e   :  { %983 = vst.msk [vmem:[%s2357_s1 + $0x48] ss:$-63 sm:$0x3] %vm79_vm10, %v161_v60   ;;  %984 = vst.msk [vmem:[%s2357_s1 - $0x18] ss:$33 sm:$0xc] %vm79_vm10, %v161_v60  }
  0x7f   :  { %985 = vst.msk [vmem:[%s2357_s1 - $0x78] ss:$33 sm:$0x70] %vm79_vm10, %v161_v60   ;;  %986 = vst.msk [vmem:[%s2357_s1 + $0x8] sm:$0x80] %vm79_vm10, %v161_v60   ;;  %v70_v61 = vpop.permute.xlu0 %69  }
  0x80   :  { %955 = vst.msk [vmem:[%s2357_s1 + $0x40] ss:$-63 sm:$0x3] %vm71_vm8, %v70_v61   ;;  %956 = vst.msk [vmem:[%s2357_s1 - $0x20] ss:$33 sm:$0xc] %vm71_vm8, %v70_v61  }
  0x81   :  { %957 = vst.msk [vmem:[%s2357_s1 - $0x80] ss:$33 sm:$0x70] %vm71_vm8, %v70_v61   ;;  %78 = vst.msk [vmem:[%s2357_s1] sm:$0x80] %vm71_vm8, %v70_v61  }
  0x82   :  { %80 = vst.msk [vmem:[%s2357_s1] ss:$33 sm:$0x7] %vm79_vm10, %v70_v61   ;;  %958 = vst.msk [vmem:[%s2357_s1 - $0x60] ss:$33 sm:$0x38] %vm79_vm10, %v70_v61  }
  0x83   :  { %959 = vst.msk [vmem:[%s2357_s1 - $0xc0] ss:$33 sm:$0xc0] %vm79_vm10, %v70_v61  }
  0x85   :  { %v208_v62 = vpop.permute.xlu1 %207  }
  0x86   :  { %994 = vst.msk [vmem:[%s2357_s1 + $0x88] ss:$33 sm:$0x3] %vm71_vm8, %v208_v62   ;;  %995 = vst.msk [vmem:[%s2357_s1 + $0x28] ss:$33 sm:$0x1c] %vm71_vm8, %v208_v62  }
  0x87   :  { %996 = vst.msk [vmem:[%s2357_s1 - $0x38] ss:$33 sm:$0xe0] %vm71_vm8, %v208_v62  }
  0x88   :  { %997 = vst.msk [vmem:[%s2357_s1 + $0xa8] ss:$-63 sm:$0x3] %vm79_vm10, %v208_v62   ;;  %998 = vst.msk [vmem:[%s2357_s1 + $0x48] ss:$33 sm:$0xc] %vm79_vm10, %v208_v62  }
  0x89   :  { %999 = vst.msk [vmem:[%s2357_s1 - $0x18] ss:$33 sm:$0x70] %vm79_vm10, %v208_v62   ;;  %1000 = vst.msk [vmem:[%s2357_s1 + $0x68] sm:$0x80] %vm79_vm10, %v208_v62   ;;  %v115_v63 = vpop.permute.xlu0 %114  }
  0x8a   :  { %967 = vst.msk [vmem:[%s2357_s1 + $0xa0] ss:$-63 sm:$0x3] %vm71_vm8, %v115_v63   ;;  %968 = vst.msk [vmem:[%s2357_s1 + $0x40] ss:$33 sm:$0xc] %vm71_vm8, %v115_v63  }
  0x8b   :  { %969 = vst.msk [vmem:[%s2357_s1 - $0x20] ss:$33 sm:$0x70] %vm71_vm8, %v115_v63   ;;  %970 = vst.msk [vmem:[%s2357_s1 + $0x60] sm:$0x80] %vm71_vm8, %v115_v63  }
  0x8c   :  { %971 = vst.msk [vmem:[%s2357_s1 + $0x60] ss:$33 sm:$0x7] %vm79_vm10, %v115_v63   ;;  %128 = vst.msk [vmem:[%s2357_s1] ss:$33 sm:$0x38] %vm79_vm10, %v115_v63  }
  0x8d   :  { %972 = vst.msk [vmem:[%s2357_s1 - $0x60] ss:$33 sm:$0xc0] %vm79_vm10, %v115_v63  }
  0x8e   :  { %v290_v0 = vpop.permute.xlu1 %289  }
  0x8f   :  { %1019 = vst.msk [vmem:[%s2357_s1 + $0x70] ss:$33 sm:$0x7] %vm71_vm8, %v290_v0   ;;  %1020 = vst.msk [vmem:[%s2357_s1 + $0x10] ss:$33 sm:$0x38] %vm71_vm8, %v290_v0  }
  0x90   :  { %1021 = vst.msk [vmem:[%s2357_s1 - $0x50] ss:$33 sm:$0xc0] %vm71_vm8, %v290_v0  }
  0x91   :  { %1022 = vst.msk [vmem:[%s2357_s1 + $0x90] ss:$33 sm:$0x3] %vm79_vm10, %v290_v0   ;;  %1023 = vst.msk [vmem:[%s2357_s1 + $0x30] ss:$33 sm:$0x1c] %vm79_vm10, %v290_v0  }
  0x92   :  { %1024 = vst.msk [vmem:[%s2357_s1 - $0x30] ss:$33 sm:$0xe0] %vm79_vm10, %v290_v0   ;;  %v250_v1 = vpop.permute.xlu0 %249  }
  0x93   :  { %1007 = vst.msk [vmem:[%s2357_s1 + $0x10] ss:$33 sm:$0x7] %vm71_vm8, %v250_v1   ;;  %1008 = vst.msk [vmem:[%s2357_s1 - $0x50] ss:$33 sm:$0x38] %vm71_vm8, %v250_v1  }
  0x94   :  { %1009 = vst.msk [vmem:[%s2357_s1 - $0xb0] ss:$33 sm:$0xc0] %vm71_vm8, %v250_v1  }
  0x95   :  { %1010 = vst.msk [vmem:[%s2357_s1 + $0x30] ss:$33 sm:$0x3] %vm79_vm10, %v250_v1   ;;  %1011 = vst.msk [vmem:[%s2357_s1 - $0x30] ss:$33 sm:$0x1c] %vm79_vm10, %v250_v1  }
  0x96   :  { %1012 = vst.msk [vmem:[%s2357_s1 - $0x90] ss:$33 sm:$0xe0] %vm79_vm10, %v250_v1   ;;  %v382_v2 = vpop.permute.xlu1 %381  }
  0x97   :  { %1046 = vst.msk [vmem:[%s2357_s1 + $0xb8] ss:$-63 sm:$0x3] %vm71_vm8, %v382_v2   ;;  %1047 = vst.msk [vmem:[%s2357_s1 + $0x58] ss:$33 sm:$0xc] %vm71_vm8, %v382_v2  }
  0x98   :  { %1048 = vst.msk [vmem:[%s2357_s1 - $0x8] ss:$33 sm:$0x70] %vm71_vm8, %v382_v2   ;;  %1049 = vst.msk [vmem:[%s2357_s1 + $0x78] sm:$0x80] %vm71_vm8, %v382_v2  }
  0x99   :  { %1050 = vst.msk [vmem:[%s2357_s1 + $0x78] ss:$33 sm:$0x7] %vm79_vm10, %v382_v2   ;;  %1051 = vst.msk [vmem:[%s2357_s1 + $0x18] ss:$33 sm:$0x38] %vm79_vm10, %v382_v2  }
  0x9a   :  { %1052 = vst.msk [vmem:[%s2357_s1 - $0x48] ss:$33 sm:$0xc0] %vm79_vm10, %v382_v2   ;;  %v475_v4 = vpop.permute.xlu1 %474  }
  0x9b   :  { %v335_v3 = vpop.permute.xlu0 %334   ;;  %1076 = vst.msk [vmem:[%s2357_s1 + $0xa0] ss:$-63 sm:$0x3] %vm437_vm11, %v475_v4   ;;  %1077 = vst.msk [vmem:[%s2357_s1 + $0x40] ss:$33 sm:$0xc] %vm437_vm11, %v475_v4  }
  0x9c   :  { %1032 = vst.msk [vmem:[%s2357_s1 + $0x58] ss:$-63 sm:$0x3] %vm71_vm8, %v335_v3   ;;  %1033 = vst.msk [vmem:[%s2357_s1 - $0x8] ss:$33 sm:$0xc] %vm71_vm8, %v335_v3  }
  0x9d   :  { %1034 = vst.msk [vmem:[%s2357_s1 - $0x68] ss:$33 sm:$0x70] %vm71_vm8, %v335_v3   ;;  %1035 = vst.msk [vmem:[%s2357_s1 + $0x18] sm:$0x80] %vm71_vm8, %v335_v3  }
  0x9e   :  { %1036 = vst.msk [vmem:[%s2357_s1 + $0x18] ss:$33 sm:$0x7] %vm79_vm10, %v335_v3   ;;  %1037 = vst.msk [vmem:[%s2357_s1 - $0x48] ss:$33 sm:$0x38] %vm79_vm10, %v335_v3  }
  0x9f   :  { %1038 = vst.msk [vmem:[%s2357_s1 - $0xa8] ss:$33 sm:$0xc0] %vm79_vm10, %v335_v3   ;;  %v429_v5 = vpop.permute.xlu0 %428  }
  0xa0   :  { %1078 = vst.msk [vmem:[%s2357_s1 - $0x20] ss:$33 sm:$0x70] %vm437_vm11, %v475_v4   ;;  %1079 = vst.msk [vmem:[%s2357_s1 + $0x60] sm:$0x80] %vm437_vm11, %v475_v4  }
  0xa1   :  { %1073 = vst.msk [vmem:[%s2357_s1 + $0x80] ss:$33 sm:$0x3] %vm67_vm3, %v475_v4   ;;  %1074 = vst.msk [vmem:[%s2357_s1 + $0x20] ss:$33 sm:$0x1c] %vm67_vm3, %v475_v4   ;;  %v557_v6 = vpop.permute.xlu1 %556  }
  0xa2   :  { %1075 = vst.msk [vmem:[%s2357_s1 - $0x40] ss:$33 sm:$0xe0] %vm67_vm3, %v475_v4   ;;  %1060 = vst.msk [vmem:[%s2357_s1 + $0x20] ss:$33 sm:$0x3] %vm67_vm3, %v429_v5  }
  0xa3   :  { %1063 = vst.msk [vmem:[%s2357_s1 + $0x40] ss:$-63 sm:$0x3] %vm437_vm11, %v429_v5   ;;  %1064 = vst.msk [vmem:[%s2357_s1 - $0x20] ss:$33 sm:$0xc] %vm437_vm11, %v429_v5  }
  0xa4   :  { %1065 = vst.msk [vmem:[%s2357_s1 - $0x80] ss:$33 sm:$0x70] %vm437_vm11, %v429_v5   ;;  %444 = vst.msk [vmem:[%s2357_s1] sm:$0x80] %vm437_vm11, %v429_v5  }
  0xa5   :  { %1061 = vst.msk [vmem:[%s2357_s1 - $0x40] ss:$33 sm:$0x1c] %vm67_vm3, %v429_v5   ;;  %1062 = vst.msk [vmem:[%s2357_s1 - $0xa0] ss:$33 sm:$0xe0] %vm67_vm3, %v429_v5   ;;  %v517_v7 = vpop.permute.xlu0 %516  }
  0xa6   :  { %1101 = vst.msk [vmem:[%s2357_s1 + $0x88] ss:$33 sm:$0x3] %vm437_vm11, %v557_v6   ;;  %1102 = vst.msk [vmem:[%s2357_s1 + $0x28] ss:$33 sm:$0x1c] %vm437_vm11, %v557_v6  }
  0xa7   :  { %1103 = vst.msk [vmem:[%s2357_s1 - $0x38] ss:$33 sm:$0xe0] %vm437_vm11, %v557_v6   ;;  %1089 = vst.msk [vmem:[%s2357_s1 + $0x28] ss:$33 sm:$0x3] %vm437_vm11, %v517_v7  }
  0xa8   :  { %1098 = vst.msk [vmem:[%s2357_s1 + $0x68] ss:$33 sm:$0x7] %vm67_vm3, %v557_v6   ;;  %1099 = vst.msk [vmem:[%s2357_s1 + $0x8] ss:$33 sm:$0x38] %vm67_vm3, %v557_v6  }
  0xa9   :  { %1100 = vst.msk [vmem:[%s2357_s1 - $0x58] ss:$33 sm:$0xc0] %vm67_vm3, %v557_v6   ;;  %1086 = vst.msk [vmem:[%s2357_s1 + $0x8] ss:$33 sm:$0x7] %vm67_vm3, %v517_v7   ;;  %v649_v8 = vpop.permute.xlu1 %648  }
  0xaa   :  { %1090 = vst.msk [vmem:[%s2357_s1 - $0x38] ss:$33 sm:$0x1c] %vm437_vm11, %v517_v7   ;;  %1091 = vst.msk [vmem:[%s2357_s1 - $0x98] ss:$33 sm:$0xe0] %vm437_vm11, %v517_v7  }
  0xab   :  { %1087 = vst.msk [vmem:[%s2357_s1 - $0x58] ss:$33 sm:$0x38] %vm67_vm3, %v517_v7   ;;  %1088 = vst.msk [vmem:[%s2357_s1 - $0xb8] ss:$33 sm:$0xc0] %vm67_vm3, %v517_v7  }
  0xac   :  { %1129 = vst.msk [vmem:[%s2357_s1 + $0x70] ss:$33 sm:$0x7] %vm437_vm11, %v649_v8   ;;  %1130 = vst.msk [vmem:[%s2357_s1 + $0x10] ss:$33 sm:$0x38] %vm437_vm11, %v649_v8  }
  0xad   :  { %1131 = vst.msk [vmem:[%s2357_s1 - $0x50] ss:$33 sm:$0xc0] %vm437_vm11, %v649_v8  }
  0xae   :  { %1125 = vst.msk [vmem:[%s2357_s1 + $0xb0] ss:$-63 sm:$0x3] %vm67_vm3, %v649_v8   ;;  %1126 = vst.msk [vmem:[%s2357_s1 + $0x50] ss:$33 sm:$0xc] %vm67_vm3, %v649_v8   ;;  %v602_v9 = vpop.permute.xlu0 %601  }
  0xaf   :  { %1127 = vst.msk [vmem:[%s2357_s1 - $0x10] ss:$33 sm:$0x70] %vm67_vm3, %v649_v8   ;;  %1128 = vst.msk [vmem:[%s2357_s1 + $0x70] sm:$0x80] %vm67_vm3, %v649_v8  }
  0xb0   :  { %1115 = vst.msk [vmem:[%s2357_s1 + $0x10] ss:$33 sm:$0x7] %vm437_vm11, %v602_v9   ;;  %1116 = vst.msk [vmem:[%s2357_s1 - $0x50] ss:$33 sm:$0x38] %vm437_vm11, %v602_v9  }
  0xb1   :  { %1117 = vst.msk [vmem:[%s2357_s1 - $0xb0] ss:$33 sm:$0xc0] %vm437_vm11, %v602_v9  }
  0xb2   :  { %1111 = vst.msk [vmem:[%s2357_s1 + $0x50] ss:$-63 sm:$0x3] %vm67_vm3, %v602_v9   ;;  %1112 = vst.msk [vmem:[%s2357_s1 - $0x10] ss:$33 sm:$0xc] %vm67_vm3, %v602_v9  }
  0xb3   :  { %1113 = vst.msk [vmem:[%s2357_s1 - $0x70] ss:$33 sm:$0x70] %vm67_vm3, %v602_v9   ;;  %1114 = vst.msk [vmem:[%s2357_s1 + $0x10] sm:$0x80] %vm67_vm3, %v602_v9  }
  0xb4   :  { %v743_v10 = vpop.permute.xlu1 %742  }
  0xb5   :  { %1156 = vst.msk [vmem:[%s2357_s1 + $0xb8] ss:$-63 sm:$0x3] %vm437_vm11, %v743_v10   ;;  %1157 = vst.msk [vmem:[%s2357_s1 + $0x58] ss:$33 sm:$0xc] %vm437_vm11, %v743_v10  }
  0xb6   :  { %1158 = vst.msk [vmem:[%s2357_s1 - $0x8] ss:$33 sm:$0x70] %vm437_vm11, %v743_v10   ;;  %1159 = vst.msk [vmem:[%s2357_s1 + $0x78] sm:$0x80] %vm437_vm11, %v743_v10  }
  0xb7   :  { %1153 = vst.msk [vmem:[%s2357_s1 + $0x98] ss:$33 sm:$0x3] %vm67_vm3, %v743_v10   ;;  %1154 = vst.msk [vmem:[%s2357_s1 + $0x38] ss:$33 sm:$0x1c] %vm67_vm3, %v743_v10  }
  0xb8   :  { %1155 = vst.msk [vmem:[%s2357_s1 - $0x28] ss:$33 sm:$0xe0] %vm67_vm3, %v743_v10  }
  0xb9   :  { %v696_v11 = vpop.permute.xlu0 %695  }
  0xba   :  { %v792_v12 = vpop.permute.xlu1 %791   ;;  %1142 = vst.msk [vmem:[%s2357_s1 + $0x58] ss:$-63 sm:$0x3] %vm437_vm11, %v696_v11   ;;  %1143 = vst.msk [vmem:[%s2357_s1 - $0x8] ss:$33 sm:$0xc] %vm437_vm11, %v696_v11  }
  0xbb   :  { %1144 = vst.msk [vmem:[%s2357_s1 - $0x68] ss:$33 sm:$0x70] %vm437_vm11, %v696_v11   ;;  %1145 = vst.msk [vmem:[%s2357_s1 + $0x18] sm:$0x80] %vm437_vm11, %v696_v11  }
  0xbc   :  { %1139 = vst.msk [vmem:[%s2357_s1 + $0x38] ss:$33 sm:$0x3] %vm67_vm3, %v696_v11   ;;  %1140 = vst.msk [vmem:[%s2357_s1 - $0x28] ss:$33 sm:$0x1c] %vm67_vm3, %v696_v11  }
  0xbd   :  { %1141 = vst.msk [vmem:[%s2357_s1 - $0x88] ss:$33 sm:$0xe0] %vm67_vm3, %v696_v11   ;;  %v772_v13 = vpop.permute.xlu0 %771  }
  0xbe   :  { %1169 = vst.msk [vmem:[%s2357_s1 + $0x80] ss:$33 sm:$0x3] %vm773_vm12, %v792_v12   ;;  %1170 = vst.msk [vmem:[%s2357_s1 + $0x20] ss:$33 sm:$0x1c] %vm773_vm12, %v792_v12   ;;  %v832_v14 = vpop.permute.xlu1 %831  }
  0xbf   :  { %1171 = vst.msk [vmem:[%s2357_s1 - $0x40] ss:$33 sm:$0xe0] %vm773_vm12, %v792_v12   ;;  %1163 = vst.msk [vmem:[%s2357_s1 + $0x20] ss:$33 sm:$0x3] %vm773_vm12, %v772_v13  }
  0xc0   :  { %1164 = vst.msk [vmem:[%s2357_s1 - $0x40] ss:$33 sm:$0x1c] %vm773_vm12, %v772_v13   ;;  %1165 = vst.msk [vmem:[%s2357_s1 - $0xa0] ss:$33 sm:$0xe0] %vm773_vm12, %v772_v13  }
  0xc1   :  { %1181 = vst.msk [vmem:[%s2357_s1 + $0x68] ss:$33 sm:$0x7] %vm773_vm12, %v832_v14   ;;  %1182 = vst.msk [vmem:[%s2357_s1 + $0x8] ss:$33 sm:$0x38] %vm773_vm12, %v832_v14   ;;  %v812_v15 = vpop.permute.xlu0 %811  }
  0xc2   :  { %1183 = vst.msk [vmem:[%s2357_s1 - $0x58] ss:$33 sm:$0xc0] %vm773_vm12, %v832_v14   ;;  %v884_v16 = vpop.permute.xlu1 %883   ;;  %1175 = vst.msk [vmem:[%s2357_s1 + $0x8] ss:$33 sm:$0x7] %vm773_vm12, %v812_v15  }
  0xc3   :  { %1176 = vst.msk [vmem:[%s2357_s1 - $0x58] ss:$33 sm:$0x38] %vm773_vm12, %v812_v15   ;;  %1177 = vst.msk [vmem:[%s2357_s1 - $0xb8] ss:$33 sm:$0xc0] %vm773_vm12, %v812_v15  }
  0xc4   :  { %1196 = vst.msk [vmem:[%s2357_s1 + $0xb0] ss:$-63 sm:$0x3] %vm773_vm12, %v884_v16   ;;  %1197 = vst.msk [vmem:[%s2357_s1 + $0x50] ss:$33 sm:$0xc] %vm773_vm12, %v884_v16  }
  0xc5   :  { %1198 = vst.msk [vmem:[%s2357_s1 - $0x10] ss:$33 sm:$0x70] %vm773_vm12, %v884_v16   ;;  %1199 = vst.msk [vmem:[%s2357_s1 + $0x70] sm:$0x80] %vm773_vm12, %v884_v16   ;;  %v857_v17 = vpop.permute.xlu0 %856  }
  0xc6   :  { %v926_v18 = vpop.permute.xlu1 %925   ;;  %1188 = vst.msk [vmem:[%s2357_s1 + $0x50] ss:$-63 sm:$0x3] %vm773_vm12, %v857_v17   ;;  %1189 = vst.msk [vmem:[%s2357_s1 - $0x10] ss:$33 sm:$0xc] %vm773_vm12, %v857_v17  }
  0xc7   :  { %1190 = vst.msk [vmem:[%s2357_s1 - $0x70] ss:$33 sm:$0x70] %vm773_vm12, %v857_v17   ;;  %1191 = vst.msk [vmem:[%s2357_s1 + $0x10] sm:$0x80] %vm773_vm12, %v857_v17  }
  0xc8   :  { %1209 = vst.msk [vmem:[%s2357_s1 + $0x98] ss:$33 sm:$0x3] %vm773_vm12, %v926_v18   ;;  %1210 = vst.msk [vmem:[%s2357_s1 + $0x38] ss:$33 sm:$0x1c] %vm773_vm12, %v926_v18  }
  0xc9   :  { %1211 = vst.msk [vmem:[%s2357_s1 - $0x28] ss:$33 sm:$0xe0] %vm773_vm12, %v926_v18   ;;  %v906_v19 = vpop.permute.xlu0 %905  }
  0xca   :  { %1203 = vst.msk [vmem:[%s2357_s1 + $0x38] ss:$33 sm:$0x3] %vm773_vm12, %v906_v19   ;;  %1204 = vst.msk [vmem:[%s2357_s1 - $0x28] ss:$33 sm:$0x1c] %vm773_vm12, %v906_v19  }
  0xcb   :  { %1205 = vst.msk [vmem:[%s2357_s1 - $0x88] ss:$33 sm:$0xe0] %vm773_vm12, %v906_v19  }

// kernel: custom-call
= control target key start
LH: loop header
LB: loop body
LE: loop exit
PB: predicated region body
PF: predicated region fallthrough
CT: control target
= control target key end

     0   :  { %s92_s0 = inlined_call_operand.vmem [shape: f32[2,2,104,128], index: 0, kind: input, shape index: {}]   ;;  %s93_s1 = inlined_call_operand.vmem [shape: f32[2,2,104,128], index: 1, kind: input, shape index: {}]   ;;  %s94_s2 = inlined_call_operand.hbm [shape: c64[2,2,104,128], index: 2, kind: output, shape index: {}]  }
   0x1   :  { %s3_s11 = scalar_lea.hbm %s94_s2, 6656 }
   0x2   :  { %4 = vsyncpa [#allocation0], 0  ;;  %s5_s14 = sshll.u32 %s92_s0, 4  ;;  %s6_s14 = int_to_ptr.vmem [resolvable:$true] %s5_s14 }
   0x3   :  { %s18_s15 = scalar_lea.vmem %s6_s14, 6656  ;;  %p23_p1 = scmp.lt.s32.totalorder %s6_s14, %s6_s14 }
   0x4   :  { %p19_p0 = scmp.ne.s32.totalorder %s6_s14, %s18_s15  ;;  %p24_p2 = scmp.lt.s32.totalorder %s18_s15, %s18_s15 }
   0x6   :  { %p25_p3 = por %p24_p2, %p23_p1 }
   0x8   :  { %p26_p4 = pnand %p25_p3, %p19_p0 }
   0xa   :  { %29 = shalt.err (!%p26_p4)  }
   0xb   :  { %8 = dma.vmem_to_hbm [thread:$0]  %s6_s14, 6656, %s94_s2, [#allocation0] }
   0xc   :  { %61 = dma.done.wait [#allocation0], 6656  }
   0xd   :  { %62 = vsyncadd [#allocation0], 4294960640 }
   0xe   :  { %10 = vsyncpa [#allocation0], 1 }
   0xf   :  { %11 = vsyncpa [#allocation1], 0  ;;  %s12_s0 = sshll.u32 %s93_s1, 4  ;;  %s13_s0 = int_to_ptr.vmem [resolvable:$true] %s12_s0 }
  0x10   :  { %s38_s20 = scalar_lea.vmem %s13_s0, 6656  ;;  %p43_p6 = scmp.lt.s32.totalorder %s13_s0, %s13_s0 }
  0x11   :  { %p39_p5 = scmp.ne.s32.totalorder %s13_s0, %s38_s20  ;;  %p44_p7 = scmp.lt.s32.totalorder %s38_s20, %s38_s20 }
  0x13   :  { %p45_p8 = por %p44_p7, %p43_p6 }
  0x15   :  { %p46_p9 = pnand %p45_p8, %p39_p5 }
  0x17   :  { %49 = shalt.err (!%p46_p9)  }
  0x18   :  { %15 = dma.vmem_to_hbm [thread:$0]  %s13_s0, 6656, %s3_s11, [#allocation1] }
  0x19   :  { %63 = dma.done.wait [#allocation1], 6656  }
  0x1a   :  { %64 = vsyncadd [#allocation1], 4294960640 }
  0x1b   :  { %17 = vsyncpa [#allocation1], 1 }

// kernel: _lambda_.1
= control target key start
LH: loop header
LB: loop body
LE: loop exit
PB: predicated region body
PF: predicated region fallthrough
CT: control target
= control target key end

     0   :  { %s3874_s0 = inlined_call_operand.vmem [shape: f32[12], index: 0, kind: input, shape index: {}]   ;;  %s3875_s1 = inlined_call_operand.vmem [shape: f32[2,3,128,128], index: 1, kind: input, shape index: {}]   ;;  %s3876_s2 = inlined_call_operand.vmem [shape: f32[3,128,128], index: 2, kind: input, shape index: {}]   ;;  %s3877_s3 = inlined_call_operand.vmem [shape: f32[3,128,128], index: 3, kind: input, shape index: {}]   ;;  %s3878_s4 = inlined_call_operand.hbm [shape: bf16[3,128,128], index: 4, kind: input, shape index: {}]   ;;  %s3879_s5 = inlined_call_operand.vmem [shape: f32[3,1,128], index: 5, kind: input, shape index: {}]   ;;  %s3880_s6 = inlined_call_operand.hbm [shape: bf16[3,128,256], index: 6, kind: input, shape index: {}]   ;;  %s3881_s7 = inlined_call_operand.vmem [shape: f32[3,1,256], index: 7, kind: input, shape index: {}]   ;;  %s3882_s8 = inlined_call_operand.hbm [shape: bf16[3,256,512], index: 8, kind: input, shape index: {}]   ;;  %s3883_s9 = inlined_call_operand.vmem [shape: f32[3,1,512], index: 9, kind: input, shape index: {}]   ;;  %s3884_s10 = inlined_call_operand.vmem [shape: f32[3,2,128,256], index: 10, kind: output, shape index: {}]  }
   0x1   :  { %3890 = sst [smem:[#allocation17_spill]] %s3874_s0 }
   0x2   :  { %3891 = sst [smem:[#allocation18_spill]] %s3878_s4 }
   0x3   :  { %3892 = sst [smem:[#allocation19_spill]] %s3879_s5 }
   0x4   :  { %3893 = sst [smem:[#allocation20_spill]] %s3880_s6 }
   0x5   :  { %3894 = sst [smem:[#allocation21_spill]] %s3881_s7 }
   0x6   :  { %3895 = sst [smem:[#allocation22_spill]] %s3883_s9 }
   0x7   :  { %3896 = sst [smem:[#allocation23_spill]] %s3884_s10 }
   0x8   :  { %15 = vsyncpa [#allocation4], 0 }
   0x9   :  { %16 = vsyncpa [#allocation3], 0 }
   0xa   :  { %18 = vsyncpa [#allocation3 + $0x1], 0 }
   0xb   :  { %19 = vsyncpa [#allocation7], 0 }
   0xc   :  { %21 = vsyncpa [#allocation7 + $0x1], 0  ;;  %s3197_s13 = smov 0   ;;  %s3199_s14 = smov 0  }
   0xd   :  { %s3201_s15 = smov 0   ;;  %s3203_s16 = smov 0  }
   0xe   :  { %s3205_s17 = smov 0   ;;  %s3207_s18 = smov 0  }
   0xf   :  { %s3209_s19 = smov 0   ;;  %s3211_s20 = smov 0  }
  0x10 LB: > { %3897 = sst [smem:[#allocation12_spill]] %s3109_s15  ;;  %s42_s21 = sadd.s32 1, %s3121_s18  ;;  %s3129_s20 = sphi %s3211_s20, %s27_s20   ;;  %s3125_s19 = sphi %s3209_s19, %s3925_s19   ;;  %s3121_s18 = sphi %s3207_s18, %s3920_s18   ;;  %s3117_s17 = sphi %s3205_s17, %s3924_s17   ;;  %s3113_s16 = sphi %s3203_s16, %s3919_s16   ;;  %s3109_s15 = sphi %s3201_s15, %s3918_s15   ;;  %s3105_s14 = sphi %s3199_s14, %s3923_s14   ;;  %s3101_s13 = sphi %s3197_s13, %s3922_s13  }
  0x11   : > { %3898 = sst [smem:[#allocation13_spill]] %s3121_s18  ;;  %s46_s22 = sadd.s32 1, %s3125_s19 }
  0x12   : > { %p44_p0 = scmp.ge.s32.totalorder %s42_s21, 2  ;;  %s156_s23 = sadd.s32 1, %s3109_s15 }
  0x13   : > { %p163_p1 = scmp.ne.s32.totalorder %s3109_s15, %s3105_s14  ;;  %p164_p2 = scmp.eq.s32.totalorder %s3129_s20, 0 }
  0x14   : > { %s3927_s21 = smov (%p44_p0, %s42_s21), 0  ;;  %s3929_s22 = smov (!%p44_p0, %s46_s22), %s3125_s19 }
  0x15   : > { %3899 = sst [smem:[#allocation14_spill]] %s3927_s21  ;;  %p165_p3 = por %p164_p2, %p163_p1 }
  0x16   : > { %p48_p4 = scmp.ge.s32.totalorder %s3929_s22, 3  ;;  %p2594_p5 = scmp.lt.s32.totalorder %s3129_s20, 6 }
  0x17   : > { %s3248_s24 = sand.u32 1, %s3109_s15   ;;  %s424_s25 = sand.u32 1, %s3129_s20  }
  0x18   : > { %s3931_s22 = smov (%p48_p4, %s3929_s22), 0  ;;  %p3253_p6 = pnand %p2594_p5, %p165_p3 }
  0x19   : > { %3900 = sst [smem:[#allocation15_spill]] %s3931_s22  ;;  %s153_s27 = ssub.s32 %s3125_s19, %s3931_s22 }
  0x1a   : > { %s2368_s28 = sshll.u32 %s3248_s24, 7  ;;  %p154_p7 = scmp.eq.s32.totalorder %s153_s27, 0 }
  0x1b   : > { %s2516_s29 = sshll.u32 %s3125_s19, 11  ;;  %s3903_s6 = sld [smem:[#allocation20_spill]] }
  0x1c   : > { %s3262_s30 = scalar_select %p154_p7, %s3109_s15, %s156_s23  }
  0x1d   : > { %s428_s18 = scalar_lea.vmem [#allocation6], %s2368_s28  ;;  %s3267_s9 = scalar_lea.sflag [#allocation7], %s424_s25 }
  0x1e   : > { %3902 = sst [smem:[#allocation16_spill]] %s3262_s30  ;;  %s435_s10 = sshll.u32 %s428_s18, 4  ;;  %s436_s10 = int_to_ptr.vmem [resolvable:$true] %s435_s10 }
  0x1f   : > { %p3888_p8 = pneg %p3253_p6  ;;  %s2969_s7 = scalar_lea.vmem %s436_s10, 2048 }
  0x20   : > { %p2970_p9 = scmp.ne.s32.totalorder %s436_s10, %s2969_s7  ;;  %s3131_s27 = smov [#allocation6]  }
  0x21   : > { %s434_s21 = scalar_lea.hbm %s3903_s6, %s2516_s29  ;;  %s2974_s23 = sshll.u32 %s3131_s27, 4  ;;  %s2975_s23 = int_to_ptr.vmem [resolvable:$false] %s2974_s23 }
  0x22   : > { %p2972_p10 = pnand %p2970_p9, %p3888_p8  ;;  %s2976_s22 = scalar_lea.vmem %s2975_s23, 4096 }
  0x23   : > { %p2977_p12 = scmp.lt.s32.totalorder %s436_s10, %s2975_s23  ;;  %p2978_p13 = scmp.lt.s32.totalorder %s2976_s22, %s2969_s7 }
  0x24   : > { %p2973_p11 = pneg %p2972_p10 }
  0x25   : > { %p2979_p0 = por %p2978_p13, %p2977_p12 }
  0x27   : > { %p2980_p1 = pnand %p2979_p0, %p2973_p11 }
  0x29   : > { %2983 = shalt.err (!%p2980_p1)
}
  0x2a   : > { %s3132_s18 = smov 128   ;;  %s3133_s25 = smov 8  }
  0x2b   : > { %2589 = dma.hbm_to_vmem [thread:$0]  (!%p3253_p6), %s434_s21, 2048, %s436_s10, %s3267_s9, %s3132_s18, %s3132_s18, %s3133_s25  }
  0x2c   : > { %s3887_s28 = sadd.s32 4294967295, %s3129_s20   ;;  %p169_p2 = scmp.ne.s32.totalorder %s3105_s14, %s3101_s13 }
  0x2d   : > { %p3282_p3 = scmp.eq.s32.totalorder %s3887_s28, 0  ;;  %p2362_p4 = scmp.ge.s32.totalorder %s3129_s20, 1 }
  0x2e   : > { %p340_p5 = scmp.lt.s32.totalorder %s3129_s20, 7  ;;  %s3907_s0 = sld [smem:[#allocation17_spill]] }
  0x2f   : > { %p3290_p7 = por %p3282_p3, %p169_p2  ;;  %s2365_s11 = sshll.u32 %s3248_s24, 6 }
  0x30   : > { %p3294_p9 = pnand %p2362_p4, %p340_p5  ;;  %s2515_s12 = sshll.u32 %s3125_s19, 10 }
  0x31   : > { %s3909_s4 = sld [smem:[#allocation18_spill]]  ;;  %s401_s28 = scalar_lea.vmem [#allocation5], %s2365_s11 }
  0x32   : > { %p2579_p10 = pneg %p3294_p9  ;;  %s408_s10 = sshll.u32 %s401_s28, 4  ;;  %s3316_s10 = int_to_ptr.vmem [resolvable:$true] %s408_s10 }
  0x34   : > { %s353_s21 = sshll.u32 %s3907_s0, 4  ;;  %p3307_p11 = pnand %p2579_p10, %p3282_p3  ;;  %s354_s21 = int_to_ptr.vmem [resolvable:$true] %s353_s21 }
  0x35   : > { %s2984_s13 = scalar_lea.vmem %s354_s21, 16  ;;  %p2992_p2 = scmp.lt.s32.totalorder %s354_s21, %s354_s21 }
  0x36   : > { %p2985_p12 = scmp.ne.s32.totalorder %s354_s21, %s2984_s13  ;;  %p2986_p13 = pneg %p3307_p11 }
  0x37   : > { %s3314_s25 = scalar_lea.hbm %s3909_s4, %s2515_s12  ;;  %p2993_p4 = scmp.lt.s32.totalorder %s2984_s13, %s2984_s13 }
  0x38   : > { %p2987_p0 = pnand %p2986_p13, %p2985_p12 }
  0x39   : > { %p2994_p5 = por %p2993_p4, %p2992_p2 }
  0x3a   : > { %p2988_p1 = pneg %p2987_p0 }
  0x3c   : > { %p2995_p10 = pnand %p2994_p5, %p2988_p1 }
  0x3e   : > { %2998 = shalt.err (!%p2995_p10)
}
  0x3f   : > { %s3134_s0 = smov [#allocation2]   ;;  %s398_s28 = scalar_lea.sflag [#allocation3], %s3248_s24 }
  0x40   : > { %2582 = dma.vmem_to_smem (!%p3307_p11), %s354_s21, 16, %s3134_s0, [#allocation4]  }
  0x41   : > { %s3012_s11 = scalar_lea.vmem %s3316_s10, 1024  ;;  %p3910_p12 = pneg %p3253_p6 }
  0x42   : > { %p3013_p8 = scmp.ne.s32.totalorder %s3316_s10, %s3012_s11  ;;  %s3135_s12 = smov [#allocation5]  }
  0x43   : > { %s3017_s23 = sshll.u32 %s3135_s12, 4  ;;  %s3018_s23 = int_to_ptr.vmem [resolvable:$false] %s3017_s23 }
  0x44   : > { %p3015_p13 = pnand %p3013_p8, %p3910_p12  ;;  %s3019_s18 = scalar_lea.vmem %s3018_s23, 2048 }
  0x45   : > { %p3020_p1 = scmp.lt.s32.totalorder %s3316_s10, %s3018_s23  ;;  %p3021_p2 = scmp.lt.s32.totalorder %s3019_s18, %s3012_s11 }
  0x46   : > { %p3016_p0 = pneg %p3015_p13 }
  0x47   : > { %p3022_p4 = por %p3021_p2, %p3020_p1 }
  0x49   : > { %p3023_p5 = pnand %p3022_p4, %p3016_p0 }
  0x4b   : > { %3026 = shalt.err (!%p3023_p5)
}
  0x4c   : > { %s3136_s27 = smov 64   ;;  %s3137_s0 = smov 4  }
  0x4d   : > { %2586 = dma.hbm_to_vmem [thread:$0]  (!%p3253_p6), %s3314_s25, 1024, %s3316_s10, %s398_s28, %s3136_s27, %s3136_s27, %s3137_s0  }
  0x4e   : > { %s2371_s21 = sshll.u32 %s3248_s24, 9  ;;  %s2517_s13 = sshll.u32 %s3125_s19, 13 }
  0x4f   : > { %s462_s23 = scalar_lea.hbm %s3882_s8, %s2517_s13  ;;  %s456_s11 = scalar_lea.vmem [#allocation8], %s2371_s21 }
  0x50   : > { %s463_s18 = sshll.u32 %s456_s11, 4  ;;  %p3911_p11 = pmov %p3910_p12  ;;  %s464_s18 = int_to_ptr.vmem [resolvable:$true] %s463_s18 }
  0x51   : > { %s3040_s6 = scalar_lea.vmem %s464_s18, 8192  ;;  %s3138_s30 = smov [#allocation8]  }
  0x52   : > { %p3041_p8 = scmp.ne.s32.totalorder %s464_s18, %s3040_s6  ;;  %s3045_s15 = sshll.u32 %s3138_s30, 4  ;;  %s3046_s15 = int_to_ptr.vmem [resolvable:$false] %s3045_s15 }
  0x53   : > { %s3047_s5 = scalar_lea.vmem %s3046_s15, 16384  ;;  %p3048_p13 = scmp.lt.s32.totalorder %s464_s18, %s3046_s15 }
  0x54   : > { %p3043_p10 = pnand %p3041_p8, %p3911_p11  ;;  %p3049_p0 = scmp.lt.s32.totalorder %s3047_s5, %s3040_s6 }
  0x56   : > { %p3044_p12 = pneg %p3043_p10  ;;  %p3050_p1 = por %p3049_p0, %p3048_p13 }
  0x58   : > { %p3051_p2 = pnand %p3050_p1, %p3044_p12 }
  0x5a   : > { %3054 = shalt.err (!%p3051_p2)
}
  0x5b   : > { %s3139_s4 = smov 256   ;;  %s3140_s24 = smov 16  }
  0x5c   : > { %2592 = dma.hbm_to_vmem [thread:$0]  (!%p3253_p6), %s462_s23, 8192, %s464_s18, %s3267_s9, %s3139_s4, %s3139_s4, %s3140_s24  }
  0x5d   : > { %482 = sbr.rel (%p3294_p9) target bundleno = 858 (0x35a), region = 60 }
  0x62   : > { %3088 = dma.done.wait (%p3282_p3), [#allocation4], 16  }
  0x63   : > { %3090 = vsyncadd (%p3282_p3), [#allocation4], 4294967280  ;;  %s488_s5 = sand.u32 1, %s3105_s14  }
  0x64   : > { %s2376_s6 = sshll.u32 %s488_s5, 6  ;;  %s489_s15 = scalar_lea.sflag [#allocation3], %s488_s5 }
  0x65   : > { %s3351_s30 = scalar_lea.vmem [#allocation5], %s2376_s6 }
  0x66   : > { %3092 = dma.done.wait (%p3290_p7), %s489_s15, 1024  }
  0x67   : > { %3094 = vsyncadd (%p3290_p7), %s489_s15, 4294966272  ;;  %s3912_s9 = sadd.s32 4294967295, %s3129_s20   ;;  %s2377_s29 = sshll.u32 %s488_s5, 7 }
  0x68   : > { %s497_s26 = sand.u32 1, %s3912_s9   ;;  %s3359_s7 = scalar_lea.vmem [#allocation6], %s2377_s29 }
  0x69   : > { %s498_s25 = scalar_lea.sflag [#allocation7], %s497_s26 }
  0x6a   : > { %3096 = dma.done.wait (%p3290_p7), %s498_s25, 10240  }
  0x6b   : > { %3098 = vsyncadd (%p3290_p7), %s498_s25, 4294957056  ;;  %s2378_s10 = sshll.u32 %s488_s5, 9 }
  0x6c   : > { %s3365_s28 = scalar_lea.vmem [#allocation8], %s2378_s10 }
  0x6d   : > { %515 = sfence }
  0x6e   : > { %v2668_v0 = vld [vmem:[%s3351_s30 + $0x38] sm:$0xff]   ;;  %p602_p6 = scmp.lt.s32.totalorder %s3113_s16, 1  ;;  %v2669_v1 = vld [vmem:[%s3351_s30 + $0x30] sm:$0xff]   ;;  %p604_p3 = scmp.lt.s32.totalorder %s3117_s17, 2  ;;  %v2670_v2 = vld [vmem:[%s3351_s30 + $0x28] sm:$0xff]  }
  0x6f   : > { %2536 = vmatprep.subr.bf16.mxu0 %v2668_v0  ;;  %v2671_v3 = vld [vmem:[%s3351_s30 + $0x20] sm:$0xff]   ;;  %s2390_s23 = sshll.u32 %s3117_s17, 1  ;;  %v2672_v4 = vld [vmem:[%s3351_s30 + $0x18] sm:$0xff]   ;;  %v2673_v5 = vld [vmem:[%s3351_s30 + $0x10] sm:$0xff]   ;;  %s3914_s18 = sld [smem:[#allocation21_spill]] }
  0x70   : > { %s3372_s22 = scalar_select %p602_p6, %s3113_s16, 1  ;;  %2537 = vmatpush3.bf16.msra.mxu0 %v2668_v0  ;;  %v2674_v15 = vld [vmem:[%s3351_s30 + $0x8] sm:$0xff]   ;;  %v2675_v36 = vld [vmem:[%s3351_s30] sm:$0xff]   ;;  %v2676_v54 = vld [vmem:[%s3359_s7 + $0x74] ss:$8 sps:$4 sm:$0xff]  }
  0x71   : > { %s3375_s27 = scalar_select %p604_p3, %s3117_s17, 2  ;;  %2538 = vmatprep.subr.bf16.mxu0 %v2669_v1  ;;  %1083 = vmatprep.subr.bf16.mxu1 %v2676_v54 }
  0x72   : > { %s2568_s0 = smul.u32 48, %s3372_s22  ;;  %s653_s11 = sadd.s32 %s3113_s16, %s2390_s23 }
  0x73   : > { %s2379_s21 = sshll.u32 %s3375_s27, 4  ;;  %s2391_s5 = sshll.u32 %s653_s11, 1 }
  0x74   : > { %s611_s13 = sadd.s32 %s2568_s0, %s2379_s21  ;;  %2539 = vmatpush3.bf16.msra.mxu0 %v2669_v1  ;;  %s655_s6 = sld [smem:[#allocation2 + %s2391_s5]] }
  0x75   : > { %2540 = vmatprep.subr.bf16.mxu0 %v2670_v2  ;;  %s2380_s12 = sshll.u32 %s611_s13, 3  ;;  %s656_s15 = sadd.s32 1, %s2391_s5 }
  0x76   : > { %s3386_s24 = scalar_lea.vmem %s3875_s1, %s2380_s12  ;;  %s2518_s16 = sshll.u32 %s3375_s27, 7 }
  0x77   : > { %s657_s17 = sld [smem:[#allocation2 + %s656_s15]]  ;;  %v659_v6 = vld [vmem:[%s3386_s24] sm:$0xff]  ;;  %s3395_s29 = scalar_lea.vmem %s3876_s2, %s2518_s16  ;;  %v660_v7 = vld [vmem:[%s3386_s24 + $0x8] sm:$0xff]  ;;  %v661_v8 = vld [vmem:[%s3386_s24 + $0x10] sm:$0xff] }
  0x78   : > { %2541 = vmatpush3.bf16.msra.mxu0 %v2670_v2  ;;  %v662_v9 = vld [vmem:[%s3386_s24 + $0x18] sm:$0xff]  ;;  %s3403_s0 = scalar_lea.vmem %s3877_s3, %s2518_s16  ;;  %v663_v10 = vld [vmem:[%s3386_s24 + $0x20] sm:$0xff]  ;;  %v664_v11 = vld [vmem:[%s3386_s24 + $0x28] sm:$0xff]  ;;  %s3913_s21 = sld [smem:[#allocation19_spill]] }
  0x79   : > { %2542 = vmatprep.subr.bf16.mxu0 %v2671_v3  ;;  %v665_v12 = vld [vmem:[%s3386_s24 + $0x30] sm:$0xff]  ;;  %v666_v14 = vld [vmem:[%s3386_s24 + $0x38] sm:$0xff]  ;;  %v676_v16 = vld [vmem:[%s3395_s29] sm:$0xff]  ;;  %s2385_s12 = sshll.u32 %s3375_s27, 1  ;;  %s2387_s16 = sshll.u32 %s3372_s22, 5 }
  0x7a   : > { %v3408_v13 = vstv %s655_s6  ;;  %v677_v17 = vld [vmem:[%s3395_s29 + $0x8] sm:$0xff]  ;;  %v693_v22 = vld [vmem:[%s3403_s0] sm:$0xff]  ;;  %v678_v24 = vld [vmem:[%s3395_s29 + $0x10] sm:$0xff]  ;;  %s631_s4 = scalar_lea.vmem %s3914_s18, %s2385_s12  ;;  %s3915_s6 = sld [smem:[#allocation22_spill]] }
  0x7b   : > { %v710_v18 = vsub.f32 %v659_v6, %v3408_v13  ;;  %v711_v19 = vsub.f32 %v660_v7, %v3408_v13  ;;  %v712_v21 = vsub.f32 %v661_v8, %v3408_v13  ;;  %v694_v23 = vld [vmem:[%s3403_s0 + $0x8] sm:$0xff]  ;;  %v713_v25 = vsub.f32 %v662_v9, %v3408_v13  ;;  %v679_v31 = vld [vmem:[%s3395_s29 + $0x18] sm:$0xff]  ;;  %v680_v33 = vld [vmem:[%s3395_s29 + $0x20] sm:$0xff] }
  0x7c   : > { %2543 = vmatpush3.bf16.msra.mxu0 %v2671_v3  ;;  %v714_v26 = vsub.f32 %v663_v10, %v3408_v13  ;;  %v715_v27 = vsub.f32 %v664_v11, %v3408_v13  ;;  %v716_v28 = vsub.f32 %v665_v12, %v3408_v13  ;;  %v681_v34 = vld [vmem:[%s3395_s29 + $0x28] sm:$0xff]  ;;  %v717_v35 = vsub.f32 %v666_v14, %v3408_v13  ;;  %v695_v37 = vld [vmem:[%s3403_s0 + $0x10] sm:$0xff]  ;;  %v696_v38 = vld [vmem:[%s3403_s0 + $0x18] sm:$0xff] }
  0x7d   : > { %2544 = vmatprep.subr.bf16.mxu0 %v2672_v4  ;;  %v3416_v20 = vstv %s657_s17  ;;  %v697_v40 = vld [vmem:[%s3403_s0 + $0x20] sm:$0xff]  ;;  %v698_v46 = vld [vmem:[%s3403_s0 + $0x28] sm:$0xff]  ;;  %v682_v52 = vld [vmem:[%s3395_s29 + $0x30] sm:$0xff]  ;;  %s2388_s17 = sshll.u32 %s3375_s27, 6 }
  0x7e   : > { %v727_v29 = vmul.f32 %v3416_v20, %v710_v18  ;;  %v728_v30 = vmul.f32 %v3416_v20, %v711_v19  ;;  %v729_v32 = vmul.f32 %v3416_v20, %v712_v21  ;;  %v730_v39 = vmul.f32 %v3416_v20, %v713_v25  ;;  %v667_v47 = vld [vmem:[%s3386_s24 + $0x40] sm:$0xff]  ;;  %v668_v48 = vld [vmem:[%s3386_s24 + $0x48] sm:$0xff]  ;;  %v683_v53 = vld [vmem:[%s3395_s29 + $0x38] sm:$0xff]  ;;  %s627_s13 = scalar_lea.vmem %s3913_s21, %s3375_s27  ;;  %s3702_s9 = sadd.s32 %s2388_s17, %s2387_s16 }
  0x7f   : > { %v731_v41 = vmul.f32 %v3416_v20, %v714_v26  ;;  %v732_v42 = vmul.f32 %v3416_v20, %v715_v27  ;;  %v733_v57 = vmul.f32 %v3416_v20, %v716_v28  ;;  %v734_v58 = vmul.f32 %v3416_v20, %v717_v35  ;;  %v669_v59 = vld [vmem:[%s3386_s24 + $0x50] sm:$0xff]  ;;  %v670_v60 = vld [vmem:[%s3386_s24 + $0x58] sm:$0xff]  ;;  %v671_v61 = vld [vmem:[%s3386_s24 + $0x60] sm:$0xff]  ;;  %s2389_s22 = sshll.u32 %s3702_s9, 3 }
  0x80   : > { %2545 = vmatpush3.bf16.msra.mxu0 %v2672_v4  ;;  %v743_v43 = vmul.f32 %v727_v29, %v676_v16  ;;  %v744_v44 = vmul.f32 %v728_v30, %v677_v17  ;;  %v745_v45 = vmul.f32 %v729_v32, %v678_v24  ;;  %v746_v49 = vmul.f32 %v730_v39, %v679_v31  ;;  %v684_v1 = vld [vmem:[%s3395_s29 + $0x40] sm:$0xff]  ;;  %v685_v2 = vld [vmem:[%s3395_s29 + $0x48] sm:$0xff]  ;;  %v2678_v4 = vld [vmem:[%s3359_s7 + $0x70] ss:$8 sps:$4 sm:$0xff]  }
  0x81   : > { %2546 = vmatprep.subr.bf16.mxu0 %v2673_v5  ;;  %v747_v50 = vmul.f32 %v731_v41, %v680_v33  ;;  %v748_v51 = vmul.f32 %v732_v42, %v681_v34  ;;  %v672_v3 = vld [vmem:[%s3386_s24 + $0x68] sm:$0xff]  ;;  %v718_v8 = vsub.f32 %v667_v47, %v3408_v13  ;;  %v719_v9 = vsub.f32 %v668_v48, %v3408_v13  ;;  %v699_v10 = vld [vmem:[%s3403_s0 + $0x30] sm:$0xff]  ;;  %v700_v11 = vld [vmem:[%s3403_s0 + $0x38] sm:$0xff] }
  0x82   : > { %v759_v55 = vadd.f32 %v743_v43, %v693_v22  ;;  %v760_v56 = vadd.f32 %v744_v44, %v694_v23  ;;  %v761_v62 = vadd.f32 %v745_v45, %v695_v37  ;;  %v762_v63 = vadd.f32 %v746_v49, %v696_v38  ;;  %v2681_v18 = vld [vmem:[%s3359_s7 + $0x60] ss:$8 sps:$4 sm:$0xff]   ;;  %1084 = vmatpush1.bf16.msra.mxu1 %v2678_v4  ;;  %v686_v31 = vld [vmem:[%s3395_s29 + $0x50] sm:$0xff]  ;;  %v687_v32 = vld [vmem:[%s3395_s29 + $0x58] sm:$0xff] }
  0x83   : > { %v763_v0 = vadd.f32 %v747_v50, %v697_v40  ;;  %v764_v7 = vadd.f32 %v748_v51, %v698_v46  ;;  %v749_v12 = vmul.f32 %v733_v57, %v682_v52  ;;  %v750_v14 = vmul.f32 %v734_v58, %v683_v53  ;;  %v701_v19 = vld [vmem:[%s3403_s0 + $0x40] sm:$0xff]  ;;  %v702_v21 = vld [vmem:[%s3403_s0 + $0x48] sm:$0xff]  ;;  %v673_v33 = vld [vmem:[%s3386_s24 + $0x70] sm:$0xff] }
  0x84   : > { %2547 = vmatpush3.bf16.msra.mxu0 %v2673_v5  ;;  %v2679_v5 = vld [vmem:[%s3359_s7 + $0x64] ss:$8 sps:$4 sm:$0xff]   ;;  %v775_v6 = vpack.c.bf16 %v760_v56, %v759_v55  ;;  %v735_v16 = vmul.f32 %v3416_v20, %v718_v8  ;;  %v736_v17 = vmul.f32 %v3416_v20, %v719_v9  ;;  %v720_v22 = vsub.f32 %v669_v59, %v3408_v13  ;;  %v674_v34 = vld [vmem:[%s3386_s24 + $0x78] sm:$0xff]  ;;  %v703_v44 = vld [vmem:[%s3403_s0 + $0x50] sm:$0xff] }
  0x85   : > { %2548 = vmatprep.subr.bf16.mxu0 %v2674_v15  ;;  %v721_v23 = vsub.f32 %v670_v60, %v3408_v13  ;;  %v722_v24 = vsub.f32 %v671_v61, %v3408_v13  ;;  %v777_v25 = vpack.c.bf16 %v764_v7, %v763_v0  ;;  %v723_v28 = vsub.f32 %v672_v3, %v3408_v13  ;;  %v688_v37 = vld [vmem:[%s3395_s29 + $0x60] sm:$0xff]  ;;  %v689_v38 = vld [vmem:[%s3395_s29 + $0x68] sm:$0xff]  ;;  %v704_v45 = vld [vmem:[%s3403_s0 + $0x58] sm:$0xff] }
  0x86   : > { %2552 = vmatprep.mubr.bf16.mxu0 %v775_v6  ;;  %v751_v26 = vmul.f32 %v735_v16, %v684_v1  ;;  %v752_v27 = vmul.f32 %v736_v17, %v685_v2  ;;  %1085 = vmatprep.subr.bf16.mxu1 %v2679_v5  ;;  %v765_v29 = vadd.f32 %v749_v12, %v699_v10  ;;  %v705_v48 = vld [vmem:[%s3403_s0 + $0x60] sm:$0xff]  ;;  %v706_v49 = vld [vmem:[%s3403_s0 + $0x68] sm:$0xff]  ;;  %v690_v55 = vld [vmem:[%s3395_s29 + $0x70] sm:$0xff] }
  0x87   : > { %v766_v30 = vadd.f32 %v750_v14, %v700_v11  ;;  %v737_v35 = vmul.f32 %v3416_v20, %v720_v22  ;;  %v739_v39 = vmul.f32 %v3416_v20, %v722_v24  ;;  %v740_v42 = vmul.f32 %v3416_v20, %v723_v28  ;;  %1086 = vmatpush1.bf16.msra.mxu1 %v2681_v18  ;;  %v691_v56 = vld [vmem:[%s3395_s29 + $0x78] sm:$0xff]  ;;  %v2685_v8 = vld [vmem:[%s3359_s7 + $0x44] ss:$8 sps:$4 sm:$0xff]   ;;  %v2687_v9 = vld [vmem:[%s3359_s7 + $0x40] ss:$8 sps:$4 sm:$0xff]   ;;  %s3916_s29 = sld [smem:[#allocation23_spill]] }
  0x88   : > { %2549 = vmatpush3.bf16.msra.mxu0 %v2674_v15  ;;  %v776_v15 = vpack.c.bf16 %v762_v63, %v761_v62  ;;  %v767_v40 = vadd.f32 %v751_v26, %v701_v19  ;;  %v768_v41 = vadd.f32 %v752_v27, %v702_v21  ;;  %v724_v50 = vsub.f32 %v673_v33, %v3408_v13  ;;  %v707_v63 = vld [vmem:[%s3403_s0 + $0x70] sm:$0xff]  ;;  %v2691_v12 = vld [vmem:[%s3359_s7 + $0x24] ss:$8 sps:$4 sm:$0xff]   ;;  %v2693_v14 = vld [vmem:[%s3359_s7 + $0x20] ss:$8 sps:$4 sm:$0xff]  }
  0x89   : > { %2550 = vmatprep.subr.bf16.mxu0 %v2675_v36  ;;  %v778_v43 = vpack.c.bf16 %v766_v30, %v765_v29  ;;  %v753_v46 = vmul.f32 %v737_v35, %v686_v31  ;;  %v725_v51 = vsub.f32 %v674_v34, %v3408_v13  ;;  %v755_v53 = vmul.f32 %v739_v39, %v688_v37  ;;  %v708_v13 = vld [vmem:[%s3403_s0 + $0x78] sm:$0xff]  ;;  %v2697_v18 = vld [vmem:[%s3359_s7 + $0x4] ss:$8 sps:$4 sm:$0xff]   ;;  %v2703_v22 = vld [vmem:[%s3365_s28 + $0xe0] ss:$16 sps:$4 sm:$0xff]  }
  0x8a   : > { %v779_v52 = vpack.c.bf16 %v768_v41, %v767_v40  ;;  %v756_v54 = vmul.f32 %v740_v42, %v689_v38  ;;  %v741_v59 = vmul.f32 %v3416_v20, %v724_v50  ;;  %v2682_v6 = vld [vmem:[%s3359_s7 + $0x54] ss:$8 sps:$4 sm:$0xff]   ;;  %v2684_v7 = vld [vmem:[%s3359_s7 + $0x50] ss:$8 sps:$4 sm:$0xff]   ;;  %v3141_v19 = vmov 0  }
  0x8b   : > { %v769_v57 = vadd.f32 %v753_v46, %v703_v44  ;;  %v742_v60 = vmul.f32 %v3416_v20, %v725_v51  ;;  %v771_v61 = vadd.f32 %v755_v53, %v705_v48  ;;  %1087 = vmatprep.subr.bf16.mxu1 %v2682_v6  ;;  %v2688_v10 = vld [vmem:[%s3359_s7 + $0x34] ss:$8 sps:$4 sm:$0xff]   ;;  %v2690_v11 = vld [vmem:[%s3359_s7 + $0x30] ss:$8 sps:$4 sm:$0xff]   ;;  %1115 = vmatprep.mubr.bf16.mxu1 %v3141_v19  ;;  %v3535_v50 = vld [vmem:[%s627_s13] ss:$0 sm:$0xff] }
  0x8c   : > { %2551 = vmatpush3.bf16.msra.mxu0 %v2675_v36  ;;  %v738_v36 = vmul.f32 %v3416_v20, %v721_v23  ;;  %v772_v62 = vadd.f32 %v756_v54, %v706_v49  ;;  %v757_v1 = vmul.f32 %v741_v59, %v690_v55  ;;  %1088 = vmatpush1.bf16.msra.mxu1 %v2684_v7  ;;  %v2694_v16 = vld [vmem:[%s3359_s7 + $0x14] ss:$8 sps:$4 sm:$0xff]   ;;  %v2696_v17 = vld [vmem:[%s3359_s7 + $0x10] ss:$8 sps:$4 sm:$0xff]  }
  0x8d   : > { %v758_v2 = vmul.f32 %v742_v60, %v691_v56  ;;  %1089 = vmatprep.subr.bf16.mxu1 %v2685_v8  ;;  %v2702_v21 = vld [vmem:[%s3365_s28 + $0xec] ss:$16 sps:$4 sm:$0xff]   ;;  %v2705_v23 = vld [vmem:[%s3365_s28 + $0xe4] ss:$16 sps:$4 sm:$0xff]   ;;  %v2715_v27 = vld [vmem:[%s3365_s28 + $0xa0] ss:$16 sps:$4 sm:$0xff]   ;;  %s3730_s25 = scalar_lea.vmem %s3916_s29, %s2389_s22 }
  0x8e   : > { %v754_v47 = vmul.f32 %v738_v36, %v687_v32  ;;  %v781_v3 = vpack.c.bf16 %v772_v62, %v771_v61  ;;  %v773_v4 = vadd.f32 %v757_v1, %v707_v63  ;;  %v2711_v24 = vld [vmem:[%s3365_s28 + $0xc4] ss:$16 sps:$4 sm:$0xff]   ;;  %1618 = vmatprep.subr.bf16.mxu0 %v2705_v23  ;;  %v2721_v29 = vld [vmem:[%s3365_s28 + $0x80] ss:$16 sps:$4 sm:$0xff]   ;;  %v2700_v1 = vld [vmem:[%s3365_s28 + $0xe8] ss:$16 sps:$4 sm:$0xff]  }
  0x8f   : > { %2553 = vmatmul.mubr.bf16.vlgmr.msra.gmra.mxu0 %v776_v15  ;;  %v774_v5 = vadd.f32 %v758_v2, %v708_v13  ;;  %v2699_v15 = vld [vmem:[%s3359_s7] ss:$8 sps:$4 sm:$0xff]   ;;  %v2717_v26 = vld [vmem:[%s3365_s28 + $0xa4] ss:$16 sps:$4 sm:$0xff]   ;;  %v2714_v7 = vld [vmem:[%s3365_s28 + $0xac] ss:$16 sps:$4 sm:$0xff]  }
  0x90   : > { %2556 = vmatprep.mubr.bf16.mxu0 %v777_v25  ;;  %v770_v58 = vadd.f32 %v754_v47, %v704_v45  ;;  %1090 = vmatpush1.bf16.msra.mxu1 %v2687_v9  ;;  %v2709_v25 = vld [vmem:[%s3365_s28 + $0xc0] ss:$16 sps:$4 sm:$0xff]   ;;  %v2723_v28 = vld [vmem:[%s3365_s28 + $0x84] ss:$16 sps:$4 sm:$0xff]  }
  0x91   : > { %v782_v20 = vpack.c.bf16 %v774_v5, %v773_v4  ;;  %1091 = vmatprep.subr.bf16.mxu1 %v2688_v10  ;;  %1619 = vmatpush1.bf16.msra.mxu0 %v2703_v22  ;;  %v2729_v30 = vld [vmem:[%s3365_s28 + $0x64] ss:$16 sps:$4 sm:$0xff]   ;;  %v2727_v31 = vld [vmem:[%s3365_s28 + $0x60] ss:$16 sps:$4 sm:$0xff]   ;;  %v2726_v22 = vld [vmem:[%s3365_s28 + $0x6c] ss:$16 sps:$4 sm:$0xff]  }
  0x92   : > { %v780_v0 = vpack.c.bf16 %v770_v58, %v769_v57  ;;  %1620 = vmatprep.subr.bf16.mxu0 %v2711_v24  ;;  %v2735_v32 = vld [vmem:[%s3365_s28 + $0x44] ss:$16 sps:$4 sm:$0xff]   ;;  %v2733_v33 = vld [vmem:[%s3365_s28 + $0x40] ss:$16 sps:$4 sm:$0xff]  }
  0x93   : > { %v2741_v34 = vld [vmem:[%s3365_s28 + $0x24] ss:$16 sps:$4 sm:$0xff]   ;;  %v2739_v35 = vld [vmem:[%s3365_s28 + $0x20] ss:$16 sps:$4 sm:$0xff]  }
  0x94   : > { %1092 = vmatpush1.bf16.msra.mxu1 %v2690_v11  ;;  %v2747_v36 = vld [vmem:[%s3365_s28 + $0x4] ss:$16 sps:$4 sm:$0xff]   ;;  %v2745_v37 = vld [vmem:[%s3365_s28] ss:$16 sps:$4 sm:$0xff]   ;;  %v2712_v11 = vld [vmem:[%s3365_s28 + $0xa8] ss:$16 sps:$4 sm:$0xff]  }
  0x95   : > { %1093 = vmatprep.subr.bf16.mxu1 %v2691_v12  ;;  %1621 = vmatpush1.bf16.msra.mxu0 %v2709_v25  ;;  %v2753_v38 = vld [vmem:[%s3365_s28 + $0x1e4] ss:$16 sps:$4 sm:$0xff]   ;;  %v2751_v39 = vld [vmem:[%s3365_s28 + $0x1e0] ss:$16 sps:$4 sm:$0xff]   ;;  %v2724_v25 = vld [vmem:[%s3365_s28 + $0x68] ss:$16 sps:$4 sm:$0xff]  }
  0x96   : > { %1622 = vmatprep.subr.bf16.mxu0 %v2717_v26  ;;  %v2759_v40 = vld [vmem:[%s3365_s28 + $0x1c4] ss:$16 sps:$4 sm:$0xff]   ;;  %v2757_v41 = vld [vmem:[%s3365_s28 + $0x1c0] ss:$16 sps:$4 sm:$0xff]  }
  0x97   : > { %2557 = vmatmul.mubr.bf16.gmra.mxu0 %v778_v43  ;;  %v2765_v42 = vld [vmem:[%s3365_s28 + $0x1a4] ss:$16 sps:$4 sm:$0xff]   ;;  %v2763_v43 = vld [vmem:[%s3365_s28 + $0x1a0] ss:$16 sps:$4 sm:$0xff]  }
  0x98   : > { %2560 = vmatprep.mubr.bf16.mxu0 %v779_v52  ;;  %1094 = vmatpush1.bf16.msra.mxu1 %v2693_v14  ;;  %v2771_v44 = vld [vmem:[%s3365_s28 + $0x184] ss:$16 sps:$4 sm:$0xff]   ;;  %v2769_v45 = vld [vmem:[%s3365_s28 + $0x180] ss:$16 sps:$4 sm:$0xff]   ;;  %v2720_v14 = vld [vmem:[%s3365_s28 + $0x8c] ss:$16 sps:$4 sm:$0xff]  }
  0x99   : > { %1095 = vmatprep.subr.bf16.mxu1 %v2694_v16  ;;  %1623 = vmatpush1.bf16.msra.mxu0 %v2715_v27  ;;  %v2777_v46 = vld [vmem:[%s3365_s28 + $0x164] ss:$16 sps:$4 sm:$0xff]   ;;  %v2775_v48 = vld [vmem:[%s3365_s28 + $0x160] ss:$16 sps:$4 sm:$0xff]   ;;  %v2732_v27 = vld [vmem:[%s3365_s28 + $0x4c] ss:$16 sps:$4 sm:$0xff]  }
  0x9a   : > { %1624 = vmatprep.subr.bf16.mxu0 %v2723_v28 }
  0x9c   : > { %1096 = vmatpush1.bf16.msra.mxu1 %v2696_v17 }
  0x9d   : > { %1097 = vmatprep.subr.bf16.mxu1 %v2697_v18  ;;  %1625 = vmatpush1.bf16.msra.mxu0 %v2721_v29  ;;  %v2718_v18 = vld [vmem:[%s3365_s28 + $0x88] ss:$16 sps:$4 sm:$0xff]  }
  0x9e   : > { %1626 = vmatprep.subr.bf16.mxu0 %v2729_v30  ;;  %v2730_v30 = vld [vmem:[%s3365_s28 + $0x48] ss:$16 sps:$4 sm:$0xff]  }
  0x9f   : > { %2561 = vmatmul.mubr.bf16.gmra.mxu0 %v780_v0 }
  0xa0   : > { %2564 = vmatprep.mubr.bf16.mxu0 %v781_v3  ;;  %1098 = vmatpush1.bf16.msra.mxu1 %v2699_v15  ;;  %v2708_v3 = vld [vmem:[%s3365_s28 + $0xcc] ss:$16 sps:$4 sm:$0xff]  }
  0xa1   : > { %1731 = vmatprep.subr.bf16.mxu1 %v2702_v21  ;;  %1627 = vmatpush1.bf16.msra.mxu0 %v2727_v31 }
  0xa2   : > { %1628 = vmatprep.subr.bf16.mxu0 %v2735_v32 }
  0xa5   : > { %1629 = vmatpush1.bf16.msra.mxu0 %v2733_v33  ;;  %v2738_v33 = vld [vmem:[%s3365_s28 + $0x2c] ss:$16 sps:$4 sm:$0xff]  }
  0xa6   : > { %1630 = vmatprep.subr.bf16.mxu0 %v2741_v34 }
  0xa7   : > { %2565 = vmatmul.mubr.bf16.gmra.mxu0 %v782_v20  ;;  %v2706_v20 = vld [vmem:[%s3365_s28 + $0xc8] ss:$16 sps:$4 sm:$0xff]  }
  0xa9   : > { %1631 = vmatpush1.bf16.msra.mxu0 %v2739_v35 }
  0xaa   : > { %1632 = vmatprep.subr.bf16.mxu0 %v2747_v36  ;;  %v2736_v36 = vld [vmem:[%s3365_s28 + $0x28] ss:$16 sps:$4 sm:$0xff]  }
  0xad   : > { %1633 = vmatpush1.bf16.msra.mxu0 %v2745_v37 }
  0xae   : > { %1634 = vmatprep.subr.bf16.mxu0 %v2753_v38  ;;  %v2744_v38 = vld [vmem:[%s3365_s28 + $0xc] ss:$16 sps:$4 sm:$0xff]  }
  0xb1   : > { %1635 = vmatpush2.bf16.msra.mxu0 %v2751_v39 }
  0xb2   : > { %1636 = vmatprep.subr.bf16.mxu0 %v2759_v40 }
  0xb5   : > { %1637 = vmatpush2.bf16.msra.mxu0 %v2757_v41  ;;  %v2742_v41 = vld [vmem:[%s3365_s28 + $0x8] ss:$16 sps:$4 sm:$0xff]  }
  0xb6   : > { %1638 = vmatprep.subr.bf16.mxu0 %v2765_v42 }
  0xb9   : > { %1639 = vmatpush2.bf16.msra.mxu0 %v2763_v43 }
  0xba   : > { %1640 = vmatprep.subr.bf16.mxu0 %v2771_v44  ;;  %v2750_v44 = vld [vmem:[%s3365_s28 + $0x1ec] ss:$16 sps:$4 sm:$0xff]  }
  0xbd   : > { %1641 = vmatpush2.bf16.msra.mxu0 %v2769_v45 }
  0xbe   : > { %1642 = vmatprep.subr.bf16.mxu0 %v2777_v46  ;;  %v2748_v46 = vld [vmem:[%s3365_s28 + $0x1e8] ss:$16 sps:$4 sm:$0xff]  }
  0xc1   : > { %1643 = vmatpush2.bf16.msra.mxu0 %v2775_v48  ;;  %v2756_v48 = vld [vmem:[%s3365_s28 + $0x1cc] ss:$16 sps:$4 sm:$0xff]  }
 0x14f   : > { %v2554_v47 = vpop.f32.mrf.mxu0 }
 0x150   : > { %v897_v59 = vadd.f32 %v2554_v47, %v3535_v50 }
 0x151   : > { %v888_v49 = vpop.f32.mrf.mxu0 }
 0x152   : > { %v889_v51 = vadd.f32 %v3535_v50, %v888_v49 }
 0x153   : > { %v2555_v52 = vpop.f32.mrf.mxu0 }
 0x154   : > { %2796 = vtanh.f32 %v889_v51  ;;  %v900_v57 = vadd.f32 %v2555_v52, %v3535_v50  ;;  %v2754_v51 = vld [vmem:[%s3365_s28 + $0x1c8] ss:$16 sps:$4 sm:$0xff]  }
 0x155   : > { %v891_v53 = vpop.f32.mrf.mxu0 }
 0x156   : > { %v892_v54 = vadd.f32 %v3535_v50, %v891_v53 }
 0x157   : > { %v2558_v55 = vpop.f32.mrf.mxu0 }
 0x158   : > { %2798 = vtanh.f32 %v892_v54  ;;  %v913_v5 = vadd.f32 %v2558_v55, %v3535_v50  ;;  %v2762_v54 = vld [vmem:[%s3365_s28 + $0x1ac] ss:$16 sps:$4 sm:$0xff]  }
 0x159   : > { %v904_v56 = vpop.f32.mrf.mxu0  ;;  %2800 = vtanh.f32 %v900_v57 }
 0x15a   : > { %2802 = vtanh.f32 %v897_v59  ;;  %v905_v61 = vadd.f32 %v3535_v50, %v904_v56  ;;  %v2760_v56 = vld [vmem:[%s3365_s28 + $0x1a8] ss:$16 sps:$4 sm:$0xff]  }
 0x15b   : > { %v2559_v58 = vpop.f32.mrf.mxu0  ;;  %v2766_v59 = vld [vmem:[%s3365_s28 + $0x188] ss:$16 sps:$4 sm:$0xff]  }
 0x15c   : > { %2804 = vtanh.f32 %v905_v61  ;;  %v916_v6 = vadd.f32 %v2559_v58, %v3535_v50  ;;  %v2768_v58 = vld [vmem:[%s3365_s28 + $0x18c] ss:$16 sps:$4 sm:$0xff]  }
 0x15d   : > { %v907_v60 = vpop.f32.mrf.mxu0 }
 0x15e   : > { %v908_v62 = vadd.f32 %v3535_v50, %v907_v60  ;;  %v2774_v60 = vld [vmem:[%s3365_s28 + $0x16c] ss:$16 sps:$4 sm:$0xff]  }
 0x15f   : > { %v2562_v63 = vpop.f32.mrf.mxu0 }
 0x160   : > { %2806 = vtanh.f32 %v908_v62  ;;  %v929_v29 = vadd.f32 %v2562_v63, %v3535_v50  ;;  %v2772_v62 = vld [vmem:[%s3365_s28 + $0x168] ss:$16 sps:$4 sm:$0xff]  }
 0x161   : > { %v2797_v13 = vpop.eup %2796  ;;  %v920_v4 = vpop.f32.mrf.mxu0  ;;  %2808 = vtanh.f32 %v913_v5  ;;  %v2781_v5 = vld [vmem:[%s3365_s28 + $0x140] ss:$16 sps:$4 sm:$0xff]  }
 0x162   : > { %2810 = vtanh.f32 %v916_v6  ;;  %v921_v17 = vadd.f32 %v3535_v50, %v920_v4  ;;  %v2783_v4 = vld [vmem:[%s3365_s28 + $0x144] ss:$16 sps:$4 sm:$0xff]  }
 0x163   : > { %v2563_v9 = vpop.f32.mrf.mxu0  ;;  %1644 = vmatprep.subr.bf16.mxu0 %v2783_v4  ;;  %v2789_v6 = vld [vmem:[%s3365_s28 + $0x124] ss:$16 sps:$4 sm:$0xff]  }
 0x164   : > { %2812 = vtanh.f32 %v921_v17  ;;  %v932_v32 = vadd.f32 %v2563_v9, %v3535_v50  ;;  %1645 = vmatpush2.bf16.msra.mxu0 %v2781_v5  ;;  %v2795_v9 = vld [vmem:[%s3365_s28 + $0x104] ss:$16 sps:$4 sm:$0xff]  }
 0x165   : > { %v2799_v0 = vpop.eup %2798  ;;  %v923_v16 = vpop.f32.mrf.mxu0  ;;  %1646 = vmatprep.subr.bf16.mxu0 %v2789_v6 }
 0x166   : > { %v967_v2 = vpack.c.bf16 %v2799_v0, %v2797_v13  ;;  %v2801_v8 = vpop.eup %2800  ;;  %v924_v21 = vadd.f32 %v3535_v50, %v923_v16  ;;  %v2780_v13 = vld [vmem:[%s3365_s28 + $0x14c] ss:$16 sps:$4 sm:$0xff]   ;;  %v2778_v0 = vld [vmem:[%s3365_s28 + $0x148] ss:$16 sps:$4 sm:$0xff]  }
 0x167   : > { %v2803_v10 = vpop.eup %2802  ;;  %v2566_v24 = vpop.f32.mrf.mxu0 }
 0x168   : > { %1116 = vmatmul.mubr.bf16.vlgmr.msra.gmra.mxu1 %v967_v2  ;;  %v968_v12 = vpack.c.bf16 %v2801_v8, %v2803_v10  ;;  %2814 = vtanh.f32 %v924_v21  ;;  %v945_v49 = vadd.f32 %v2566_v24, %v3535_v50  ;;  %v2792_v8 = vld [vmem:[%s3365_s28 + $0x10c] ss:$16 sps:$4 sm:$0xff]   ;;  %v2790_v10 = vld [vmem:[%s3365_s28 + $0x108] ss:$16 sps:$4 sm:$0xff]  }
 0x169   : > { %1125 = vmatprep.mubr.bf16.mxu1 %v3141_v19  ;;  %1732 = vmatpush1.bf16.msra.mxu1 %v2700_v1  ;;  %v2805_v15 = vpop.eup %2804  ;;  %v936_v28 = vpop.f32.mrf.mxu0  ;;  %2816 = vtanh.f32 %v929_v29 }
 0x16a   : > { %1733 = vmatprep.subr.bf16.mxu1 %v2708_v3  ;;  %2818 = vtanh.f32 %v932_v32  ;;  %v937_v40 = vadd.f32 %v3535_v50, %v936_v28 }
 0x16b   : > { %v2567_v35 = vpop.f32.mrf.mxu0 }
 0x16c   : > { %2820 = vtanh.f32 %v937_v40  ;;  %v948_v53 = vadd.f32 %v2567_v35, %v3535_v50 }
 0x16d   : > { %1734 = vmatpush1.bf16.msra.mxu1 %v2706_v20  ;;  %v2807_v23 = vpop.eup %2806  ;;  %v939_v39 = vpop.f32.mrf.mxu0  ;;  %v2786_v20 = vld [vmem:[%s3365_s28 + $0x12c] ss:$16 sps:$4 sm:$0xff]  }
 0x16e   : > { %1735 = vmatprep.subr.bf16.mxu1 %v2714_v7  ;;  %v969_v26 = vpack.c.bf16 %v2807_v23, %v2805_v15  ;;  %v2809_v31 = vpop.eup %2808  ;;  %v940_v43 = vadd.f32 %v3535_v50, %v939_v39  ;;  %v2787_v7 = vld [vmem:[%s3365_s28 + $0x120] ss:$16 sps:$4 sm:$0xff]  }
 0x16f   : > { %v2811_v34 = vpop.eup %2810  ;;  %1647 = vmatpush2.bf16.msra.mxu0 %v2787_v7  ;;  %v991_v15 = vld [vmem:[%s631_s4] sm:$0x3] }
 0x170   : > { %1126 = vmatmul.mubr.bf16.gmra.mxu1 %v968_v12  ;;  %v970_v37 = vpack.c.bf16 %v2811_v34, %v2809_v31  ;;  %2822 = vtanh.f32 %v940_v43  ;;  %1648 = vmatprep.subr.bf16.mxu0 %v2795_v9  ;;  %v993_v12 = vlaneseq }
 0x171   : > { %1135 = vmatprep.mubr.bf16.mxu1 %v3141_v19  ;;  %1736 = vmatpush1.bf16.msra.mxu1 %v2712_v11  ;;  %v2813_v42 = vpop.eup %2812  ;;  %2824 = vtanh.f32 %v945_v49  ;;  %v2793_v11 = vld [vmem:[%s3365_s28 + $0x100] ss:$16 sps:$4 sm:$0xff]  }
 0x172   : > { %1737 = vmatprep.subr.bf16.mxu1 %v2720_v14  ;;  %2826 = vtanh.f32 %v948_v53  ;;  %v3598_v14 = vshrl.u32 %v993_v12, 7 }
 0x173   : > { %1649 = vmatpush2.bf16.msra.mxu0 %v2793_v11 }
 0x174   : > { %v999_v16 = vsub.s32 1, %v3598_v14  ;;  %v995_v17 = vsub.s32 0, %v3598_v14 }
 0x175   : > { %1738 = vmatpush1.bf16.msra.mxu1 %v2718_v18  ;;  %v2815_v45 = vpop.eup %2814 }
 0x176   : > { %1739 = vmatprep.subr.bf16.mxu1 %v2726_v22  ;;  %v971_v47 = vpack.c.bf16 %v2815_v45, %v2813_v42  ;;  %v2817_v52 = vpop.eup %2816  ;;  %v3607_v22 = vrot.slane %v991_v15, %v999_v16  ;;  %v3611_v23 = vrot.slane %v991_v15, %v995_v17 }
 0x177   : > { %v2819_v55 = vpop.eup %2818 }
 0x178   : > { %1136 = vmatmul.mubr.bf16.gmra.mxu1 %v969_v26  ;;  %v972_v57 = vpack.c.bf16 %v2819_v55, %v2817_v52 }
 0x179   : > { %1145 = vmatprep.mubr.bf16.mxu1 %v3141_v19  ;;  %1740 = vmatpush1.bf16.msra.mxu1 %v2724_v25  ;;  %v2821_v50 = vpop.eup %2820 }
 0x17a   : > { %1741 = vmatprep.subr.bf16.mxu1 %v2732_v27 }
 0x17d   : > { %1742 = vmatpush1.bf16.msra.mxu1 %v2730_v30  ;;  %v2823_v61 = vpop.eup %2822 }
 0x17e   : > { %1743 = vmatprep.subr.bf16.mxu1 %v2738_v33  ;;  %v973_v63 = vpack.c.bf16 %v2823_v61, %v2821_v50  ;;  %v2825_v1 = vpop.eup %2824 }
 0x17f   : > { %v2827_v2 = vpop.eup %2826 }
 0x180   : > { %1146 = vmatmul.mubr.bf16.gmra.mxu1 %v970_v37  ;;  %v974_v3 = vpack.c.bf16 %v2827_v2, %v2825_v1 }
 0x181   : > { %1155 = vmatprep.mubr.bf16.mxu1 %v3141_v19  ;;  %1744 = vmatpush1.bf16.msra.mxu1 %v2736_v36 }
 0x182   : > { %1745 = vmatprep.subr.bf16.mxu1 %v2744_v38 }
 0x185   : > { %1746 = vmatpush1.bf16.msra.mxu1 %v2742_v41 }
 0x186   : > { %1747 = vmatprep.subr.bf16.mxu1 %v2750_v44 }
 0x188   : > { %1156 = vmatmul.mubr.bf16.gmra.mxu1 %v971_v47 }
 0x189   : > { %1165 = vmatprep.mubr.bf16.mxu1 %v3141_v19  ;;  %1748 = vmatpush2.bf16.msra.mxu1 %v2748_v46 }
 0x18a   : > { %1749 = vmatprep.subr.bf16.mxu1 %v2756_v48 }
 0x18d   : > { %1750 = vmatpush2.bf16.msra.mxu1 %v2754_v51 }
 0x18e   : > { %1751 = vmatprep.subr.bf16.mxu1 %v2762_v54 }
 0x190   : > { %1166 = vmatmul.mubr.bf16.gmra.mxu1 %v972_v57 }
 0x191   : > { %1175 = vmatprep.mubr.bf16.mxu1 %v3141_v19  ;;  %1752 = vmatpush2.bf16.msra.mxu1 %v2760_v56 }
 0x192   : > { %1753 = vmatprep.subr.bf16.mxu1 %v2768_v58 }
 0x195   : > { %1754 = vmatpush2.bf16.msra.mxu1 %v2766_v59 }
 0x196   : > { %1755 = vmatprep.subr.bf16.mxu1 %v2774_v60 }
 0x198   : > { %1176 = vmatmul.mubr.bf16.gmra.mxu1 %v973_v63 }
 0x199   : > { %1185 = vmatprep.mubr.bf16.mxu1 %v3141_v19  ;;  %1756 = vmatpush2.bf16.msra.mxu1 %v2772_v62  ;;  %v2784_v19 = vld [vmem:[%s3365_s28 + $0x128] ss:$16 sps:$4 sm:$0xff]   ;;  %s2386_s28 = sshll.u32 %s3375_s27, 2 }
 0x19a   : > { %1757 = vmatprep.subr.bf16.mxu1 %v2780_v13  ;;  %s635_s15 = scalar_lea.vmem %s3915_s6, %s2386_s28 }
 0x19d   : > { %1758 = vmatpush2.bf16.msra.mxu1 %v2778_v0 }
 0x19e   : > { %1759 = vmatprep.subr.bf16.mxu1 %v2786_v20 }
 0x1a0   : > { %1186 = vmatmul.mubr.bf16.gmra.mxu1 %v974_v3 }
 0x1a1   : > { %1760 = vmatpush2.bf16.msra.mxu1 %v2784_v19 }
 0x1a2   : > { %1761 = vmatprep.subr.bf16.mxu1 %v2792_v8 }
 0x1a5   : > { %1762 = vmatpush2.bf16.msra.mxu1 %v2790_v10 }
 0x228   : > { %v1117_v18 = vpop.f32.mrf.mxu1 }
 0x229   : > { %v1118_v29 = vadd.f32 %v1117_v18, %v3611_v23 }
 0x22a   : > { %v1119_v21 = vpop.f32.mrf.mxu1 }
 0x22b   : > { %v1120_v27 = vadd.f32 %v1119_v21, %v3607_v22 }
 0x22c   : > { %v1121_v24 = vpop.f32.mrf.mxu1 }
 0x22d   : > { %v1122_v25 = vadd.f32 %v1121_v24, %v3611_v23 }
 0x22e   : > { %v1123_v26 = vpop.f32.mrf.mxu1 }
 0x22f   : > { %v1124_v28 = vadd.f32 %v1123_v26, %v3607_v22  ;;  %v1196_v32 = vpack.c.bf16 %v1122_v25, %v1118_v29 }
 0x230   : > { %v1127_v30 = vpop.f32.mrf.mxu1 }
 0x231   : > { %v1197_v31 = vpack.c.bf16 %v1124_v28, %v1120_v27  ;;  %v1128_v39 = vadd.f32 %v1127_v30, %v3611_v23 }
 0x232   : > { %v1129_v33 = vpop.f32.mrf.mxu1 }
 0x233   : > { %1650 = vmatprep.mubr.bf16.mxu0 %v1197_v31  ;;  %1763 = vmatprep.mubr.bf16.mxu1 %v1197_v31  ;;  %v1130_v37 = vadd.f32 %v1129_v33, %v3607_v22 }
 0x234   : > { %v1131_v34 = vpop.f32.mrf.mxu1  ;;  %1651 = vmatmul.mubr.bf16.vlgmr.msra.gmra.mxu0 %v1196_v32  ;;  %1764 = vmatmul.mubr.bf16.vlgmr.msra.gmra.mxu1 %v1196_v32 }
 0x235   : > { %v1132_v35 = vadd.f32 %v1131_v34, %v3611_v23 }
 0x236   : > { %v1133_v36 = vpop.f32.mrf.mxu1 }
 0x237   : > { %v1134_v38 = vadd.f32 %v1133_v36, %v3607_v22  ;;  %v1198_v42 = vpack.c.bf16 %v1132_v35, %v1128_v39 }
 0x238   : > { %v1137_v40 = vpop.f32.mrf.mxu1 }
 0x239   : > { %v1199_v41 = vpack.c.bf16 %v1134_v38, %v1130_v37  ;;  %v1138_v49 = vadd.f32 %v1137_v40, %v3611_v23 }
 0x23a   : > { %v1139_v43 = vpop.f32.mrf.mxu1 }
 0x23b   : > { %1660 = vmatprep.mubr.bf16.mxu0 %v1199_v41  ;;  %1773 = vmatprep.mubr.bf16.mxu1 %v1199_v41  ;;  %v1140_v47 = vadd.f32 %v1139_v43, %v3607_v22  ;;  %v1288_v43 = vsub.s32 2, %v3598_v14 }
 0x23c   : > { %v1141_v44 = vpop.f32.mrf.mxu1  ;;  %1661 = vmatmul.mubr.bf16.gmra.mxu0 %v1198_v42  ;;  %1774 = vmatmul.mubr.bf16.gmra.mxu1 %v1198_v42 }
 0x23d   : > { %v1142_v45 = vadd.f32 %v1141_v44, %v3611_v23  ;;  %v3650_v44 = vld [vmem:[%s635_s15] sm:$0xf] }
 0x23e   : > { %v1143_v46 = vpop.f32.mrf.mxu1 }
 0x23f   : > { %v1144_v48 = vadd.f32 %v1143_v46, %v3607_v22  ;;  %v1200_v53 = vpack.c.bf16 %v1142_v45, %v1138_v49  ;;  %v1292_v45 = vsub.s32 3, %v3598_v14 }
 0x240   : > { %v1147_v51 = vpop.f32.mrf.mxu1 }
 0x241   : > { %v1201_v52 = vpack.c.bf16 %v1144_v48, %v1140_v47  ;;  %v1148_v50 = vadd.f32 %v1147_v51, %v3611_v23 }
 0x242   : > { %v1149_v54 = vpop.f32.mrf.mxu1 }
 0x243   : > { %1670 = vmatprep.mubr.bf16.mxu0 %v1201_v52  ;;  %1783 = vmatprep.mubr.bf16.mxu1 %v1201_v52  ;;  %v1150_v58 = vadd.f32 %v1149_v54, %v3607_v22 }
 0x244   : > { %v1151_v55 = vpop.f32.mrf.mxu1  ;;  %1671 = vmatmul.mubr.bf16.gmra.mxu0 %v1200_v53  ;;  %1784 = vmatmul.mubr.bf16.gmra.mxu1 %v1200_v53 }
 0x245   : > { %v1152_v56 = vadd.f32 %v1151_v55, %v3611_v23 }
 0x246   : > { %v1153_v57 = vpop.f32.mrf.mxu1 }
 0x247   : > { %v1154_v59 = vadd.f32 %v1153_v57, %v3607_v22  ;;  %v1202_v62 = vpack.c.bf16 %v1152_v56, %v1148_v50 }
 0x248   : > { %v1157_v60 = vpop.f32.mrf.mxu1 }
 0x249   : > { %v1203_v61 = vpack.c.bf16 %v1154_v59, %v1150_v58  ;;  %v1158_v4 = vadd.f32 %v1157_v60, %v3611_v23 }
 0x24a   : > { %v1159_v63 = vpop.f32.mrf.mxu1 }
 0x24b   : > { %1680 = vmatprep.mubr.bf16.mxu0 %v1203_v61  ;;  %1793 = vmatprep.mubr.bf16.mxu1 %v1203_v61  ;;  %v1160_v2 = vadd.f32 %v1159_v63, %v3607_v22 }
 0x24c   : > { %v1161_v13 = vpop.f32.mrf.mxu1  ;;  %1681 = vmatmul.mubr.bf16.gmra.mxu0 %v1202_v62  ;;  %1794 = vmatmul.mubr.bf16.gmra.mxu1 %v1202_v62 }
 0x24d   : > { %v1162_v0 = vadd.f32 %v1161_v13, %v3611_v23 }
 0x24e   : > { %v1163_v1 = vpop.f32.mrf.mxu1 }
 0x24f   : > { %v1164_v3 = vadd.f32 %v1163_v1, %v3607_v22  ;;  %v1204_v6 = vpack.c.bf16 %v1162_v0, %v1158_v4 }
 0x250   : > { %v1167_v5 = vpop.f32.mrf.mxu1 }
 0x251   : > { %v1205_v20 = vpack.c.bf16 %v1164_v3, %v1160_v2  ;;  %v1168_v12 = vadd.f32 %v1167_v5, %v3611_v23 }
 0x252   : > { %v1169_v19 = vpop.f32.mrf.mxu1 }
 0x253   : > { %1690 = vmatprep.mubr.bf16.mxu0 %v1205_v20  ;;  %1803 = vmatprep.mubr.bf16.mxu1 %v1205_v20  ;;  %v1170_v10 = vadd.f32 %v1169_v19, %v3607_v22 }
 0x254   : > { %v1171_v7 = vpop.f32.mrf.mxu1  ;;  %1691 = vmatmul.mubr.bf16.gmra.mxu0 %v1204_v6  ;;  %1804 = vmatmul.mubr.bf16.gmra.mxu1 %v1204_v6 }
 0x255   : > { %v1172_v8 = vadd.f32 %v1171_v7, %v3611_v23 }
 0x256   : > { %v1173_v9 = vpop.f32.mrf.mxu1 }
 0x257   : > { %v1174_v11 = vadd.f32 %v1173_v9, %v3607_v22  ;;  %v1206_v21 = vpack.c.bf16 %v1172_v8, %v1168_v12 }
 0x258   : > { %v1177_v18 = vpop.f32.mrf.mxu1 }
 0x259   : > { %v1207_v15 = vpack.c.bf16 %v1174_v11, %v1170_v10  ;;  %v1178_v30 = vadd.f32 %v1177_v18, %v3611_v23 }
 0x25a   : > { %v1179_v24 = vpop.f32.mrf.mxu1 }
 0x25b   : > { %1700 = vmatprep.mubr.bf16.mxu0 %v1207_v15  ;;  %1813 = vmatprep.mubr.bf16.mxu1 %v1207_v15  ;;  %v1180_v28 = vadd.f32 %v1179_v24, %v3607_v22 }
 0x25c   : > { %v1181_v25 = vpop.f32.mrf.mxu1  ;;  %1701 = vmatmul.mubr.bf16.gmra.mxu0 %v1206_v21  ;;  %1814 = vmatmul.mubr.bf16.gmra.mxu1 %v1206_v21 }
 0x25d   : > { %v1182_v26 = vadd.f32 %v1181_v25, %v3611_v23 }
 0x25e   : > { %v1183_v27 = vpop.f32.mrf.mxu1 }
 0x25f   : > { %v1184_v29 = vadd.f32 %v1183_v27, %v3607_v22  ;;  %v1208_v33 = vpack.c.bf16 %v1182_v26, %v1178_v30 }
 0x260   : > { %v1187_v31 = vpop.f32.mrf.mxu1 }
 0x261   : > { %v1209_v32 = vpack.c.bf16 %v1184_v29, %v1180_v28  ;;  %v1188_v40 = vadd.f32 %v1187_v31, %v3611_v23 }
 0x262   : > { %v1189_v34 = vpop.f32.mrf.mxu1 }
 0x263   : > { %1710 = vmatprep.mubr.bf16.mxu0 %v1209_v32  ;;  %1823 = vmatprep.mubr.bf16.mxu1 %v1209_v32  ;;  %v1190_v38 = vadd.f32 %v1189_v34, %v3607_v22 }
 0x264   : > { %v1191_v35 = vpop.f32.mrf.mxu1  ;;  %1711 = vmatmul.mubr.bf16.gmra.mxu0 %v1208_v33  ;;  %1824 = vmatmul.mubr.bf16.gmra.mxu1 %v1208_v33 }
 0x265   : > { %v1192_v36 = vadd.f32 %v1191_v35, %v3611_v23  ;;  %v3657_v23 = vrot.slane %v3650_v44, %v1292_v45 }
 0x266   : > { %v1193_v37 = vpop.f32.mrf.mxu1 }
 0x267   : > { %v1194_v39 = vadd.f32 %v1193_v37, %v3607_v22  ;;  %v1210_v42 = vpack.c.bf16 %v1192_v36, %v1188_v40  ;;  %v3654_v22 = vrot.slane %v3650_v44, %v1288_v43 }
 0x269   : > { %v1211_v41 = vpack.c.bf16 %v1194_v39, %v1190_v38 }
 0x26b   : > { %1720 = vmatprep.mubr.bf16.mxu0 %v1211_v41  ;;  %1833 = vmatprep.mubr.bf16.mxu1 %v1211_v41 }
 0x26c   : > { %1721 = vmatmul.mubr.bf16.gmra.mxu0 %v1210_v42  ;;  %1834 = vmatmul.mubr.bf16.gmra.mxu1 %v1210_v42 }
 0x2f4   : > { %v3659_v46 = vpop.f32.mrf.mxu0  ;;  %v1765_v47 = vpop.f32.mrf.mxu1 }
 0x2f5   : > { %v1766_v48 = vadd.f32 %v1765_v47, %v3654_v22 }
 0x2f6   : > { %v3662_v49 = vpop.f32.mrf.mxu0  ;;  %v1767_v51 = vpop.f32.mrf.mxu1 }
 0x2f7   : > { %v2481_v52 = vmul.f32 -1.442695, %v1766_v48  ;;  %v1768_v53 = vadd.f32 %v1767_v51, %v3657_v23 }
 0x2f8   : > { %v3665_v54 = vpop.f32.mrf.mxu0  ;;  %v1769_v55 = vpop.f32.mrf.mxu1 }
 0x2f9   : > { %2828 = vpow2.f32 %v2481_v52  ;;  %v2482_v56 = vmul.f32 -1.442695, %v1768_v53  ;;  %v1770_v57 = vadd.f32 %v1769_v55, %v3654_v22 }
 0x2fa   : > { %v3668_v58 = vpop.f32.mrf.mxu0  ;;  %v1771_v59 = vpop.f32.mrf.mxu1 }
 0x2fb   : > { %2830 = vpow2.f32 %v2482_v56  ;;  %v2483_v50 = vmul.f32 -1.442695, %v1770_v57  ;;  %v1772_v60 = vadd.f32 %v1771_v59, %v3657_v23 }
 0x2fc   : > { %v3671_v61 = vpop.f32.mrf.mxu0  ;;  %v1775_v62 = vpop.f32.mrf.mxu1 }
 0x2fd   : > { %2832 = vpow2.f32 %v2483_v50  ;;  %v2484_v63 = vmul.f32 -1.442695, %v1772_v60  ;;  %v1776_v13 = vadd.f32 %v1775_v62, %v3654_v22  ;;  %v3710_v60 = vrot.slane %v3650_v44, %v995_v17 }
 0x2fe   : > { %v3674_v0 = vpop.f32.mrf.mxu0  ;;  %v1777_v1 = vpop.f32.mrf.mxu1 }
 0x2ff   : > { %2834 = vpow2.f32 %v2484_v63  ;;  %v2485_v2 = vmul.f32 -1.442695, %v1776_v13  ;;  %v1778_v3 = vadd.f32 %v1777_v1, %v3657_v23 }
 0x300   : > { %v3677_v4 = vpop.f32.mrf.mxu0  ;;  %v1779_v5 = vpop.f32.mrf.mxu1 }
 0x301   : > { %2836 = vpow2.f32 %v2485_v2  ;;  %v2486_v20 = vmul.f32 -1.442695, %v1778_v3  ;;  %v1780_v6 = vadd.f32 %v1779_v5, %v3654_v22  ;;  %v3719_v5 = vrot.slane %v3650_v44, %v999_v16 }
 0x302   : > { %v3680_v19 = vpop.f32.mrf.mxu0  ;;  %v1781_v7 = vpop.f32.mrf.mxu1 }
 0x303   : > { %2838 = vpow2.f32 %v2486_v20  ;;  %v2487_v8 = vmul.f32 -1.442695, %v1780_v6  ;;  %v1782_v9 = vadd.f32 %v1781_v7, %v3657_v23 }
 0x304   : > { %v3683_v10 = vpop.f32.mrf.mxu0  ;;  %v1785_v11 = vpop.f32.mrf.mxu1 }
 0x305   : > { %2840 = vpow2.f32 %v2487_v8  ;;  %v2488_v12 = vmul.f32 -1.442695, %v1782_v9  ;;  %v1786_v18 = vadd.f32 %v1785_v11, %v3654_v22  ;;  %v1653_v9 = vadd.f32 %v3659_v46, %v3710_v60 }
 0x306   : > { %v2829_v15 = vpop.eup %2828  ;;  %v3686_v21 = vpop.f32.mrf.mxu0  ;;  %v1655_v46 = vadd.f32 %v3662_v49, %v3719_v5 }
 0x307   : > { %v1787_v24 = vpop.f32.mrf.mxu1  ;;  %v1940_v25 = vadd.f32 1.0, %v2829_v15  ;;  %2842 = vpow2.f32 %v2488_v12  ;;  %v2489_v26 = vmul.f32 -1.442695, %v1786_v18 }
 0x308   : > { %v2831_v27 = vpop.eup %2830  ;;  %v1788_v28 = vadd.f32 %v1787_v24, %v3657_v23  ;;  %v3689_v29 = vpop.f32.mrf.mxu0 }
 0x309   : > { %v1789_v30 = vpop.f32.mrf.mxu1  ;;  %2844 = vrcp.f32 %v1940_v25  ;;  %v1941_v31 = vadd.f32 1.0, %v2831_v27 }
 0x30a   : > { %v1790_v32 = vadd.f32 %v1789_v30, %v3654_v22  ;;  %v2833_v33 = vpop.eup %2832  ;;  %2846 = vpow2.f32 %v2489_v26  ;;  %v2490_v34 = vmul.f32 -1.442695, %v1788_v28  ;;  %v3692_v35 = vpop.f32.mrf.mxu0 }
 0x30b   : > { %v1791_v36 = vpop.f32.mrf.mxu1  ;;  %2848 = vrcp.f32 %v1941_v31  ;;  %v1942_v37 = vadd.f32 1.0, %v2833_v33  ;;  %v1657_v33 = vadd.f32 %v3665_v54, %v3710_v60 }
 0x30c   : > { %v2491_v38 = vmul.f32 -1.442695, %v1790_v32  ;;  %v2835_v39 = vpop.eup %2834  ;;  %2850 = vpow2.f32 %v2490_v34  ;;  %v1792_v40 = vadd.f32 %v1791_v36, %v3657_v23  ;;  %v3695_v41 = vpop.f32.mrf.mxu0 }
 0x30d   : > { %v1795_v42 = vpop.f32.mrf.mxu1  ;;  %2852 = vrcp.f32 %v1942_v37  ;;  %v1943_v43 = vadd.f32 1.0, %v2835_v39 }
 0x30e   : > { %v1796_v45 = vadd.f32 %v1795_v42, %v3654_v22  ;;  %v2837_v47 = vpop.eup %2836  ;;  %2854 = vpow2.f32 %v2491_v38  ;;  %v2492_v48 = vmul.f32 -1.442695, %v1792_v40  ;;  %v3700_v51 = vpop.f32.mrf.mxu0 }
 0x30f   : > { %v1797_v52 = vpop.f32.mrf.mxu1  ;;  %2856 = vrcp.f32 %v1943_v43  ;;  %v1944_v53 = vadd.f32 1.0, %v2837_v47  ;;  %v1659_v43 = vadd.f32 %v3668_v58, %v3719_v5 }
 0x310   : > { %v2493_v55 = vmul.f32 -1.442695, %v1796_v45  ;;  %v2839_v56 = vpop.eup %2838  ;;  %2858 = vpow2.f32 %v2492_v48  ;;  %v1798_v57 = vadd.f32 %v1797_v52, %v3657_v23  ;;  %v3705_v59 = vpop.f32.mrf.mxu0 }
 0x311   : > { %v1799_v50 = vpop.f32.mrf.mxu1  ;;  %2860 = vrcp.f32 %v1944_v53  ;;  %v1945_v62 = vadd.f32 1.0, %v2839_v56  ;;  %v1663_v56 = vadd.f32 %v3671_v61, %v3710_v60 }
 0x312   : > { %v1800_v63 = vadd.f32 %v1799_v50, %v3654_v22  ;;  %v2841_v13 = vpop.eup %2840  ;;  %2862 = vpow2.f32 %v2493_v55  ;;  %v2494_v1 = vmul.f32 -1.442695, %v1798_v57  ;;  %v3713_v2 = vpop.f32.mrf.mxu0 }
 0x313   : > { %v1801_v3 = vpop.f32.mrf.mxu1  ;;  %2864 = vrcp.f32 %v1945_v62  ;;  %v1946_v20 = vadd.f32 1.0, %v2841_v13 }
 0x314   : > { %v2495_v17 = vmul.f32 -1.442695, %v1800_v63  ;;  %v2843_v6 = vpop.eup %2842  ;;  %2866 = vpow2.f32 %v2494_v1  ;;  %v1802_v7 = vadd.f32 %v1801_v3, %v3657_v23  ;;  %v3724_v12 = vpop.f32.mrf.mxu0 }
 0x315   : > { %v1805_v8 = vpop.f32.mrf.mxu1  ;;  %2868 = vrcp.f32 %v1946_v20  ;;  %v1947_v11 = vadd.f32 1.0, %v2843_v6  ;;  %v1665_v20 = vadd.f32 %v3674_v0, %v3719_v5 }
 0x316   : > { %v1806_v14 = vadd.f32 %v1805_v8, %v3654_v22  ;;  %v2845_v18 = vpop.eup %2844  ;;  %2870 = vpow2.f32 %v2495_v17  ;;  %v2496_v16 = vmul.f32 -1.442695, %v1802_v7  ;;  %v3738_v34 = vpop.f32.mrf.mxu0 }
 0x317   : > { %v1807_v44 = vpop.f32.mrf.mxu1  ;;  %v2847_v15 = vpop.eup %2846  ;;  %v2036_v24 = vmul.f32 %v2845_v18, %v1653_v9  ;;  %2872 = vrcp.f32 %v1947_v11 }
 0x318   : > { %v2497_v25 = vmul.f32 -1.442695, %v1806_v14  ;;  %v2849_v26 = vpop.eup %2848  ;;  %v1948_v27 = vadd.f32 1.0, %v2847_v15  ;;  %2874 = vpow2.f32 %v2496_v16  ;;  %v1808_v28 = vadd.f32 %v1807_v44, %v3657_v23  ;;  %v3748_v57 = vpop.f32.mrf.mxu0 }
 0x319   : > { %v1809_v30 = vpop.f32.mrf.mxu1  ;;  %v2851_v31 = vpop.eup %2850  ;;  %2068 = vst [vmem:[%s3730_s25] sm:$0xff] %v2036_v24  ;;  %v2037_v32 = vmul.f32 %v2849_v26, %v1655_v46  ;;  %v1667_v14 = vadd.f32 %v3677_v4, %v3710_v60  ;;  %v1669_v26 = vadd.f32 %v3680_v19, %v3719_v5 }
 0x31a   : > { %2876 = vpow2.f32 %v2497_v25  ;;  %v1810_v49 = vadd.f32 %v1809_v30, %v3654_v22  ;;  %v2853_v36 = vpop.eup %2852  ;;  %v1949_v37 = vadd.f32 1.0, %v2851_v31  ;;  %v2498_v38 = vmul.f32 -1.442695, %v1808_v28  ;;  %v3758_v18 = vpop.f32.mrf.mxu0 }
 0x31b   : > { %2878 = vrcp.f32 %v1948_v27  ;;  %v1811_v39 = vpop.f32.mrf.mxu1  ;;  %v2855_v40 = vpop.eup %2854  ;;  %2069 = vst [vmem:[%s3730_s25 + $0x8] sm:$0xff] %v2037_v32  ;;  %v2038_v42 = vmul.f32 %v2853_v36, %v1657_v33 }
 0x31c   : > { %v2499_v45 = vmul.f32 -1.442695, %v1810_v49  ;;  %v1812_v54 = vadd.f32 %v1811_v39, %v3657_v23  ;;  %v2857_v47 = vpop.eup %2856  ;;  %2880 = vrcp.f32 %v1949_v37  ;;  %v1950_v48 = vadd.f32 1.0, %v2855_v40  ;;  %v3768_v36 = vpop.f32.mrf.mxu0 }
 0x31d   : > { %v1815_v52 = vpop.f32.mrf.mxu1  ;;  %v2859_v53 = vpop.eup %2858  ;;  %2070 = vst [vmem:[%s3730_s25 + $0x10] sm:$0xff] %v2038_v42  ;;  %v2039_v55 = vmul.f32 %v2857_v47, %v1659_v43  ;;  %2882 = vpow2.f32 %v2498_v38  ;;  %v1673_v49 = vadd.f32 %v3683_v10, %v3710_v60  ;;  %v1675_v10 = vadd.f32 %v3686_v21, %v3719_v5 }
 0x31e   : > { %v2500_v50 = vmul.f32 -1.442695, %v1812_v54  ;;  %v2861_v62 = vpop.eup %2860  ;;  %2884 = vrcp.f32 %v1950_v48  ;;  %v1951_v58 = vadd.f32 1.0, %v2859_v53  ;;  %v1816_v63 = vadd.f32 %v1815_v52, %v3654_v22  ;;  %v3775_v53 = vpop.f32.mrf.mxu0 }
 0x31f   : > { %v1817_v13 = vpop.f32.mrf.mxu1  ;;  %v2863_v1 = vpop.eup %2862  ;;  %2071 = vst [vmem:[%s3730_s25 + $0x18] sm:$0xff] %v2039_v55  ;;  %v2040_v3 = vmul.f32 %v2861_v62, %v1663_v56  ;;  %2886 = vpow2.f32 %v2499_v45 }
 0x320   : > { %v1818_v61 = vadd.f32 %v1817_v13, %v3657_v23  ;;  %v2865_v17 = vpop.eup %2864  ;;  %2888 = vrcp.f32 %v1951_v58  ;;  %v1952_v6 = vadd.f32 1.0, %v2863_v1  ;;  %v2501_v7 = vmul.f32 -1.442695, %v1816_v63 }
 0x321   : > { %v1819_v8 = vpop.f32.mrf.mxu1  ;;  %v2867_v9 = vpop.eup %2866  ;;  %2072 = vst [vmem:[%s3730_s25 + $0x20] sm:$0xff] %v2040_v3  ;;  %v2041_v11 = vmul.f32 %v2865_v17, %v1665_v20  ;;  %2890 = vpow2.f32 %v2500_v50  ;;  %v1677_v58 = vadd.f32 %v3689_v29, %v3710_v60 }
 0x322   : > { %v2502_v16 = vmul.f32 -1.442695, %v1818_v61  ;;  %v2869_v0 = vpop.eup %2868  ;;  %2892 = vrcp.f32 %v1952_v6  ;;  %v1953_v44 = vadd.f32 1.0, %v2867_v9  ;;  %v1820_v15 = vadd.f32 %v1819_v8, %v3654_v22  ;;  %v3785_v8 = vpop.f32.mrf.mxu0 }
 0x323   : > { %v1821_v24 = vpop.f32.mrf.mxu1  ;;  %v2871_v46 = vpop.eup %2870  ;;  %2073 = vst [vmem:[%s3730_s25 + $0x28] sm:$0xff] %v2041_v11  ;;  %v2042_v25 = vmul.f32 %v2869_v0, %v1667_v14  ;;  %2894 = vpow2.f32 %v2501_v7  ;;  %v1679_v61 = vadd.f32 %v3692_v35, %v3719_v5 }
 0x324   : > { %v1822_v4 = vadd.f32 %v1821_v24, %v3657_v23  ;;  %v2873_v27 = vpop.eup %2872  ;;  %2896 = vrcp.f32 %v1953_v44  ;;  %v1954_v28 = vadd.f32 1.0, %v2871_v46  ;;  %v2503_v30 = vmul.f32 -1.442695, %v1820_v15 }
 0x325   : > { %v1825_v31 = vpop.f32.mrf.mxu1  ;;  %v2875_v32 = vpop.eup %2874  ;;  %2074 = vst [vmem:[%s3730_s25 + $0x30] sm:$0xff] %v2042_v25  ;;  %v2043_v33 = vmul.f32 %v2873_v27, %v1669_v26  ;;  %2898 = vpow2.f32 %v2502_v16  ;;  %v1683_v16 = vadd.f32 %v3695_v41, %v3710_v60  ;;  %v1685_v26 = vadd.f32 %v3700_v51, %v3719_v5 }
 0x326   : > { %2900 = vrcp.f32 %v1954_v28  ;;  %v1955_v19 = vadd.f32 1.0, %v2875_v32  ;;  %v2504_v38 = vmul.f32 -1.442695, %v1822_v4  ;;  %v1826_v39 = vadd.f32 %v1825_v31, %v3654_v22 }
 0x327   : > { %v2877_v37 = vpop.eup %2876  ;;  %v1827_v40 = vpop.f32.mrf.mxu1  ;;  %2075 = vst [vmem:[%s3730_s25 + $0x38] sm:$0xff] %v2043_v33  ;;  %2902 = vpow2.f32 %v2503_v30 }
 0x328   : > { %v2879_v42 = vpop.eup %2878  ;;  %v1956_v43 = vadd.f32 1.0, %v2877_v37  ;;  %v1828_v45 = vadd.f32 %v1827_v40, %v3657_v23  ;;  %2904 = vrcp.f32 %v1955_v19  ;;  %v2505_v47 = vmul.f32 -1.442695, %v1826_v39  ;;  %v3795_v30 = vpop.f32.mrf.mxu0 }
 0x329   : > { %v2044_v54 = vmul.f32 %v2879_v42, %v1673_v49  ;;  %v1829_v48 = vpop.f32.mrf.mxu1  ;;  %v2881_v52 = vpop.eup %2880  ;;  %v1687_v49 = vadd.f32 %v3705_v59, %v3710_v60  ;;  %v1693_v59 = vadd.f32 %v3724_v12, %v3710_v60  ;;  %v1695_v12 = vadd.f32 %v3738_v34, %v3719_v5 }
 0x32a   : > { %2906 = vrcp.f32 %v1956_v43  ;;  %v2506_v55 = vmul.f32 -1.442695, %v1828_v45  ;;  %v1830_v56 = vadd.f32 %v1829_v48, %v3654_v22  ;;  %v2883_v50 = vpop.eup %2882  ;;  %v2045_v62 = vmul.f32 %v2881_v52, %v1675_v10  ;;  %v3807_v10 = vpop.f32.mrf.mxu0 }
 0x32b   : > { %2076 = vst [vmem:[%s3730_s25 + $0x40] sm:$0xff] %v2044_v54  ;;  %2908 = vpow2.f32 %v2504_v38  ;;  %v1831_v63 = vpop.f32.mrf.mxu1  ;;  %v2885_v21 = vpop.eup %2884  ;;  %v1957_v13 = vadd.f32 1.0, %v2883_v50  ;;  %v1699_v34 = vadd.f32 %v3758_v18, %v3719_v5  ;;  %v1705_v18 = vadd.f32 %v3775_v53, %v3719_v5 }
 0x32c   : > { %2910 = vpow2.f32 %v2505_v47  ;;  %v2507_v1 = vmul.f32 -1.442695, %v1830_v56  ;;  %v2887_v3 = vpop.eup %2886  ;;  %2077 = vst [vmem:[%s3730_s25 + $0x48] sm:$0xff] %v2045_v62  ;;  %v2046_v20 = vmul.f32 %v2885_v21, %v1677_v58  ;;  %v1832_v17 = vadd.f32 %v1831_v63, %v3657_v23  ;;  %v1714_v58 = vpop.f32.mrf.mxu0 }
 0x32d   : > { %2912 = vpow2.f32 %v2506_v55  ;;  %v1835_v6 = vpop.f32.mrf.mxu1  ;;  %v2889_v7 = vpop.eup %2888  ;;  %v1958_v29 = vadd.f32 1.0, %v2887_v3  ;;  %v1697_v3 = vadd.f32 %v3748_v57, %v3710_v60  ;;  %v1703_v57 = vadd.f32 %v3768_v36, %v3710_v60 }
 0x32e   : > { %2914 = vrcp.f32 %v1957_v13  ;;  %v1836_v9 = vadd.f32 %v1835_v6, %v3654_v22  ;;  %v2891_v11 = vpop.eup %2890  ;;  %2078 = vst [vmem:[%s3730_s25 + $0x50] sm:$0xff] %v2046_v20  ;;  %v2047_v14 = vmul.f32 %v2889_v7, %v1679_v61  ;;  %v2508_v35 = vmul.f32 -1.442695, %v1832_v17  ;;  %v1716_v7 = vpop.f32.mrf.mxu0 }
 0x32f   : > { %2916 = vpow2.f32 %v2507_v1  ;;  %v1837_v0 = vpop.f32.mrf.mxu1  ;;  %v2893_v44 = vpop.eup %2892  ;;  %v1959_v15 = vadd.f32 1.0, %v2891_v11  ;;  %v1707_v36 = vadd.f32 %v3785_v8, %v3710_v60  ;;  %v1709_v53 = vadd.f32 %v3795_v30, %v3719_v5 }
 0x330   : > { %2918 = vrcp.f32 %v1958_v29  ;;  %v2509_v24 = vmul.f32 -1.442695, %v1836_v9  ;;  %v2895_v46 = vpop.eup %2894  ;;  %2079 = vst [vmem:[%s3730_s25 + $0x58] sm:$0xff] %v2047_v14  ;;  %v2048_v25 = vmul.f32 %v2893_v44, %v1683_v16  ;;  %v1838_v4 = vadd.f32 %v1837_v0, %v3657_v23 }
 0x331   : > { %2920 = vpow2.f32 %v2508_v35  ;;  %v1839_v27 = vpop.f32.mrf.mxu1  ;;  %v2897_v28 = vpop.eup %2896  ;;  %v1960_v41 = vadd.f32 1.0, %v2895_v46  ;;  %v1713_v8 = vadd.f32 %v3807_v10, %v3710_v60 }
 0x332   : > { %2922 = vrcp.f32 %v1959_v15  ;;  %v1840_v31 = vadd.f32 %v1839_v27, %v3654_v22  ;;  %v2899_v32 = vpop.eup %2898  ;;  %2080 = vst [vmem:[%s3730_s25 + $0x60] sm:$0xff] %v2048_v25  ;;  %v2049_v33 = vmul.f32 %v2897_v28, %v1685_v26  ;;  %v2510_v51 = vmul.f32 -1.442695, %v1838_v4  ;;  %v1718_v15 = vpop.f32.mrf.mxu0 }
 0x333   : > { %2924 = vpow2.f32 %v2509_v24  ;;  %v1841_v37 = vpop.f32.mrf.mxu1  ;;  %v2901_v19 = vpop.eup %2900  ;;  %v1961_v38 = vadd.f32 1.0, %v2899_v32  ;;  %v1689_v22 = vadd.f32 %v3713_v2, %v3719_v5 }
 0x334   : > { %2926 = vrcp.f32 %v1960_v41  ;;  %v2511_v39 = vmul.f32 -1.442695, %v1840_v31  ;;  %v2903_v40 = vpop.eup %2902  ;;  %2081 = vst [vmem:[%s3730_s25 + $0x68] sm:$0xff] %v2049_v33  ;;  %v2050_v42 = vmul.f32 %v2901_v19, %v1687_v49  ;;  %v1842_v43 = vadd.f32 %v1841_v37, %v3657_v23  ;;  %v1722_v31 = vpop.f32.mrf.mxu0 }
 0x335   : > { %2928 = vpow2.f32 %v2510_v51  ;;  %v2905_v45 = vpop.eup %2904  ;;  %v1962_v54 = vadd.f32 1.0, %v2903_v40  ;;  %v1715_v37 = vadd.f32 %v1714_v58, %v3719_v5  ;;  %v1717_v40 = vadd.f32 %v1716_v7, %v3710_v60 }
 0x336   : > { %2930 = vrcp.f32 %v1961_v38  ;;  %2082 = vst [vmem:[%s3730_s25 + $0x70] sm:$0xff] %v2050_v42  ;;  %v2051_v48 = vmul.f32 %v2905_v45, %v1689_v22  ;;  %v2512_v52 = vmul.f32 -1.442695, %v1842_v43  ;;  %v1719_v43 = vadd.f32 %v1718_v15, %v3719_v5 }
 0x337   : > { %v2907_v47 = vpop.eup %2906  ;;  %2932 = vpow2.f32 %v2511_v39  ;;  %v1724_v39 = vpop.f32.mrf.mxu0  ;;  %v1723_v10 = vadd.f32 %v1722_v31, %v3710_v60 }
 0x338   : > { %v2909_v55 = vpop.eup %2908  ;;  %v2052_v2 = vmul.f32 %v2907_v47, %v1693_v59  ;;  %2934 = vrcp.f32 %v1962_v54  ;;  %2083 = vst [vmem:[%s3730_s25 + $0x78] sm:$0xff] %v2051_v48 }
 0x339   : > { %v2911_v56 = vpop.eup %2910  ;;  %v1963_v23 = vadd.f32 1.0, %v2909_v55  ;;  %2936 = vpow2.f32 %v2512_v52  ;;  %v1726_v59 = vpop.f32.mrf.mxu0  ;;  %v1725_v52 = vadd.f32 %v1724_v39, %v3719_v5 }
 0x33a   : > { %v2913_v50 = vpop.eup %2912  ;;  %2084 = vst [vmem:[%s3730_s25 + $0x80] sm:$0xff] %v2052_v2  ;;  %v1964_v62 = vadd.f32 1.0, %v2911_v56 }
 0x33b   : > { %v2915_v63 = vpop.eup %2914  ;;  %2938 = vrcp.f32 %v1963_v23  ;;  %v1965_v21 = vadd.f32 1.0, %v2913_v50  ;;  %v1728_v2 = vpop.f32.mrf.mxu0  ;;  %v1727_v23 = vadd.f32 %v1726_v59, %v3710_v60 }
 0x33c   : > { %v2917_v13 = vpop.eup %2916  ;;  %v2053_v1 = vmul.f32 %v2915_v63, %v1695_v12  ;;  %2940 = vrcp.f32 %v1964_v62  ;;  %v1729_v62 = vadd.f32 %v1728_v2, %v3719_v5 }
 0x33d   : > { %v2919_v20 = vpop.eup %2918  ;;  %2942 = vrcp.f32 %v1965_v21  ;;  %v1966_v61 = vadd.f32 1.0, %v2917_v13 }
 0x33e   : > { %v2921_v17 = vpop.eup %2920  ;;  %2085 = vst [vmem:[%s3730_s25 + $0x88] sm:$0xff] %v2053_v1  ;;  %v2054_v6 = vmul.f32 %v2919_v20, %v1697_v3 }
 0x33f   : > { %v2923_v29 = vpop.eup %2922  ;;  %2944 = vrcp.f32 %v1966_v61  ;;  %v1967_v9 = vadd.f32 1.0, %v2921_v17 }
 0x340   : > { %v2925_v11 = vpop.eup %2924  ;;  %2086 = vst [vmem:[%s3730_s25 + $0x90] sm:$0xff] %v2054_v6  ;;  %v2055_v14 = vmul.f32 %v2923_v29, %v1699_v34 }
 0x341   : > { %v2927_v16 = vpop.eup %2926  ;;  %2946 = vrcp.f32 %v1967_v9  ;;  %v1968_v35 = vadd.f32 1.0, %v2925_v11 }
 0x342   : > { %v2929_v0 = vpop.eup %2928  ;;  %2087 = vst [vmem:[%s3730_s25 + $0x98] sm:$0xff] %v2055_v14  ;;  %v2056_v44 = vmul.f32 %v2927_v16, %v1703_v57 }
 0x343   : > { %v2931_v24 = vpop.eup %2930  ;;  %2948 = vrcp.f32 %v1968_v35  ;;  %v1969_v46 = vadd.f32 1.0, %v2929_v0 }
 0x344   : > { %v2933_v25 = vpop.eup %2932  ;;  %2088 = vst [vmem:[%s3730_s25 + $0xa0] sm:$0xff] %v2056_v44  ;;  %v2057_v26 = vmul.f32 %v2931_v24, %v1705_v18 }
 0x345   : > { %v2935_v4 = vpop.eup %2934  ;;  %2950 = vrcp.f32 %v1969_v46  ;;  %v1970_v27 = vadd.f32 1.0, %v2933_v25 }
 0x346   : > { %v2937_v28 = vpop.eup %2936  ;;  %2089 = vst [vmem:[%s3730_s25 + $0xa8] sm:$0xff] %v2057_v26  ;;  %v2058_v41 = vmul.f32 %v2935_v4, %v1707_v36 }
 0x347   : > { %2952 = vrcp.f32 %v1970_v27  ;;  %v1971_v32 = vadd.f32 1.0, %v2937_v28 }
 0x348   : > { %v2939_v33 = vpop.eup %2938  ;;  %2090 = vst [vmem:[%s3730_s25 + $0xb0] sm:$0xff] %v2058_v41 }
 0x349   : > { %v2941_v49 = vpop.eup %2940  ;;  %v2059_v51 = vmul.f32 %v2939_v33, %v1709_v53  ;;  %2954 = vrcp.f32 %v1971_v32 }
 0x34a   : > { %v2943_v19 = vpop.eup %2942  ;;  %v2060_v38 = vmul.f32 %v2941_v49, %v1713_v8 }
 0x34b   : > { %2091 = vst [vmem:[%s3730_s25 + $0xb8] sm:$0xff] %v2059_v51  ;;  %v2061_v30 = vmul.f32 %v2943_v19, %v1715_v37 }
 0x34c   : > { %v2945_v42 = vpop.eup %2944  ;;  %2092 = vst [vmem:[%s3730_s25 + $0xc0] sm:$0xff] %v2060_v38 }
 0x34d   : > { %2093 = vst [vmem:[%s3730_s25 + $0xc8] sm:$0xff] %v2061_v30  ;;  %v2062_v22 = vmul.f32 %v2945_v42, %v1717_v40 }
 0x34e   : > { %v2947_v45 = vpop.eup %2946 }
 0x34f   : > { %2094 = vst [vmem:[%s3730_s25 + $0xd0] sm:$0xff] %v2062_v22  ;;  %v2063_v54 = vmul.f32 %v2947_v45, %v1719_v43 }
 0x350   : > { %v2949_v47 = vpop.eup %2948 }
 0x351   : > { %2095 = vst [vmem:[%s3730_s25 + $0xd8] sm:$0xff] %v2063_v54  ;;  %v2064_v48 = vmul.f32 %v2949_v47, %v1723_v10 }
 0x352   : > { %v2951_v55 = vpop.eup %2950 }
 0x353   : > { %2096 = vst [vmem:[%s3730_s25 + $0xe0] sm:$0xff] %v2064_v48  ;;  %v2065_v56 = vmul.f32 %v2951_v55, %v1725_v52 }
 0x354   : > { %v2953_v50 = vpop.eup %2952 }
 0x355   : > { %2097 = vst [vmem:[%s3730_s25 + $0xe8] sm:$0xff] %v2065_v56  ;;  %v2066_v12 = vmul.f32 %v2953_v50, %v1727_v23 }
 0x356   : > { %v2955_v58 = vpop.eup %2954 }
 0x357   : > { %2098 = vst [vmem:[%s3730_s25 + $0xf0] sm:$0xff] %v2066_v12  ;;  %v2067_v63 = vmul.f32 %v2955_v58, %v1729_v62 }
 0x359   : > { %2099 = vst [vmem:[%s3730_s25 + $0xf8] sm:$0xff] %v2067_v63 }
 0x35a PF: > { %s27_s20 = sadd.s32 1, %s3129_s20   ;;  %s3917_s10 = sld [smem:[#allocation12_spill]] }
 0x35b   : > { %p24_p7 = scmp.ge.s32.totalorder %s27_s20, 8   ;;  %s3918_s15 = sld [smem:[#allocation16_spill]] }
 0x35c   : > { %s3919_s16 = sld [smem:[#allocation13_spill]]  ;;  %s3922_s13 = smov %s3105_s14 }
 0x35d   : > { %s3920_s18 = sld [smem:[#allocation14_spill]]  ;;  %s3924_s17 = smov %s3125_s19 }
 0x35e   : > { %s3921_s0 = sld [smem:[#allocation15_spill]] }
 0x360   : > { %s3923_s14 = smov %s3917_s10  ;;  %26 = sbr.rel (!%p24_p7) target bundleno = 16 (0x10), region = 149 }
 0x364   : > { %s3925_s19 = smov %s3921_s0 }
 0x365   :  { %2140 = vsyncpa [#allocation3], 1 }
 0x366   :  { %2142 = vsyncpa [#allocation3 + $0x1], 1 }
 0x367   :  { %2143 = vsyncpa [#allocation7], 1 }
 0x368   :  { %2145 = vsyncpa [#allocation7 + $0x1], 1 }
 0x369   :  { %2146 = vsyncpa [#allocation4], 1 }
 0x36a   :  { %2148 = vsyncpa [#allocation4 + $0x1], 1 }

</bundles_post_ra>
